<compile_context>
chip_gen: v7x
topology: tpu7x:2x2x1
jax: 0.10.0
libtpu: 0.0.40
codegen_flags: <defaults>
</compile_context>

<pallas_src>
import jax
import jax.numpy as jnp
from jax import lax
from jax.experimental import pallas as pl
from jax.experimental.pallas import tpu as pltpu


def _round_up(x, m):
    return ((x + m - 1) // m) * m


# --------------------------- fused forward kernel ----------------------------
def make_fused_gru_kernel(num_layers, seq_len, batch_p, hidden_p, mxu_dtype):
    """Fused GRU stack + FC head for static (num_layers, T, Bp, Hp)."""
    T, Bp, Hp = seq_len, batch_p, hidden_p

    def kernel(*refs):
        # refs: x2d, (wih, whh, b_x, b_hn) * L, fc_w, fc_b, out, gi_scr, hseq_scr
        x_ref = refs[0]
        layer_refs = refs[1:1 + 4 * num_layers]
        fcw_ref = refs[1 + 4 * num_layers]
        fcb_ref = refs[2 + 4 * num_layers]
        o_ref = refs[3 + 4 * num_layers]
        gi_ref = refs[4 + 4 * num_layers]      # (T*Bp, 3*Hp) f32 scratch
        hseq_ref = refs[5 + 4 * num_layers]    # (T*Bp, Hp)   f32 scratch

        h = None
        for l in range(num_layers):
            wih_ref = layer_refs[4 * l + 0]    # (d_in_p, 3*Hp)   [r | z | n]
            whh_ref = layer_refs[4 * l + 1]    # (Hp, 3*Hp)
            bx_ref = layer_refs[4 * l + 2]     # (1, 3*Hp) f32  (b_ir+b_hr | b_iz+b_hz | b_in)
            bhn_ref = layer_refs[4 * l + 3]    # (1, Hp)   f32  (b_hn)

            # ---- input projections for ALL timesteps: ONE MXU op per layer ----
            if l == 0:
                src = x_ref[...]                               # already mxu_dtype
            else:
                src = hseq_ref[...].astype(mxu_dtype)
            gi_ref[...] = (
                jnp.dot(src, wih_ref[...], preferred_element_type=jnp.float32)
                + bx_ref[...]                                  # added once per layer
            )

            # Hoisted broadcast (JAX does not CSE broadcast_in_dim).
            b_hn = jnp.broadcast_to(bhn_ref[...], (Bp, Hp))

            h = jnp.zeros((Bp, Hp), jnp.float32)
            write_seq = l < num_layers - 1

            # Serial recurrence: only h @ W_hh + gate math on the chain.
            # TODO(synk): for T >> 16, switch this full unroll to
            #             lax.fori_loop(..., unroll=2..4) with pl.ds row slices.
            for t in range(T):
                r0 = t * Bp                                    # 8-row-aligned base
                gh = jnp.dot(h.astype(mxu_dtype), whh_ref[...],
                             preferred_element_type=jnp.float32)   # (Bp, 3*Hp)
                # Fused r/z sigmoid over the 128-lane-aligned 2*Hp slab.
                rz = jax.nn.sigmoid(gi_ref[r0:r0 + Bp, 0:2 * Hp] + gh[:, 0:2 * Hp])
                r = rz[:, 0:Hp]
                z = rz[:, Hp:2 * Hp]
                n = jnp.tanh(gi_ref[r0:r0 + Bp, 2 * Hp:3 * Hp]
                             + r * (gh[:, 2 * Hp:3 * Hp] + b_hn))
                h = n + z * (h - n)             # == (1 - z) * n + z * h
                if write_seq:                   # only materialize if a layer follows
                    hseq_ref[r0:r0 + Bp, :] = h

        # fc(output)[:, -1, :] == fc(last hidden state of the last layer)
        o_ref[...] = (
            jnp.dot(h.astype(mxu_dtype), fcw_ref[...],
                    preferred_element_type=jnp.float32)
            + fcb_ref[...]
        )

    return kernel


@jax.jit
def gru_regressor_forward(x_btd, packed_layers, fc_w_p, fc_b):
    """x_btd: (B, T, input_dim), batch_first — same as the PyTorch module."""
    B, T, D = x_btd.shape
    num_layers = len(packed_layers)
    Hp = packed_layers[0][1].shape[0]          # whh_cat: (Hp, 3*Hp)
    O = fc_w_p.shape[1]
    Bp = _round_up(B, 8)                       # sublane-aligned batch
    mxu_dtype = packed_layers[0][0].dtype      # f32 or bf16 MXU operands

    # One-time, off-critical-path layout prep: time-major, batch-padded,
    # flattened so every per-timestep block is an 8-row-aligned slab.
    x_tbd = jnp.transpose(x_btd, (1, 0, 2))
    x_tbd = jnp.pad(x_tbd, ((0, 0), (0, Bp - B), (0, 0)))
    x2d = x_tbd.reshape(T * Bp, D).astype(mxu_dtype)

    operands = [x2d]
    in_specs = [pl.BlockSpec(x2d.shape, lambda i: (0, 0))]
    for layer in packed_layers:
        for arr in layer:
            operands.append(arr)
            in_specs.append(pl.BlockSpec(arr.shape, lambda i: (0, 0)))
    for arr in (fc_w_p, fc_b):
        operands.append(arr)
        in_specs.append(pl.BlockSpec(arr.shape, lambda i: (0, 0)))

    kernel = make_fused_gru_kernel(num_layers, T, Bp, Hp, mxu_dtype)

    out_p = pl.pallas_call(
        kernel,
        out_shape=jax.ShapeDtypeStruct((Bp, O), jnp.float32),
        grid=(1,),
        in_specs=in_specs,
        out_specs=pl.BlockSpec((Bp, O), lambda i: (0, 0)),
        scratch_shapes=[
            pltpu.VMEM((T * Bp, 3 * Hp), jnp.float32),   # batched gate projections
            pltpu.VMEM((T * Bp, Hp), jnp.float32),       # layer-to-layer hidden seq
        ],
        compiler_params=pltpu.CompilerParams(
            # Single program: B (2 -> padded 8) is too small to tile.  For
            # non-trivial B, add a "parallel" batch grid axis (>=8-row blocks)
            # to use both v7x TensorCores and overlap input DMA with compute;
            # for much larger H/L, set vmem_limit_bytes and stream per-layer
            # weights.
            dimension_semantics=("arbitrary",),
        ),
    )(*operands)
    return out_p[:B]


# --------------------------- param prep / reference ---------------------------
def prepare_params(torch_layer_params, fc_w, fc_b, param_dtype=jnp.float32):
    """PyTorch-style stacked [r,z,n] params -> fused, gate-padded layout.

    Each gate block is zero-padded to Hp = round_up(H, 128) lanes so in-kernel
    gate slices are 128-lane aligned (zero-cost views).  Biases stay f32 (v5e
    has no bf16 VPU/EUP); only MXU operands take `param_dtype`.
    """
    H = torch_layer_params[0][1].shape[-1]
    Hp = _round_up(H, 128)

    def pad_gate_cols(a):                       # (d, H) -> (d, Hp), zero pad
        return jnp.pad(a, ((0, 0), (0, Hp - H)))

    packed = []
    for li, (wih, whh, bih, bhh) in enumerate(torch_layer_params):
        d_in = wih.shape[1]
        d_in_p = d_in if li == 0 else Hp        # layers > 0 consume padded h
        wih_cat = jnp.concatenate([pad_gate_cols(wih[g]) for g in range(3)], -1)
        wih_cat = jnp.pad(wih_cat, ((0, d_in_p - d_in), (0, 0)))        # (d_in_p, 3Hp)
        whh_cat = jnp.concatenate([pad_gate_cols(whh[g]) for g in range(3)], -1)
        whh_cat = jnp.pad(whh_cat, ((0, Hp - H), (0, 0)))               # (Hp, 3Hp)
        b_x = jnp.concatenate(
            [pad_gate_cols(bih[0] + bhh[0]),
             pad_gate_cols(bih[1] + bhh[1]),
             pad_gate_cols(bih[2])], -1)                                # (1, 3Hp)
        b_hn = pad_gate_cols(bhh[2])                                    # (1, Hp)
        packed.append((wih_cat.astype(param_dtype),
                       whh_cat.astype(param_dtype),
                       b_x.astype(jnp.float32),
                       b_hn.astype(jnp.float32)))
    fc_w_p = jnp.pad(fc_w, ((0, Hp - H), (0, 0))).astype(param_dtype)   # (Hp, O)
    return packed, fc_w_p, fc_b.astype(jnp.float32)


def gru_regressor_ref(x_btd, torch_layer_params, fc_w, fc_b):
    """Pure-JAX f32 reference mirroring nn.GRU + nn.Linear (eval semantics)."""
    x = jnp.transpose(x_btd, (1, 0, 2))  # (T, B, D)
    B = x.shape[1]
    for (wih, whh, bih, bhh) in torch_layer_params:
        H = whh.shape[-1]

        def step(h, x_t, wih=wih, whh=whh, bih=bih, bhh=bhh):
            r = jax.nn.sigmoid(x_t @ wih[0] + bih[0] + h @ whh[0] + bhh[0])
            z = jax.nn.sigmoid(x_t @ wih[1] + bih[1] + h @ whh[1] + bhh[1])
            n = jnp.tanh(x_t @ wih[2] + bih[2] + r * (h @ whh[2] + bhh[2]))
            h_new = (1.0 - z) * n + z * h
            return h_new, h_new

        _, x = lax.scan(step, jnp.zeros((B, H), jnp.float32), x)
    return x[-1] @ fc_w + fc_b


def init_params(key, input_dim, hidden_dim, num_layers, output_dim):
    """Deterministic init mirroring nn.GRU / nn.Linear shapes (U(-1/sqrt(H), 1/sqrt(H)))."""
    bound = 1.0 / jnp.sqrt(jnp.float32(hidden_dim))
    layer_params = []
    d_in = input_dim
    for _ in range(num_layers):
        key, k1, k2, k3, k4 = jax.random.split(key, 5)
        wih = jax.random.uniform(k1, (3, d_in, hidden_dim), jnp.float32, -bound, bound)
        whh = jax.random.uniform(k2, (3, hidden_dim, hidden_dim), jnp.float32, -bound, bound)
        bih = jax.random.uniform(k3, (3, 1, hidden_dim), jnp.float32, -bound, bound)
        bhh = jax.random.uniform(k4, (3, 1, hidden_dim), jnp.float32, -bound, bound)
        layer_params.append((wih, whh, bih, bhh))
        d_in = hidden_dim
    key, k5, k6 = jax.random.split(key, 3)
    fc_w = jax.random.uniform(k5, (hidden_dim, output_dim), jnp.float32, -bound, bound)
    fc_b = jax.random.uniform(k6, (1, output_dim), jnp.float32, -bound, bound)
    return layer_params, fc_w, fc_b


if __name__ == "__main__":
    B, T = 2, 8
    input_dim, hidden_dim, num_layers, output_dim = 16, 32, 2, 4

    key = jax.random.PRNGKey(0)
    key, kx = jax.random.split(key)
    x = jax.random.normal(kx, (B, T, input_dim), jnp.float32)

    torch_layer_params, fc_w, fc_b = init_params(
        key, input_dim, hidden_dim, num_layers, output_dim
    )
    ref = gru_regressor_ref(x, torch_layer_params, fc_w, fc_b)

    # f32 path: exact nn.GRU/nn.Linear numerics.
    layers32, fcw32, fcb32 = prepare_params(torch_layer_params, fc_w, fc_b, jnp.float32)
    out32 = jax.block_until_ready(gru_regressor_forward(x, layers32, fcw32, fcb32))
    assert out32.shape == (B, output_dim), out32.shape
    assert jnp.allclose(out32, ref, atol=1e-4, rtol=1e-4), (out32, ref)

    # bf16-weight path (v6e/v7x MXU-native; f32 accumulation & f32 gate math).
    layers16, fcw16, fcb16 = prepare_params(torch_layer_params, fc_w, fc_b, jnp.bfloat16)
    out16 = jax.block_until_ready(gru_regressor_forward(x, layers16, fcw16, fcb16))
    assert out16.shape == (B, output_dim), out16.shape
    assert jnp.allclose(out16, ref, atol=1e-1, rtol=1e-1), (out16, ref)

    print("KERNEL_OK")
</pallas_src>

<mosaic_0001>
module attributes {stable_mosaic.version = 11 : i64} {
  func.func @kernel(%arg0: i32, %arg1: memref<64x16xf32, #tpu.memory_space<vmem>>, %arg2: memref<16x384xf32, #tpu.memory_space<vmem>>, %arg3: memref<128x384xf32, #tpu.memory_space<vmem>>, %arg4: memref<1x384xf32, #tpu.memory_space<vmem>>, %arg5: memref<1x128xf32, #tpu.memory_space<vmem>>, %arg6: memref<128x384xf32, #tpu.memory_space<vmem>>, %arg7: memref<128x384xf32, #tpu.memory_space<vmem>>, %arg8: memref<1x384xf32, #tpu.memory_space<vmem>>, %arg9: memref<1x128xf32, #tpu.memory_space<vmem>>, %arg10: memref<128x4xf32, #tpu.memory_space<vmem>>, %arg11: memref<1x4xf32, #tpu.memory_space<vmem>>, %arg12: memref<8x4xf32, #tpu.memory_space<vmem>>, %arg13: memref<64x384xf32, #tpu.memory_space<vmem>>, %arg14: memref<64x128xf32, #tpu.memory_space<vmem>>) attributes {dimension_semantics = [#tpu.dimension_semantics<arbitrary>], iteration_bounds = array<i64: 1>, scalar_prefetch = 0 : i64, scratch_operands = 2 : i64, tpu.core_type = #tpu.core_type<tc>, window_params = [{pipeline_mode = #tpu.pipeline_mode<synchronous>, transform_indices = @transform_0, window_bounds = array<i64: 64, 16>}, {pipeline_mode = #tpu.pipeline_mode<synchronous>, transform_indices = @transform_1, window_bounds = array<i64: 16, 384>}, {pipeline_mode = #tpu.pipeline_mode<synchronous>, transform_indices = @transform_2, window_bounds = array<i64: 128, 384>}, {pipeline_mode = #tpu.pipeline_mode<synchronous>, transform_indices = @transform_3, window_bounds = array<i64: 1, 384>}, {pipeline_mode = #tpu.pipeline_mode<synchronous>, transform_indices = @transform_4, window_bounds = array<i64: 1, 128>}, {pipeline_mode = #tpu.pipeline_mode<synchronous>, transform_indices = @transform_5, window_bounds = array<i64: 128, 384>}, {pipeline_mode = #tpu.pipeline_mode<synchronous>, transform_indices = @transform_6, window_bounds = array<i64: 128, 384>}, {pipeline_mode = #tpu.pipeline_mode<synchronous>, transform_indices = @transform_7, window_bounds = array<i64: 1, 384>}, {pipeline_mode = #tpu.pipeline_mode<synchronous>, transform_indices = @transform_8, window_bounds = array<i64: 1, 128>}, {pipeline_mode = #tpu.pipeline_mode<synchronous>, transform_indices = @transform_9, window_bounds = array<i64: 128, 4>}, {pipeline_mode = #tpu.pipeline_mode<synchronous>, transform_indices = @transform_10, window_bounds = array<i64: 1, 4>}, {pipeline_mode = #tpu.pipeline_mode<synchronous>, transform_indices = @transform_11, window_bounds = array<i64: 8, 4>}]} {
    %c0 = arith.constant 0 : index
    %c0_0 = arith.constant 0 : index
    %0 = vector.load %arg1[%c0, %c0_0] : memref<64x16xf32, #tpu.memory_space<vmem>>, vector<64x16xf32>
    %c0_1 = arith.constant 0 : index
    %c0_2 = arith.constant 0 : index
    %1 = vector.load %arg2[%c0_1, %c0_2] : memref<16x384xf32, #tpu.memory_space<vmem>>, vector<16x384xf32>
    %cst = arith.constant dense<0.000000e+00> : vector<64x384xf32>
    %2 = tpu.matmul %0, %1, %cst {dimension_numbers = #tpu.dot_dimension_numbers<[1], [0], [0], [1], [0, 0, 1, 1], [], []>} : vector<64x16xf32>, vector<16x384xf32>, vector<64x384xf32> -> vector<64x384xf32>
    %c0_3 = arith.constant 0 : index
    %c0_4 = arith.constant 0 : index
    %3 = vector.load %arg4[%c0_3, %c0_4] : memref<1x384xf32, #tpu.memory_space<vmem>>, vector<1x384xf32>
    %4 = vector.broadcast %3 : vector<1x384xf32> to vector<64x384xf32>
    %5 = arith.addf %2, %4 : vector<64x384xf32>
    %c0_5 = arith.constant 0 : index
    %c0_6 = arith.constant 0 : index
    %6 = vector.load %arg13[%c0_5, %c0_6] : memref<64x384xf32, #tpu.memory_space<vmem>>, vector<64x384xf32>
    tpu.vector_store %arg13[%c0_5, %c0_6], %5 {strides = array<i32>} : memref<64x384xf32, #tpu.memory_space<vmem>>, vector<64x384xf32>,
    %c0_7 = arith.constant 0 : index
    %c0_8 = arith.constant 0 : index
    %7 = vector.load %arg5[%c0_7, %c0_8] : memref<1x128xf32, #tpu.memory_space<vmem>>, vector<1x128xf32>
    %8 = vector.shape_cast %7 : vector<1x128xf32> to vector<1x128xf32>
    %9 = vector.broadcast %8 : vector<1x128xf32> to vector<8x128xf32>
    %cst_9 = arith.constant 0.000000e+00 : f32
    %10 = vector.broadcast %cst_9 : f32 to vector<8x128xf32>
    %c0_10 = arith.constant 0 : index
    %c0_11 = arith.constant 0 : index
    %11 = vector.load %arg3[%c0_10, %c0_11] : memref<128x384xf32, #tpu.memory_space<vmem>>, vector<128x384xf32>
    %cst_12 = arith.constant dense<0.000000e+00> : vector<8x384xf32>
    %12 = tpu.matmul %10, %11, %cst_12 {dimension_numbers = #tpu.dot_dimension_numbers<[1], [0], [0], [1], [0, 0, 1, 1], [], []>} : vector<8x128xf32>, vector<128x384xf32>, vector<8x384xf32> -> vector<8x384xf32>
    %c0_13 = arith.constant 0 : index
    %c0_14 = arith.constant 0 : index
    %13 = vector.load %arg13[%c0_13, %c0_14] : memref<64x384xf32, #tpu.memory_space<vmem>>, vector<8x256xf32>
    %14 = vector.extract_strided_slice %12 {offsets = [0, 0], sizes = [8, 256], strides = [1, 1]} : vector<8x384xf32> to vector<8x256xf32>
    %15 = arith.addf %13, %14 : vector<8x256xf32>
    %16 = arith.negf %15 : vector<8x256xf32>
    %17 = math.exp %16 : vector<8x256xf32>
    %cst_15 = arith.constant 1.000000e+00 : f32
    %18 = vector.broadcast %cst_15 : f32 to vector<8x256xf32>
    %19 = arith.addf %18, %17 : vector<8x256xf32>
    %20 = arith.divf %18, %19 : vector<8x256xf32>
    %21 = vector.extract_strided_slice %20 {offsets = [0, 0], sizes = [8, 128], strides = [1, 1]} : vector<8x256xf32> to vector<8x128xf32>
    %22 = vector.extract_strided_slice %20 {offsets = [0, 128], sizes = [8, 128], strides = [1, 1]} : vector<8x256xf32> to vector<8x128xf32>
    %c0_16 = arith.constant 0 : index
    %c256 = arith.constant 256 : index
    %23 = vector.load %arg13[%c0_16, %c256] : memref<64x384xf32, #tpu.memory_space<vmem>>, vector<8x128xf32>
    %24 = vector.extract_strided_slice %12 {offsets = [0, 256], sizes = [8, 128], strides = [1, 1]} : vector<8x384xf32> to vector<8x128xf32>
    %25 = arith.addf %24, %9 : vector<8x128xf32>
    %26 = arith.mulf %21, %25 : vector<8x128xf32>
    %27 = arith.addf %23, %26 : vector<8x128xf32>
    %28 = math.tanh %27 : vector<8x128xf32>
    %29 = arith.subf %10, %28 : vector<8x128xf32>
    %30 = arith.mulf %22, %29 : vector<8x128xf32>
    %31 = arith.addf %28, %30 : vector<8x128xf32>
    %c0_17 = arith.constant 0 : index
    %c0_18 = arith.constant 0 : index
    %32 = vector.load %arg14[%c0_17, %c0_18] : memref<64x128xf32, #tpu.memory_space<vmem>>, vector<8x128xf32>
    tpu.vector_store %arg14[%c0_17, %c0_18], %31 {strides = array<i32>} : memref<64x128xf32, #tpu.memory_space<vmem>>, vector<8x128xf32>,
    %c0_19 = arith.constant 0 : index
    %c0_20 = arith.constant 0 : index
    %33 = vector.load %arg3[%c0_19, %c0_20] : memref<128x384xf32, #tpu.memory_space<vmem>>, vector<128x384xf32>
    %cst_21 = arith.constant dense<0.000000e+00> : vector<8x384xf32>
    %34 = tpu.matmul %31, %33, %cst_21 {dimension_numbers = #tpu.dot_dimension_numbers<[1], [0], [0], [1], [0, 0, 1, 1], [], []>} : vector<8x128xf32>, vector<128x384xf32>, vector<8x384xf32> -> vector<8x384xf32>
    %c8 = arith.constant 8 : index
    %c0_22 = arith.constant 0 : index
    %35 = vector.load %arg13[%c8, %c0_22] : memref<64x384xf32, #tpu.memory_space<vmem>>, vector<8x256xf32>
    %36 = vector.extract_strided_slice %34 {offsets = [0, 0], sizes = [8, 256], strides = [1, 1]} : vector<8x384xf32> to vector<8x256xf32>
    %37 = arith.addf %35, %36 : vector<8x256xf32>
    %38 = arith.negf %37 : vector<8x256xf32>
    %39 = math.exp %38 : vector<8x256xf32>
    %cst_23 = arith.constant 1.000000e+00 : f32
    %40 = vector.broadcast %cst_23 : f32 to vector<8x256xf32>
    %41 = arith.addf %40, %39 : vector<8x256xf32>
    %42 = arith.divf %40, %41 : vector<8x256xf32>
    %43 = vector.extract_strided_slice %42 {offsets = [0, 0], sizes = [8, 128], strides = [1, 1]} : vector<8x256xf32> to vector<8x128xf32>
    %44 = vector.extract_strided_slice %42 {offsets = [0, 128], sizes = [8, 128], strides = [1, 1]} : vector<8x256xf32> to vector<8x128xf32>
    %c8_24 = arith.constant 8 : index
    %c256_25 = arith.constant 256 : index
    %45 = vector.load %arg13[%c8_24, %c256_25] : memref<64x384xf32, #tpu.memory_space<vmem>>, vector<8x128xf32>
    %46 = vector.extract_strided_slice %34 {offsets = [0, 256], sizes = [8, 128], strides = [1, 1]} : vector<8x384xf32> to vector<8x128xf32>
    %47 = arith.addf %46, %9 : vector<8x128xf32>
    %48 = arith.mulf %43, %47 : vector<8x128xf32>
    %49 = arith.addf %45, %48 : vector<8x128xf32>
    %50 = math.tanh %49 : vector<8x128xf32>
    %51 = arith.subf %31, %50 : vector<8x128xf32>
    %52 = arith.mulf %44, %51 : vector<8x128xf32>
    %53 = arith.addf %50, %52 : vector<8x128xf32>
    %c8_26 = arith.constant 8 : index
    %c0_27 = arith.constant 0 : index
    %54 = vector.load %arg14[%c8_26, %c0_27] : memref<64x128xf32, #tpu.memory_space<vmem>>, vector<8x128xf32>
    tpu.vector_store %arg14[%c8_26, %c0_27], %53 {strides = array<i32>} : memref<64x128xf32, #tpu.memory_space<vmem>>, vector<8x128xf32>,
    %c0_28 = arith.constant 0 : index
    %c0_29 = arith.constant 0 : index
    %55 = vector.load %arg3[%c0_28, %c0_29] : memref<128x384xf32, #tpu.memory_space<vmem>>, vector<128x384xf32>
    %cst_30 = arith.constant dense<0.000000e+00> : vector<8x384xf32>
    %56 = tpu.matmul %53, %55, %cst_30 {dimension_numbers = #tpu.dot_dimension_numbers<[1], [0], [0], [1], [0, 0, 1, 1], [], []>} : vector<8x128xf32>, vector<128x384xf32>, vector<8x384xf32> -> vector<8x384xf32>
    %c16 = arith.constant 16 : index
    %c0_31 = arith.constant 0 : index
    %57 = vector.load %arg13[%c16, %c0_31] : memref<64x384xf32, #tpu.memory_space<vmem>>, vector<8x256xf32>
    %58 = vector.extract_strided_slice %56 {offsets = [0, 0], sizes = [8, 256], strides = [1, 1]} : vector<8x384xf32> to vector<8x256xf32>
    %59 = arith.addf %57, %58 : vector<8x256xf32>
    %60 = arith.negf %59 : vector<8x256xf32>
    %61 = math.exp %60 : vector<8x256xf32>
    %cst_32 = arith.constant 1.000000e+00 : f32
    %62 = vector.broadcast %cst_32 : f32 to vector<8x256xf32>
    %63 = arith.addf %62, %61 : vector<8x256xf32>
    %64 = arith.divf %62, %63 : vector<8x256xf32>
    %65 = vector.extract_strided_slice %64 {offsets = [0, 0], sizes = [8, 128], strides = [1, 1]} : vector<8x256xf32> to vector<8x128xf32>
    %66 = vector.extract_strided_slice %64 {offsets = [0, 128], sizes = [8, 128], strides = [1, 1]} : vector<8x256xf32> to vector<8x128xf32>
    %c16_33 = arith.constant 16 : index
    %c256_34 = arith.constant 256 : index
    %67 = vector.load %arg13[%c16_33, %c256_34] : memref<64x384xf32, #tpu.memory_space<vmem>>, vector<8x128xf32>
    %68 = vector.extract_strided_slice %56 {offsets = [0, 256], sizes = [8, 128], strides = [1, 1]} : vector<8x384xf32> to vector<8x128xf32>
    %69 = arith.addf %68, %9 : vector<8x128xf32>
    %70 = arith.mulf %65, %69 : vector<8x128xf32>
    %71 = arith.addf %67, %70 : vector<8x128xf32>
    %72 = math.tanh %71 : vector<8x128xf32>
    %73 = arith.subf %53, %72 : vector<8x128xf32>
    %74 = arith.mulf %66, %73 : vector<8x128xf32>
    %75 = arith.addf %72, %74 : vector<8x128xf32>
    %c16_35 = arith.constant 16 : index
    %c0_36 = arith.constant 0 : index
    %76 = vector.load %arg14[%c16_35, %c0_36] : memref<64x128xf32, #tpu.memory_space<vmem>>, vector<8x128xf32>
    tpu.vector_store %arg14[%c16_35, %c0_36], %75 {strides = array<i32>} : memref<64x128xf32, #tpu.memory_space<vmem>>, vector<8x128xf32>,
    %c0_37 = arith.constant 0 : index
    %c0_38 = arith.constant 0 : index
    %77 = vector.load %arg3[%c0_37, %c0_38] : memref<128x384xf32, #tpu.memory_space<vmem>>, vector<128x384xf32>
    %cst_39 = arith.constant dense<0.000000e+00> : vector<8x384xf32>
    %78 = tpu.matmul %75, %77, %cst_39 {dimension_numbers = #tpu.dot_dimension_numbers<[1], [0], [0], [1], [0, 0, 1, 1], [], []>} : vector<8x128xf32>, vector<128x384xf32>, vector<8x384xf32> -> vector<8x384xf32>
    %c24 = arith.constant 24 : index
    %c0_40 = arith.constant 0 : index
    %79 = vector.load %arg13[%c24, %c0_40] : memref<64x384xf32, #tpu.memory_space<vmem>>, vector<8x256xf32>
    %80 = vector.extract_strided_slice %78 {offsets = [0, 0], sizes = [8, 256], strides = [1, 1]} : vector<8x384xf32> to vector<8x256xf32>
    %81 = arith.addf %79, %80 : vector<8x256xf32>
    %82 = arith.negf %81 : vector<8x256xf32>
    %83 = math.exp %82 : vector<8x256xf32>
    %cst_41 = arith.constant 1.000000e+00 : f32
    %84 = vector.broadcast %cst_41 : f32 to vector<8x256xf32>
    %85 = arith.addf %84, %83 : vector<8x256xf32>
    %86 = arith.divf %84, %85 : vector<8x256xf32>
    %87 = vector.extract_strided_slice %86 {offsets = [0, 0], sizes = [8, 128], strides = [1, 1]} : vector<8x256xf32> to vector<8x128xf32>
    %88 = vector.extract_strided_slice %86 {offsets = [0, 128], sizes = [8, 128], strides = [1, 1]} : vector<8x256xf32> to vector<8x128xf32>
    %c24_42 = arith.constant 24 : index
    %c256_43 = arith.constant 256 : index
    %89 = vector.load %arg13[%c24_42, %c256_43] : memref<64x384xf32, #tpu.memory_space<vmem>>, vector<8x128xf32>
    %90 = vector.extract_strided_slice %78 {offsets = [0, 256], sizes = [8, 128], strides = [1, 1]} : vector<8x384xf32> to vector<8x128xf32>
    %91 = arith.addf %90, %9 : vector<8x128xf32>
    %92 = arith.mulf %87, %91 : vector<8x128xf32>
    %93 = arith.addf %89, %92 : vector<8x128xf32>
    %94 = math.tanh %93 : vector<8x128xf32>
    %95 = arith.subf %75, %94 : vector<8x128xf32>
    %96 = arith.mulf %88, %95 : vector<8x128xf32>
    %97 = arith.addf %94, %96 : vector<8x128xf32>
    %c24_44 = arith.constant 24 : index
    %c0_45 = arith.constant 0 : index
    %98 = vector.load %arg14[%c24_44, %c0_45] : memref<64x128xf32, #tpu.memory_space<vmem>>, vector<8x128xf32>
    tpu.vector_store %arg14[%c24_44, %c0_45], %97 {strides = array<i32>} : memref<64x128xf32, #tpu.memory_space<vmem>>, vector<8x128xf32>,
    %c0_46 = arith.constant 0 : index
    %c0_47 = arith.constant 0 : index
    %99 = vector.load %arg3[%c0_46, %c0_47] : memref<128x384xf32, #tpu.memory_space<vmem>>, vector<128x384xf32>
    %cst_48 = arith.constant dense<0.000000e+00> : vector<8x384xf32>
    %100 = tpu.matmul %97, %99, %cst_48 {dimension_numbers = #tpu.dot_dimension_numbers<[1], [0], [0], [1], [0, 0, 1, 1], [], []>} : vector<8x128xf32>, vector<128x384xf32>, vector<8x384xf32> -> vector<8x384xf32>
    %c32 = arith.constant 32 : index
    %c0_49 = arith.constant 0 : index
    %101 = vector.load %arg13[%c32, %c0_49] : memref<64x384xf32, #tpu.memory_space<vmem>>, vector<8x256xf32>
    %102 = vector.extract_strided_slice %100 {offsets = [0, 0], sizes = [8, 256], strides = [1, 1]} : vector<8x384xf32> to vector<8x256xf32>
    %103 = arith.addf %101, %102 : vector<8x256xf32>
    %104 = arith.negf %103 : vector<8x256xf32>
    %105 = math.exp %104 : vector<8x256xf32>
    %cst_50 = arith.constant 1.000000e+00 : f32
    %106 = vector.broadcast %cst_50 : f32 to vector<8x256xf32>
    %107 = arith.addf %106, %105 : vector<8x256xf32>
    %108 = arith.divf %106, %107 : vector<8x256xf32>
    %109 = vector.extract_strided_slice %108 {offsets = [0, 0], sizes = [8, 128], strides = [1, 1]} : vector<8x256xf32> to vector<8x128xf32>
    %110 = vector.extract_strided_slice %108 {offsets = [0, 128], sizes = [8, 128], strides = [1, 1]} : vector<8x256xf32> to vector<8x128xf32>
    %c32_51 = arith.constant 32 : index
    %c256_52 = arith.constant 256 : index
    %111 = vector.load %arg13[%c32_51, %c256_52] : memref<64x384xf32, #tpu.memory_space<vmem>>, vector<8x128xf32>
    %112 = vector.extract_strided_slice %100 {offsets = [0, 256], sizes = [8, 128], strides = [1, 1]} : vector<8x384xf32> to vector<8x128xf32>
    %113 = arith.addf %112, %9 : vector<8x128xf32>
    %114 = arith.mulf %109, %113 : vector<8x128xf32>
    %115 = arith.addf %111, %114 : vector<8x128xf32>
    %116 = math.tanh %115 : vector<8x128xf32>
    %117 = arith.subf %97, %116 : vector<8x128xf32>
    %118 = arith.mulf %110, %117 : vector<8x128xf32>
    %119 = arith.addf %116, %118 : vector<8x128xf32>
    %c32_53 = arith.constant 32 : index
    %c0_54 = arith.constant 0 : index
    %120 = vector.load %arg14[%c32_53, %c0_54] : memref<64x128xf32, #tpu.memory_space<vmem>>, vector<8x128xf32>
    tpu.vector_store %arg14[%c32_53, %c0_54], %119 {strides = array<i32>} : memref<64x128xf32, #tpu.memory_space<vmem>>, vector<8x128xf32>,
    %c0_55 = arith.constant 0 : index
    %c0_56 = arith.constant 0 : index
    %121 = vector.load %arg3[%c0_55, %c0_56] : memref<128x384xf32, #tpu.memory_space<vmem>>, vector<128x384xf32>
    %cst_57 = arith.constant dense<0.000000e+00> : vector<8x384xf32>
    %122 = tpu.matmul %119, %121, %cst_57 {dimension_numbers = #tpu.dot_dimension_numbers<[1], [0], [0], [1], [0, 0, 1, 1], [], []>} : vector<8x128xf32>, vector<128x384xf32>, vector<8x384xf32> -> vector<8x384xf32>
    %c40 = arith.constant 40 : index
    %c0_58 = arith.constant 0 : index
    %123 = vector.load %arg13[%c40, %c0_58] : memref<64x384xf32, #tpu.memory_space<vmem>>, vector<8x256xf32>
    %124 = vector.extract_strided_slice %122 {offsets = [0, 0], sizes = [8, 256], strides = [1, 1]} : vector<8x384xf32> to vector<8x256xf32>
    %125 = arith.addf %123, %124 : vector<8x256xf32>
    %126 = arith.negf %125 : vector<8x256xf32>
    %127 = math.exp %126 : vector<8x256xf32>
    %cst_59 = arith.constant 1.000000e+00 : f32
    %128 = vector.broadcast %cst_59 : f32 to vector<8x256xf32>
    %129 = arith.addf %128, %127 : vector<8x256xf32>
    %130 = arith.divf %128, %129 : vector<8x256xf32>
    %131 = vector.extract_strided_slice %130 {offsets = [0, 0], sizes = [8, 128], strides = [1, 1]} : vector<8x256xf32> to vector<8x128xf32>
    %132 = vector.extract_strided_slice %130 {offsets = [0, 128], sizes = [8, 128], strides = [1, 1]} : vector<8x256xf32> to vector<8x128xf32>
    %c40_60 = arith.constant 40 : index
    %c256_61 = arith.constant 256 : index
    %133 = vector.load %arg13[%c40_60, %c256_61] : memref<64x384xf32, #tpu.memory_space<vmem>>, vector<8x128xf32>
    %134 = vector.extract_strided_slice %122 {offsets = [0, 256], sizes = [8, 128], strides = [1, 1]} : vector<8x384xf32> to vector<8x128xf32>
    %135 = arith.addf %134, %9 : vector<8x128xf32>
    %136 = arith.mulf %131, %135 : vector<8x128xf32>
    %137 = arith.addf %133, %136 : vector<8x128xf32>
    %138 = math.tanh %137 : vector<8x128xf32>
    %139 = arith.subf %119, %138 : vector<8x128xf32>
    %140 = arith.mulf %132, %139 : vector<8x128xf32>
    %141 = arith.addf %138, %140 : vector<8x128xf32>
    %c40_62 = arith.constant 40 : index
    %c0_63 = arith.constant 0 : index
    %142 = vector.load %arg14[%c40_62, %c0_63] : memref<64x128xf32, #tpu.memory_space<vmem>>, vector<8x128xf32>
    tpu.vector_store %arg14[%c40_62, %c0_63], %141 {strides = array<i32>} : memref<64x128xf32, #tpu.memory_space<vmem>>, vector<8x128xf32>,
    %c0_64 = arith.constant 0 : index
    %c0_65 = arith.constant 0 : index
    %143 = vector.load %arg3[%c0_64, %c0_65] : memref<128x384xf32, #tpu.memory_space<vmem>>, vector<128x384xf32>
    %cst_66 = arith.constant dense<0.000000e+00> : vector<8x384xf32>
    %144 = tpu.matmul %141, %143, %cst_66 {dimension_numbers = #tpu.dot_dimension_numbers<[1], [0], [0], [1], [0, 0, 1, 1], [], []>} : vector<8x128xf32>, vector<128x384xf32>, vector<8x384xf32> -> vector<8x384xf32>
    %c48 = arith.constant 48 : index
    %c0_67 = arith.constant 0 : index
    %145 = vector.load %arg13[%c48, %c0_67] : memref<64x384xf32, #tpu.memory_space<vmem>>, vector<8x256xf32>
    %146 = vector.extract_strided_slice %144 {offsets = [0, 0], sizes = [8, 256], strides = [1, 1]} : vector<8x384xf32> to vector<8x256xf32>
    %147 = arith.addf %145, %146 : vector<8x256xf32>
    %148 = arith.negf %147 : vector<8x256xf32>
    %149 = math.exp %148 : vector<8x256xf32>
    %cst_68 = arith.constant 1.000000e+00 : f32
    %150 = vector.broadcast %cst_68 : f32 to vector<8x256xf32>
    %151 = arith.addf %150, %149 : vector<8x256xf32>
    %152 = arith.divf %150, %151 : vector<8x256xf32>
    %153 = vector.extract_strided_slice %152 {offsets = [0, 0], sizes = [8, 128], strides = [1, 1]} : vector<8x256xf32> to vector<8x128xf32>
    %154 = vector.extract_strided_slice %152 {offsets = [0, 128], sizes = [8, 128], strides = [1, 1]} : vector<8x256xf32> to vector<8x128xf32>
    %c48_69 = arith.constant 48 : index
    %c256_70 = arith.constant 256 : index
    %155 = vector.load %arg13[%c48_69, %c256_70] : memref<64x384xf32, #tpu.memory_space<vmem>>, vector<8x128xf32>
    %156 = vector.extract_strided_slice %144 {offsets = [0, 256], sizes = [8, 128], strides = [1, 1]} : vector<8x384xf32> to vector<8x128xf32>
    %157 = arith.addf %156, %9 : vector<8x128xf32>
    %158 = arith.mulf %153, %157 : vector<8x128xf32>
    %159 = arith.addf %155, %158 : vector<8x128xf32>
    %160 = math.tanh %159 : vector<8x128xf32>
    %161 = arith.subf %141, %160 : vector<8x128xf32>
    %162 = arith.mulf %154, %161 : vector<8x128xf32>
    %163 = arith.addf %160, %162 : vector<8x128xf32>
    %c48_71 = arith.constant 48 : index
    %c0_72 = arith.constant 0 : index
    %164 = vector.load %arg14[%c48_71, %c0_72] : memref<64x128xf32, #tpu.memory_space<vmem>>, vector<8x128xf32>
    tpu.vector_store %arg14[%c48_71, %c0_72], %163 {strides = array<i32>} : memref<64x128xf32, #tpu.memory_space<vmem>>, vector<8x128xf32>,
    %c0_73 = arith.constant 0 : index
    %c0_74 = arith.constant 0 : index
    %165 = vector.load %arg3[%c0_73, %c0_74] : memref<128x384xf32, #tpu.memory_space<vmem>>, vector<128x384xf32>
    %cst_75 = arith.constant dense<0.000000e+00> : vector<8x384xf32>
    %166 = tpu.matmul %163, %165, %cst_75 {dimension_numbers = #tpu.dot_dimension_numbers<[1], [0], [0], [1], [0, 0, 1, 1], [], []>} : vector<8x128xf32>, vector<128x384xf32>, vector<8x384xf32> -> vector<8x384xf32>
    %c56 = arith.constant 56 : index
    %c0_76 = arith.constant 0 : index
    %167 = vector.load %arg13[%c56, %c0_76] : memref<64x384xf32, #tpu.memory_space<vmem>>, vector<8x256xf32>
    %168 = vector.extract_strided_slice %166 {offsets = [0, 0], sizes = [8, 256], strides = [1, 1]} : vector<8x384xf32> to vector<8x256xf32>
    %169 = arith.addf %167, %168 : vector<8x256xf32>
    %170 = arith.negf %169 : vector<8x256xf32>
    %171 = math.exp %170 : vector<8x256xf32>
    %cst_77 = arith.constant 1.000000e+00 : f32
    %172 = vector.broadcast %cst_77 : f32 to vector<8x256xf32>
    %173 = arith.addf %172, %171 : vector<8x256xf32>
    %174 = arith.divf %172, %173 : vector<8x256xf32>
    %175 = vector.extract_strided_slice %174 {offsets = [0, 0], sizes = [8, 128], strides = [1, 1]} : vector<8x256xf32> to vector<8x128xf32>
    %176 = vector.extract_strided_slice %174 {offsets = [0, 128], sizes = [8, 128], strides = [1, 1]} : vector<8x256xf32> to vector<8x128xf32>
    %c56_78 = arith.constant 56 : index
    %c256_79 = arith.constant 256 : index
    %177 = vector.load %arg13[%c56_78, %c256_79] : memref<64x384xf32, #tpu.memory_space<vmem>>, vector<8x128xf32>
    %178 = vector.extract_strided_slice %166 {offsets = [0, 256], sizes = [8, 128], strides = [1, 1]} : vector<8x384xf32> to vector<8x128xf32>
    %179 = arith.addf %178, %9 : vector<8x128xf32>
    %180 = arith.mulf %175, %179 : vector<8x128xf32>
    %181 = arith.addf %177, %180 : vector<8x128xf32>
    %182 = math.tanh %181 : vector<8x128xf32>
    %183 = arith.subf %163, %182 : vector<8x128xf32>
    %184 = arith.mulf %176, %183 : vector<8x128xf32>
    %185 = arith.addf %182, %184 : vector<8x128xf32>
    %c56_80 = arith.constant 56 : index
    %c0_81 = arith.constant 0 : index
    %186 = vector.load %arg14[%c56_80, %c0_81] : memref<64x128xf32, #tpu.memory_space<vmem>>, vector<8x128xf32>
    tpu.vector_store %arg14[%c56_80, %c0_81], %185 {strides = array<i32>} : memref<64x128xf32, #tpu.memory_space<vmem>>, vector<8x128xf32>,
    %c0_82 = arith.constant 0 : index
    %c0_83 = arith.constant 0 : index
    %187 = vector.load %arg14[%c0_82, %c0_83] : memref<64x128xf32, #tpu.memory_space<vmem>>, vector<64x128xf32>
    %c0_84 = arith.constant 0 : index
    %c0_85 = arith.constant 0 : index
    %188 = vector.load %arg6[%c0_84, %c0_85] : memref<128x384xf32, #tpu.memory_space<vmem>>, vector<128x384xf32>
    %cst_86 = arith.constant dense<0.000000e+00> : vector<64x384xf32>
    %189 = tpu.matmul %187, %188, %cst_86 {dimension_numbers = #tpu.dot_dimension_numbers<[1], [0], [0], [1], [0, 0, 1, 1], [], []>} : vector<64x128xf32>, vector<128x384xf32>, vector<64x384xf32> -> vector<64x384xf32>
    %c0_87 = arith.constant 0 : index
    %c0_88 = arith.constant 0 : index
    %190 = vector.load %arg8[%c0_87, %c0_88] : memref<1x384xf32, #tpu.memory_space<vmem>>, vector<1x384xf32>
    %191 = vector.broadcast %190 : vector<1x384xf32> to vector<64x384xf32>
    %192 = arith.addf %189, %191 : vector<64x384xf32>
    %c0_89 = arith.constant 0 : index
    %c0_90 = arith.constant 0 : index
    %193 = vector.load %arg13[%c0_89, %c0_90] : memref<64x384xf32, #tpu.memory_space<vmem>>, vector<64x384xf32>
    tpu.vector_store %arg13[%c0_89, %c0_90], %192 {strides = array<i32>} : memref<64x384xf32, #tpu.memory_space<vmem>>, vector<64x384xf32>,
    %c0_91 = arith.constant 0 : index
    %c0_92 = arith.constant 0 : index
    %194 = vector.load %arg9[%c0_91, %c0_92] : memref<1x128xf32, #tpu.memory_space<vmem>>, vector<1x128xf32>
    %195 = vector.shape_cast %194 : vector<1x128xf32> to vector<1x128xf32>
    %196 = vector.broadcast %195 : vector<1x128xf32> to vector<8x128xf32>
    %cst_93 = arith.constant 0.000000e+00 : f32
    %197 = vector.broadcast %cst_93 : f32 to vector<8x128xf32>
    %c0_94 = arith.constant 0 : index
    %c0_95 = arith.constant 0 : index
    %198 = vector.load %arg7[%c0_94, %c0_95] : memref<128x384xf32, #tpu.memory_space<vmem>>, vector<128x384xf32>
    %cst_96 = arith.constant dense<0.000000e+00> : vector<8x384xf32>
    %199 = tpu.matmul %197, %198, %cst_96 {dimension_numbers = #tpu.dot_dimension_numbers<[1], [0], [0], [1], [0, 0, 1, 1], [], []>} : vector<8x128xf32>, vector<128x384xf32>, vector<8x384xf32> -> vector<8x384xf32>
    %c0_97 = arith.constant 0 : index
    %c0_98 = arith.constant 0 : index
    %200 = vector.load %arg13[%c0_97, %c0_98] : memref<64x384xf32, #tpu.memory_space<vmem>>, vector<8x256xf32>
    %201 = vector.extract_strided_slice %199 {offsets = [0, 0], sizes = [8, 256], strides = [1, 1]} : vector<8x384xf32> to vector<8x256xf32>
    %202 = arith.addf %200, %201 : vector<8x256xf32>
    %203 = arith.negf %202 : vector<8x256xf32>
    %204 = math.exp %203 : vector<8x256xf32>
    %cst_99 = arith.constant 1.000000e+00 : f32
    %205 = vector.broadcast %cst_99 : f32 to vector<8x256xf32>
    %206 = arith.addf %205, %204 : vector<8x256xf32>
    %207 = arith.divf %205, %206 : vector<8x256xf32>
    %208 = vector.extract_strided_slice %207 {offsets = [0, 0], sizes = [8, 128], strides = [1, 1]} : vector<8x256xf32> to vector<8x128xf32>
    %209 = vector.extract_strided_slice %207 {offsets = [0, 128], sizes = [8, 128], strides = [1, 1]} : vector<8x256xf32> to vector<8x128xf32>
    %c0_100 = arith.constant 0 : index
    %c256_101 = arith.constant 256 : index
    %210 = vector.load %arg13[%c0_100, %c256_101] : memref<64x384xf32, #tpu.memory_space<vmem>>, vector<8x128xf32>
    %211 = vector.extract_strided_slice %199 {offsets = [0, 256], sizes = [8, 128], strides = [1, 1]} : vector<8x384xf32> to vector<8x128xf32>
    %212 = arith.addf %211, %196 : vector<8x128xf32>
    %213 = arith.mulf %208, %212 : vector<8x128xf32>
    %214 = arith.addf %210, %213 : vector<8x128xf32>
    %215 = math.tanh %214 : vector<8x128xf32>
    %216 = arith.subf %197, %215 : vector<8x128xf32>
    %217 = arith.mulf %209, %216 : vector<8x128xf32>
    %218 = arith.addf %215, %217 : vector<8x128xf32>
    %c0_102 = arith.constant 0 : index
    %c0_103 = arith.constant 0 : index
    %219 = vector.load %arg7[%c0_102, %c0_103] : memref<128x384xf32, #tpu.memory_space<vmem>>, vector<128x384xf32>
    %cst_104 = arith.constant dense<0.000000e+00> : vector<8x384xf32>
    %220 = tpu.matmul %218, %219, %cst_104 {dimension_numbers = #tpu.dot_dimension_numbers<[1], [0], [0], [1], [0, 0, 1, 1], [], []>} : vector<8x128xf32>, vector<128x384xf32>, vector<8x384xf32> -> vector<8x384xf32>
    %c8_105 = arith.constant 8 : index
    %c0_106 = arith.constant 0 : index
    %221 = vector.load %arg13[%c8_105, %c0_106] : memref<64x384xf32, #tpu.memory_space<vmem>>, vector<8x256xf32>
    %222 = vector.extract_strided_slice %220 {offsets = [0, 0], sizes = [8, 256], strides = [1, 1]} : vector<8x384xf32> to vector<8x256xf32>
    %223 = arith.addf %221, %222 : vector<8x256xf32>
    %224 = arith.negf %223 : vector<8x256xf32>
    %225 = math.exp %224 : vector<8x256xf32>
    %cst_107 = arith.constant 1.000000e+00 : f32
    %226 = vector.broadcast %cst_107 : f32 to vector<8x256xf32>
    %227 = arith.addf %226, %225 : vector<8x256xf32>
    %228 = arith.divf %226, %227 : vector<8x256xf32>
    %229 = vector.extract_strided_slice %228 {offsets = [0, 0], sizes = [8, 128], strides = [1, 1]} : vector<8x256xf32> to vector<8x128xf32>
    %230 = vector.extract_strided_slice %228 {offsets = [0, 128], sizes = [8, 128], strides = [1, 1]} : vector<8x256xf32> to vector<8x128xf32>
    %c8_108 = arith.constant 8 : index
    %c256_109 = arith.constant 256 : index
    %231 = vector.load %arg13[%c8_108, %c256_109] : memref<64x384xf32, #tpu.memory_space<vmem>>, vector<8x128xf32>
    %232 = vector.extract_strided_slice %220 {offsets = [0, 256], sizes = [8, 128], strides = [1, 1]} : vector<8x384xf32> to vector<8x128xf32>
    %233 = arith.addf %232, %196 : vector<8x128xf32>
    %234 = arith.mulf %229, %233 : vector<8x128xf32>
    %235 = arith.addf %231, %234 : vector<8x128xf32>
    %236 = math.tanh %235 : vector<8x128xf32>
    %237 = arith.subf %218, %236 : vector<8x128xf32>
    %238 = arith.mulf %230, %237 : vector<8x128xf32>
    %239 = arith.addf %236, %238 : vector<8x128xf32>
    %c0_110 = arith.constant 0 : index
    %c0_111 = arith.constant 0 : index
    %240 = vector.load %arg7[%c0_110, %c0_111] : memref<128x384xf32, #tpu.memory_space<vmem>>, vector<128x384xf32>
    %cst_112 = arith.constant dense<0.000000e+00> : vector<8x384xf32>
    %241 = tpu.matmul %239, %240, %cst_112 {dimension_numbers = #tpu.dot_dimension_numbers<[1], [0], [0], [1], [0, 0, 1, 1], [], []>} : vector<8x128xf32>, vector<128x384xf32>, vector<8x384xf32> -> vector<8x384xf32>
    %c16_113 = arith.constant 16 : index
    %c0_114 = arith.constant 0 : index
    %242 = vector.load %arg13[%c16_113, %c0_114] : memref<64x384xf32, #tpu.memory_space<vmem>>, vector<8x256xf32>
    %243 = vector.extract_strided_slice %241 {offsets = [0, 0], sizes = [8, 256], strides = [1, 1]} : vector<8x384xf32> to vector<8x256xf32>
    %244 = arith.addf %242, %243 : vector<8x256xf32>
    %245 = arith.negf %244 : vector<8x256xf32>
    %246 = math.exp %245 : vector<8x256xf32>
    %cst_115 = arith.constant 1.000000e+00 : f32
    %247 = vector.broadcast %cst_115 : f32 to vector<8x256xf32>
    %248 = arith.addf %247, %246 : vector<8x256xf32>
    %249 = arith.divf %247, %248 : vector<8x256xf32>
    %250 = vector.extract_strided_slice %249 {offsets = [0, 0], sizes = [8, 128], strides = [1, 1]} : vector<8x256xf32> to vector<8x128xf32>
    %251 = vector.extract_strided_slice %249 {offsets = [0, 128], sizes = [8, 128], strides = [1, 1]} : vector<8x256xf32> to vector<8x128xf32>
    %c16_116 = arith.constant 16 : index
    %c256_117 = arith.constant 256 : index
    %252 = vector.load %arg13[%c16_116, %c256_117] : memref<64x384xf32, #tpu.memory_space<vmem>>, vector<8x128xf32>
    %253 = vector.extract_strided_slice %241 {offsets = [0, 256], sizes = [8, 128], strides = [1, 1]} : vector<8x384xf32> to vector<8x128xf32>
    %254 = arith.addf %253, %196 : vector<8x128xf32>
    %255 = arith.mulf %250, %254 : vector<8x128xf32>
    %256 = arith.addf %252, %255 : vector<8x128xf32>
    %257 = math.tanh %256 : vector<8x128xf32>
    %258 = arith.subf %239, %257 : vector<8x128xf32>
    %259 = arith.mulf %251, %258 : vector<8x128xf32>
    %260 = arith.addf %257, %259 : vector<8x128xf32>
    %c0_118 = arith.constant 0 : index
    %c0_119 = arith.constant 0 : index
    %261 = vector.load %arg7[%c0_118, %c0_119] : memref<128x384xf32, #tpu.memory_space<vmem>>, vector<128x384xf32>
    %cst_120 = arith.constant dense<0.000000e+00> : vector<8x384xf32>
    %262 = tpu.matmul %260, %261, %cst_120 {dimension_numbers = #tpu.dot_dimension_numbers<[1], [0], [0], [1], [0, 0, 1, 1], [], []>} : vector<8x128xf32>, vector<128x384xf32>, vector<8x384xf32> -> vector<8x384xf32>
    %c24_121 = arith.constant 24 : index
    %c0_122 = arith.constant 0 : index
    %263 = vector.load %arg13[%c24_121, %c0_122] : memref<64x384xf32, #tpu.memory_space<vmem>>, vector<8x256xf32>
    %264 = vector.extract_strided_slice %262 {offsets = [0, 0], sizes = [8, 256], strides = [1, 1]} : vector<8x384xf32> to vector<8x256xf32>
    %265 = arith.addf %263, %264 : vector<8x256xf32>
    %266 = arith.negf %265 : vector<8x256xf32>
    %267 = math.exp %266 : vector<8x256xf32>
    %cst_123 = arith.constant 1.000000e+00 : f32
    %268 = vector.broadcast %cst_123 : f32 to vector<8x256xf32>
    %269 = arith.addf %268, %267 : vector<8x256xf32>
    %270 = arith.divf %268, %269 : vector<8x256xf32>
    %271 = vector.extract_strided_slice %270 {offsets = [0, 0], sizes = [8, 128], strides = [1, 1]} : vector<8x256xf32> to vector<8x128xf32>
    %272 = vector.extract_strided_slice %270 {offsets = [0, 128], sizes = [8, 128], strides = [1, 1]} : vector<8x256xf32> to vector<8x128xf32>
    %c24_124 = arith.constant 24 : index
    %c256_125 = arith.constant 256 : index
    %273 = vector.load %arg13[%c24_124, %c256_125] : memref<64x384xf32, #tpu.memory_space<vmem>>, vector<8x128xf32>
    %274 = vector.extract_strided_slice %262 {offsets = [0, 256], sizes = [8, 128], strides = [1, 1]} : vector<8x384xf32> to vector<8x128xf32>
    %275 = arith.addf %274, %196 : vector<8x128xf32>
    %276 = arith.mulf %271, %275 : vector<8x128xf32>
    %277 = arith.addf %273, %276 : vector<8x128xf32>
    %278 = math.tanh %277 : vector<8x128xf32>
    %279 = arith.subf %260, %278 : vector<8x128xf32>
    %280 = arith.mulf %272, %279 : vector<8x128xf32>
    %281 = arith.addf %278, %280 : vector<8x128xf32>
    %c0_126 = arith.constant 0 : index
    %c0_127 = arith.constant 0 : index
    %282 = vector.load %arg7[%c0_126, %c0_127] : memref<128x384xf32, #tpu.memory_space<vmem>>, vector<128x384xf32>
    %cst_128 = arith.constant dense<0.000000e+00> : vector<8x384xf32>
    %283 = tpu.matmul %281, %282, %cst_128 {dimension_numbers = #tpu.dot_dimension_numbers<[1], [0], [0], [1], [0, 0, 1, 1], [], []>} : vector<8x128xf32>, vector<128x384xf32>, vector<8x384xf32> -> vector<8x384xf32>
    %c32_129 = arith.constant 32 : index
    %c0_130 = arith.constant 0 : index
    %284 = vector.load %arg13[%c32_129, %c0_130] : memref<64x384xf32, #tpu.memory_space<vmem>>, vector<8x256xf32>
    %285 = vector.extract_strided_slice %283 {offsets = [0, 0], sizes = [8, 256], strides = [1, 1]} : vector<8x384xf32> to vector<8x256xf32>
    %286 = arith.addf %284, %285 : vector<8x256xf32>
    %287 = arith.negf %286 : vector<8x256xf32>
    %288 = math.exp %287 : vector<8x256xf32>
    %cst_131 = arith.constant 1.000000e+00 : f32
    %289 = vector.broadcast %cst_131 : f32 to vector<8x256xf32>
    %290 = arith.addf %289, %288 : vector<8x256xf32>
    %291 = arith.divf %289, %290 : vector<8x256xf32>
    %292 = vector.extract_strided_slice %291 {offsets = [0, 0], sizes = [8, 128], strides = [1, 1]} : vector<8x256xf32> to vector<8x128xf32>
    %293 = vector.extract_strided_slice %291 {offsets = [0, 128], sizes = [8, 128], strides = [1, 1]} : vector<8x256xf32> to vector<8x128xf32>
    %c32_132 = arith.constant 32 : index
    %c256_133 = arith.constant 256 : index
    %294 = vector.load %arg13[%c32_132, %c256_133] : memref<64x384xf32, #tpu.memory_space<vmem>>, vector<8x128xf32>
    %295 = vector.extract_strided_slice %283 {offsets = [0, 256], sizes = [8, 128], strides = [1, 1]} : vector<8x384xf32> to vector<8x128xf32>
    %296 = arith.addf %295, %196 : vector<8x128xf32>
    %297 = arith.mulf %292, %296 : vector<8x128xf32>
    %298 = arith.addf %294, %297 : vector<8x128xf32>
    %299 = math.tanh %298 : vector<8x128xf32>
    %300 = arith.subf %281, %299 : vector<8x128xf32>
    %301 = arith.mulf %293, %300 : vector<8x128xf32>
    %302 = arith.addf %299, %301 : vector<8x128xf32>
    %c0_134 = arith.constant 0 : index
    %c0_135 = arith.constant 0 : index
    %303 = vector.load %arg7[%c0_134, %c0_135] : memref<128x384xf32, #tpu.memory_space<vmem>>, vector<128x384xf32>
    %cst_136 = arith.constant dense<0.000000e+00> : vector<8x384xf32>
    %304 = tpu.matmul %302, %303, %cst_136 {dimension_numbers = #tpu.dot_dimension_numbers<[1], [0], [0], [1], [0, 0, 1, 1], [], []>} : vector<8x128xf32>, vector<128x384xf32>, vector<8x384xf32> -> vector<8x384xf32>
    %c40_137 = arith.constant 40 : index
    %c0_138 = arith.constant 0 : index
    %305 = vector.load %arg13[%c40_137, %c0_138] : memref<64x384xf32, #tpu.memory_space<vmem>>, vector<8x256xf32>
    %306 = vector.extract_strided_slice %304 {offsets = [0, 0], sizes = [8, 256], strides = [1, 1]} : vector<8x384xf32> to vector<8x256xf32>
    %307 = arith.addf %305, %306 : vector<8x256xf32>
    %308 = arith.negf %307 : vector<8x256xf32>
    %309 = math.exp %308 : vector<8x256xf32>
    %cst_139 = arith.constant 1.000000e+00 : f32
    %310 = vector.broadcast %cst_139 : f32 to vector<8x256xf32>
    %311 = arith.addf %310, %309 : vector<8x256xf32>
    %312 = arith.divf %310, %311 : vector<8x256xf32>
    %313 = vector.extract_strided_slice %312 {offsets = [0, 0], sizes = [8, 128], strides = [1, 1]} : vector<8x256xf32> to vector<8x128xf32>
    %314 = vector.extract_strided_slice %312 {offsets = [0, 128], sizes = [8, 128], strides = [1, 1]} : vector<8x256xf32> to vector<8x128xf32>
    %c40_140 = arith.constant 40 : index
    %c256_141 = arith.constant 256 : index
    %315 = vector.load %arg13[%c40_140, %c256_141] : memref<64x384xf32, #tpu.memory_space<vmem>>, vector<8x128xf32>
    %316 = vector.extract_strided_slice %304 {offsets = [0, 256], sizes = [8, 128], strides = [1, 1]} : vector<8x384xf32> to vector<8x128xf32>
    %317 = arith.addf %316, %196 : vector<8x128xf32>
    %318 = arith.mulf %313, %317 : vector<8x128xf32>
    %319 = arith.addf %315, %318 : vector<8x128xf32>
    %320 = math.tanh %319 : vector<8x128xf32>
    %321 = arith.subf %302, %320 : vector<8x128xf32>
    %322 = arith.mulf %314, %321 : vector<8x128xf32>
    %323 = arith.addf %320, %322 : vector<8x128xf32>
    %c0_142 = arith.constant 0 : index
    %c0_143 = arith.constant 0 : index
    %324 = vector.load %arg7[%c0_142, %c0_143] : memref<128x384xf32, #tpu.memory_space<vmem>>, vector<128x384xf32>
    %cst_144 = arith.constant dense<0.000000e+00> : vector<8x384xf32>
    %325 = tpu.matmul %323, %324, %cst_144 {dimension_numbers = #tpu.dot_dimension_numbers<[1], [0], [0], [1], [0, 0, 1, 1], [], []>} : vector<8x128xf32>, vector<128x384xf32>, vector<8x384xf32> -> vector<8x384xf32>
    %c48_145 = arith.constant 48 : index
    %c0_146 = arith.constant 0 : index
    %326 = vector.load %arg13[%c48_145, %c0_146] : memref<64x384xf32, #tpu.memory_space<vmem>>, vector<8x256xf32>
    %327 = vector.extract_strided_slice %325 {offsets = [0, 0], sizes = [8, 256], strides = [1, 1]} : vector<8x384xf32> to vector<8x256xf32>
    %328 = arith.addf %326, %327 : vector<8x256xf32>
    %329 = arith.negf %328 : vector<8x256xf32>
    %330 = math.exp %329 : vector<8x256xf32>
    %cst_147 = arith.constant 1.000000e+00 : f32
    %331 = vector.broadcast %cst_147 : f32 to vector<8x256xf32>
    %332 = arith.addf %331, %330 : vector<8x256xf32>
    %333 = arith.divf %331, %332 : vector<8x256xf32>
    %334 = vector.extract_strided_slice %333 {offsets = [0, 0], sizes = [8, 128], strides = [1, 1]} : vector<8x256xf32> to vector<8x128xf32>
    %335 = vector.extract_strided_slice %333 {offsets = [0, 128], sizes = [8, 128], strides = [1, 1]} : vector<8x256xf32> to vector<8x128xf32>
    %c48_148 = arith.constant 48 : index
    %c256_149 = arith.constant 256 : index
    %336 = vector.load %arg13[%c48_148, %c256_149] : memref<64x384xf32, #tpu.memory_space<vmem>>, vector<8x128xf32>
    %337 = vector.extract_strided_slice %325 {offsets = [0, 256], sizes = [8, 128], strides = [1, 1]} : vector<8x384xf32> to vector<8x128xf32>
    %338 = arith.addf %337, %196 : vector<8x128xf32>
    %339 = arith.mulf %334, %338 : vector<8x128xf32>
    %340 = arith.addf %336, %339 : vector<8x128xf32>
    %341 = math.tanh %340 : vector<8x128xf32>
    %342 = arith.subf %323, %341 : vector<8x128xf32>
    %343 = arith.mulf %335, %342 : vector<8x128xf32>
    %344 = arith.addf %341, %343 : vector<8x128xf32>
    %c0_150 = arith.constant 0 : index
    %c0_151 = arith.constant 0 : index
    %345 = vector.load %arg7[%c0_150, %c0_151] : memref<128x384xf32, #tpu.memory_space<vmem>>, vector<128x384xf32>
    %cst_152 = arith.constant dense<0.000000e+00> : vector<8x384xf32>
    %346 = tpu.matmul %344, %345, %cst_152 {dimension_numbers = #tpu.dot_dimension_numbers<[1], [0], [0], [1], [0, 0, 1, 1], [], []>} : vector<8x128xf32>, vector<128x384xf32>, vector<8x384xf32> -> vector<8x384xf32>
    %c56_153 = arith.constant 56 : index
    %c0_154 = arith.constant 0 : index
    %347 = vector.load %arg13[%c56_153, %c0_154] : memref<64x384xf32, #tpu.memory_space<vmem>>, vector<8x256xf32>
    %348 = vector.extract_strided_slice %346 {offsets = [0, 0], sizes = [8, 256], strides = [1, 1]} : vector<8x384xf32> to vector<8x256xf32>
    %349 = arith.addf %347, %348 : vector<8x256xf32>
    %350 = arith.negf %349 : vector<8x256xf32>
    %351 = math.exp %350 : vector<8x256xf32>
    %cst_155 = arith.constant 1.000000e+00 : f32
    %352 = vector.broadcast %cst_155 : f32 to vector<8x256xf32>
    %353 = arith.addf %352, %351 : vector<8x256xf32>
    %354 = arith.divf %352, %353 : vector<8x256xf32>
    %355 = vector.extract_strided_slice %354 {offsets = [0, 0], sizes = [8, 128], strides = [1, 1]} : vector<8x256xf32> to vector<8x128xf32>
    %356 = vector.extract_strided_slice %354 {offsets = [0, 128], sizes = [8, 128], strides = [1, 1]} : vector<8x256xf32> to vector<8x128xf32>
    %c56_156 = arith.constant 56 : index
    %c256_157 = arith.constant 256 : index
    %357 = vector.load %arg13[%c56_156, %c256_157] : memref<64x384xf32, #tpu.memory_space<vmem>>, vector<8x128xf32>
    %358 = vector.extract_strided_slice %346 {offsets = [0, 256], sizes = [8, 128], strides = [1, 1]} : vector<8x384xf32> to vector<8x128xf32>
    %359 = arith.addf %358, %196 : vector<8x128xf32>
    %360 = arith.mulf %355, %359 : vector<8x128xf32>
    %361 = arith.addf %357, %360 : vector<8x128xf32>
    %362 = math.tanh %361 : vector<8x128xf32>
    %363 = arith.subf %344, %362 : vector<8x128xf32>
    %364 = arith.mulf %356, %363 : vector<8x128xf32>
    %365 = arith.addf %362, %364 : vector<8x128xf32>
    %c0_158 = arith.constant 0 : index
    %c0_159 = arith.constant 0 : index
    %366 = vector.load %arg10[%c0_158, %c0_159] : memref<128x4xf32, #tpu.memory_space<vmem>>, vector<128x4xf32>
    %cst_160 = arith.constant dense<0.000000e+00> : vector<8x4xf32>
    %367 = tpu.matmul %365, %366, %cst_160 {dimension_numbers = #tpu.dot_dimension_numbers<[1], [0], [0], [1], [0, 0, 1, 1], [], []>} : vector<8x128xf32>, vector<128x4xf32>, vector<8x4xf32> -> vector<8x4xf32>
    %c0_161 = arith.constant 0 : index
    %c0_162 = arith.constant 0 : index
    %368 = vector.load %arg11[%c0_161, %c0_162] : memref<1x4xf32, #tpu.memory_space<vmem>>, vector<1x4xf32>
    %369 = vector.broadcast %368 : vector<1x4xf32> to vector<8x4xf32>
    %370 = arith.addf %367, %369 : vector<8x4xf32>
    %c0_163 = arith.constant 0 : index
    %c0_164 = arith.constant 0 : index
    %371 = vector.load %arg12[%c0_163, %c0_164] : memref<8x4xf32, #tpu.memory_space<vmem>>, vector<8x4xf32>
    tpu.vector_store %arg12[%c0_163, %c0_164], %370 {strides = array<i32>} : memref<8x4xf32, #tpu.memory_space<vmem>>, vector<8x4xf32>,
    return
  }
  func.func @transform_0(%arg0: i32) -> (i32, i32) {
    %c0_i32 = arith.constant 0 : i32
    %c0_i32_0 = arith.constant 0 : i32
    %c0_i32_1 = arith.constant 0 : i32
    return %c0_i32, %c0_i32_0 : i32, i32
  }
  func.func @transform_1(%arg0: i32) -> (i32, i32) {
    %c0_i32 = arith.constant 0 : i32
    %c0_i32_0 = arith.constant 0 : i32
    %c0_i32_1 = arith.constant 0 : i32
    return %c0_i32, %c0_i32_0 : i32, i32
  }
  func.func @transform_2(%arg0: i32) -> (i32, i32) {
    %c0_i32 = arith.constant 0 : i32
    %c0_i32_0 = arith.constant 0 : i32
    %c0_i32_1 = arith.constant 0 : i32
    return %c0_i32, %c0_i32_0 : i32, i32
  }
  func.func @transform_3(%arg0: i32) -> (i32, i32) {
    %c0_i32 = arith.constant 0 : i32
    %c0_i32_0 = arith.constant 0 : i32
    %c0_i32_1 = arith.constant 0 : i32
    return %c0_i32, %c0_i32_0 : i32, i32
  }
  func.func @transform_4(%arg0: i32) -> (i32, i32) {
    %c0_i32 = arith.constant 0 : i32
    %c0_i32_0 = arith.constant 0 : i32
    %c0_i32_1 = arith.constant 0 : i32
    return %c0_i32, %c0_i32_0 : i32, i32
  }
  func.func @transform_5(%arg0: i32) -> (i32, i32) {
    %c0_i32 = arith.constant 0 : i32
    %c0_i32_0 = arith.constant 0 : i32
    %c0_i32_1 = arith.constant 0 : i32
    return %c0_i32, %c0_i32_0 : i32, i32
  }
  func.func @transform_6(%arg0: i32) -> (i32, i32) {
    %c0_i32 = arith.constant 0 : i32
    %c0_i32_0 = arith.constant 0 : i32
    %c0_i32_1 = arith.constant 0 : i32
    return %c0_i32, %c0_i32_0 : i32, i32
  }
  func.func @transform_7(%arg0: i32) -> (i32, i32) {
    %c0_i32 = arith.constant 0 : i32
    %c0_i32_0 = arith.constant 0 : i32
    %c0_i32_1 = arith.constant 0 : i32
    return %c0_i32, %c0_i32_0 : i32, i32
  }
  func.func @transform_8(%arg0: i32) -> (i32, i32) {
    %c0_i32 = arith.constant 0 : i32
    %c0_i32_0 = arith.constant 0 : i32
    %c0_i32_1 = arith.constant 0 : i32
    return %c0_i32, %c0_i32_0 : i32, i32
  }
  func.func @transform_9(%arg0: i32) -> (i32, i32) {
    %c0_i32 = arith.constant 0 : i32
    %c0_i32_0 = arith.constant 0 : i32
    %c0_i32_1 = arith.constant 0 : i32
    return %c0_i32, %c0_i32_0 : i32, i32
  }
  func.func @transform_10(%arg0: i32) -> (i32, i32) {
    %c0_i32 = arith.constant 0 : i32
    %c0_i32_0 = arith.constant 0 : i32
    %c0_i32_1 = arith.constant 0 : i32
    return %c0_i32, %c0_i32_0 : i32, i32
  }
  func.func @transform_11(%arg0: i32) -> (i32, i32) {
    %c0_i32 = arith.constant 0 : i32
    %c0_i32_0 = arith.constant 0 : i32
    %c0_i32_1 = arith.constant 0 : i32
    return %c0_i32, %c0_i32_0 : i32, i32
  }
}

</mosaic_0001>

<bundles_post_ra>
// kernel: gru_regressor_forward.1
= control target key start
LH: loop header
LB: loop body
LE: loop exit
PB: predicated region body
PF: predicated region fallthrough
CT: control target
= control target key end

     0   :  { %16 = vsyncpa [#allocation5], 0  ;;  %s7402_s0 = inlined_call_operand.vmem [shape: f32[64,16], index: 0, kind: input, shape index: {}]   ;;  %s7403_s1 = inlined_call_operand.vmem [shape: f32[16,384], index: 1, kind: input, shape index: {}]   ;;  %s7404_s2 = inlined_call_operand.hbm [shape: f32[128,384], index: 2, kind: input, shape index: {}]   ;;  %s7405_s3 = inlined_call_operand.vmem [shape: f32[1,384], index: 3, kind: input, shape index: {}]   ;;  %s7406_s4 = inlined_call_operand.vmem [shape: f32[1,128], index: 4, kind: input, shape index: {}]   ;;  %s7407_s5 = inlined_call_operand.hbm [shape: f32[128,384], index: 5, kind: input, shape index: {}]   ;;  %s7408_s6 = inlined_call_operand.hbm [shape: f32[128,384], index: 6, kind: input, shape index: {}]   ;;  %s7409_s7 = inlined_call_operand.vmem [shape: f32[1,384], index: 7, kind: input, shape index: {}]   ;;  %s7410_s8 = inlined_call_operand.vmem [shape: f32[1,128], index: 8, kind: input, shape index: {}]   ;;  %s7411_s9 = inlined_call_operand.vmem [shape: f32[128,4], index: 9, kind: input, shape index: {}]   ;;  %s7412_s10 = inlined_call_operand.vmem [shape: f32[1,4], index: 10, kind: input, shape index: {}]   ;;  %s7413_s11 = inlined_call_operand.vmem [shape: f32[8,4], index: 11, kind: output, shape index: {}]  }
   0x1   :  { %17 = vsyncpa [#allocation7], 0  ;;  %s6211_s17 = smov [#allocation6]   ;;  %s6212_s19 = smov [#allocation4]  }
   0x2   :  { %s43_s18 = sshll.u32 %s6211_s17, 4  ;;  %s27_s20 = sshll.u32 %s6212_s19, 4  ;;  %s44_s18 = int_to_ptr.vmem [resolvable:$true] %s43_s18  ;;  %s6279_s20 = int_to_ptr.vmem [resolvable:$true] %s27_s20 }
   0x3   :  { %s6141_s23 = scalar_lea.hbm %s7407_s5, 6144 }
   0x4   :  { %p6142_p0 = scmp.ne.s32.totalorder %s7407_s5, %s6141_s23  ;;  %p6145_p1 = scmp.lt.u32.totalorder %s6141_s23, %s7407_s5 }
   0x6   :  { %p6147_p2 = pnand %p6145_p1, %p6142_p0 }
   0x8   :  { %6150 = shalt.err (!%p6147_p2)
}
   0x9   :  { %s6151_s28 = scalar_lea.vmem %s44_s18, 6144  ;;  %p6156_p4 = scmp.lt.s32.totalorder %s44_s18, %s44_s18 }
   0xa   :  { %p6152_p3 = scmp.ne.s32.totalorder %s44_s18, %s6151_s28  ;;  %p6157_p5 = scmp.lt.s32.totalorder %s6151_s28, %s6151_s28 }
   0xc   :  { %p6158_p6 = por %p6157_p5, %p6156_p4 }
   0xe   :  { %p6159_p7 = pnand %p6158_p6, %p6152_p3 }
  0x10   :  { %6162 = shalt.err (!%p6159_p7)
}
  0x11   :  { %s6213_s29 = smov 384   ;;  %s6214_s30 = smov 24  }
  0x12   :  { %49 = dma.hbm_to_vmem [thread:$0]  %s7407_s5, 6144, %s44_s18, [#allocation7], %s6213_s29, %s6213_s29, %s6214_s30  }
  0x13   :  { %s6163_s16 = scalar_lea.hbm %s7404_s2, 6144 }
  0x14   :  { %p6164_p8 = scmp.ne.s32.totalorder %s7404_s2, %s6163_s16  ;;  %p6167_p9 = scmp.lt.u32.totalorder %s6163_s16, %s7404_s2 }
  0x16   :  { %p6169_p10 = pnand %p6167_p9, %p6164_p8 }
  0x18   :  { %6172 = shalt.err (!%p6169_p10)
}
  0x19   :  { %s6173_s23 = scalar_lea.vmem %s6279_s20, 6144  ;;  %p6178_p12 = scmp.lt.s32.totalorder %s6279_s20, %s6279_s20 }
  0x1a   :  { %p6174_p11 = scmp.ne.s32.totalorder %s6279_s20, %s6173_s23  ;;  %p6179_p13 = scmp.lt.s32.totalorder %s6173_s23, %s6173_s23 }
  0x1c   :  { %p6180_p0 = por %p6179_p13, %p6178_p12 }
  0x1e   :  { %p6181_p1 = pnand %p6180_p0, %p6174_p11 }
  0x20   :  { %6184 = shalt.err (!%p6181_p1)
}
  0x21   :  { %33 = dma.hbm_to_vmem [thread:$0]  %s7404_s2, 6144, %s6279_s20, [#allocation5], %s6213_s29, %s6213_s29, %s6214_s30  }
  0x22   :  { %s6215_s24 = smov [#allocation8]   ;;  %s6185_s28 = scalar_lea.hbm %s7408_s6, 6144 }
  0x23   :  { %s55_s25 = sshll.u32 %s6215_s24, 4  ;;  %p6186_p2 = scmp.ne.s32.totalorder %s7408_s6, %s6185_s28  ;;  %s56_s25 = int_to_ptr.vmem [resolvable:$true] %s55_s25 }
  0x24   :  { %p6189_p3 = scmp.lt.u32.totalorder %s6185_s28, %s7408_s6 }
  0x26   :  { %p6191_p4 = pnand %p6189_p3, %p6186_p2 }
  0x28   :  { %6194 = shalt.err (!%p6191_p4)
}
  0x29   :  { %s6195_s16 = scalar_lea.vmem %s56_s25, 6144  ;;  %p6200_p6 = scmp.lt.s32.totalorder %s56_s25, %s56_s25 }
  0x2a   :  { %p6196_p5 = scmp.ne.s32.totalorder %s56_s25, %s6195_s16  ;;  %p6201_p7 = scmp.lt.s32.totalorder %s6195_s16, %s6195_s16 }
  0x2c   :  { %p6202_p8 = por %p6201_p7, %p6200_p6 }
  0x2e   :  { %p6203_p9 = pnand %p6202_p8, %p6196_p5 }
  0x30   :  { %6206 = shalt.err (!%p6203_p9)
}
  0x31   :  { %61 = dma.hbm_to_vmem [thread:$0]  %s7408_s6, 6144, %s56_s25, [#allocation7], %s6213_s29, %s6213_s29, %s6214_s30  }
  0x32   :  { %6207 = dma.done.wait [#allocation5], 6144  }
  0x33   :  { %6208 = vsyncadd [#allocation5], 4294961152 }
  0x34   :  { %6209 = dma.done.wait [#allocation7], 12288  }
  0x35   :  { %6210 = vsyncadd [#allocation7], 4294955008  ;;  %v6216_v0 = vmov 0.0   ;;  %v88_v1 = vld [vmem:[%s7403_s1 + $0x8] sm:$0xff]  ;;  %v91_v2 = vld [vmem:[%s7403_s1 + $0x20] sm:$0xff]  ;;  %vm110_vm0 = vcmask 130048  }
  0x36   :  { %199 = vmatprep.mubr.f32.mxu0 %v6216_v0  ;;  %v87_v3 = vld [vmem:[%s7403_s1] sm:$0xff]  ;;  %v4916_v4 = vpack.c.bf16 %v91_v2, %v88_v1  ;;  %v90_v5 = vld [vmem:[%s7403_s1 + $0x18] sm:$0xff]  ;;  %v385_v7 = vld [vmem:[#allocation4 + $0x8] sm:$0xff]  ;;  %v6217_v48 = vmov 0.0|0.0   ;;  %vm6218_vm1 = vmmov 0   ;;  %vm3879_vm2 = vcmask 31744  }
  0x37   :  { %v79_v6 = vld [vmem:[%s7402_s0] sm:$0xff]  ;;  %v4918_v8 = vpack.c.bf16 %v90_v5, %v87_v3  ;;  %v387_v11 = vld [vmem:[#allocation4 + $0x18] sm:$0xff]  ;;  %v394_v14 = vld [vmem:[#allocation4 + $0x50] sm:$0xff] }
  0x38   :  { %v388_v9 = vld [vmem:[#allocation4 + $0x20] sm:$0xff]  ;;  %4265 = vmatprep.mubr.msk.f32.mxu1 %vm110_vm0, %v79_v6  ;;  %4917 = vmatprep.subr.bf16.mxu0 %v4916_v4  ;;  %v391_v13 = vld [vmem:[#allocation4 + $0x38] sm:$0xff]  ;;  %v390_v17 = vld [vmem:[#allocation4 + $0x30] sm:$0xff] }
  0x39   :  { %v384_v10 = vld [vmem:[#allocation4] sm:$0xff]  ;;  %v6348_v12 = vpack.c.bf16 %v388_v9, %v385_v7  ;;  %4919 = vmatpush1.bf16.msra.mxu0 %v4918_v8  ;;  %v6353_v16 = vpack.c.bf16 %v394_v14, %v391_v13  ;;  %v393_v18 = vld [vmem:[#allocation4 + $0x48] sm:$0xff]  ;;  %v399_v25 = vld [vmem:[#allocation4 + $0x78] sm:$0xff] }
  0x3a   :  { %v6350_v15 = vpack.c.bf16 %v387_v11, %v384_v10  ;;  %v397_v19 = vld [vmem:[#allocation4 + $0x68] sm:$0xff]  ;;  %v400_v20 = vld [vmem:[#allocation4 + $0x80] sm:$0xff]  ;;  %v6361_v22 = vpack.c.bf16 %v393_v18, %v390_v17  ;;  %v403_v26 = vld [vmem:[#allocation4 + $0x98] sm:$0xff] }
  0x3b   :  { %4925 = vmatprep.subr.bf16.mxu0 %v6348_v12  ;;  %v80_v21 = vld [vmem:[%s7402_s0 + $0x8] sm:$0xff]  ;;  %v6364_v23 = vpack.c.bf16 %v400_v20, %v397_v19  ;;  %v396_v24 = vld [vmem:[#allocation4 + $0x60] sm:$0xff]  ;;  %v406_v27 = vld [vmem:[#allocation4 + $0xb0] sm:$0xff] }
  0x3c   :  { %3887 = vmatmul.mubr.msk.f32.vlgmr.msra.gmra.mrb[0].mxu0 %vm110_vm0, %v79_v6  ;;  %v89_v28 = vld [vmem:[%s7403_s1 + $0x10] sm:$0xff]  ;;  %v92_v29 = vld [vmem:[%s7403_s1 + $0x28] sm:$0xff]  ;;  %v6378_v31 = vpack.c.bf16 %v399_v25, %v396_v24  ;;  %v6381_v33 = vpack.c.bf16 %v406_v27, %v403_v26  ;;  %v412_v38 = vld [vmem:[#allocation4 + $0xe0] sm:$0xff] }
  0x3d   :  { %4927 = vmatpush1.bf16.msra.mxu0 %v6350_v15  ;;  %205 = vmatprep.mubr.f32.mxu0 %v6216_v0  ;;  %v81_v30 = vld [vmem:[%s7402_s0 + $0x10] sm:$0xff]  ;;  %v4920_v32 = vpack.c.bf16 %v92_v29, %v89_v28  ;;  %v405_v35 = vld [vmem:[#allocation4 + $0xa8] sm:$0xff]  ;;  %v82_v41 = vld [vmem:[%s7402_s0 + $0x18] sm:$0xff] }
  0x3e   :  { %4929 = vmatprep.subr.bf16.mxu0 %v6353_v16  ;;  %v402_v34 = vld [vmem:[#allocation4 + $0x90] sm:$0xff]  ;;  %v409_v37 = vld [vmem:[#allocation4 + $0xc8] sm:$0xff]  ;;  %v392_v43 = vld [vmem:[#allocation4 + $0x40] sm:$0xff] }
  0x3f   :  { %v386_v36 = vld [vmem:[#allocation4 + $0x10] sm:$0xff]  ;;  %4921 = vmatprep.subr.bf16.mxu1 %v4920_v32  ;;  %v389_v39 = vld [vmem:[#allocation4 + $0x28] sm:$0xff]  ;;  %v6391_v42 = vpack.c.bf16 %v405_v35, %v402_v34  ;;  %v395_v44 = vld [vmem:[#allocation4 + $0x58] sm:$0xff]  ;;  %v6394_v45 = vpack.c.bf16 %v412_v38, %v409_v37  ;;  %v95_v35 = vlaneseq }
  0x40   :  { %3888 = vmatmul.mubr.msk.f32.gmra.mrb[2].mxu0 %vm110_vm0, %v80_v21  ;;  %4923 = vmatpush3.bf16.msra.mxu1 %v4920_v32  ;;  %v6384_v40 = vpack.c.bf16 %v389_v39, %v386_v36  ;;  %v408_v46 = vld [vmem:[#allocation4 + $0xc0] sm:$0xff]  ;;  %v411_v47 = vld [vmem:[#allocation4 + $0xd8] sm:$0xff]  ;;  %v418_v50 = vld [vmem:[#allocation4 + $0x110] sm:$0xff]  ;;  %v6400_v51 = vpack.c.bf16 %v395_v44, %v392_v43 }
  0x41   :  { %4931 = vmatpush1.bf16.msra.mxu0 %v6361_v22  ;;  %211 = vmatprep.mubr.f32.mxu0 %v6216_v0  ;;  %v415_v49 = vld [vmem:[#allocation4 + $0xf8] sm:$0xff]  ;;  %v83_v52 = vld [vmem:[%s7402_s0 + $0x20] sm:$0xff]  ;;  %v6407_v53 = vpack.c.bf16 %v411_v47, %v408_v46  ;;  %v398_v54 = vld [vmem:[#allocation4 + $0x70] sm:$0xff]  ;;  %v6519_v36 = vshrl.u32 %v95_v35, 7 }
  0x42   :  { %4933 = vmatprep.subr.bf16.mxu0 %v6364_v23  ;;  %4956 = vmatprep.subr.bf16.mxu1 %v6217_v48  ;;  %v401_v55 = vld [vmem:[#allocation4 + $0x88] sm:$0xff]  ;;  %v6410_v56 = vpack.c.bf16 %v418_v50, %v415_v49  ;;  %v414_v57 = vld [vmem:[#allocation4 + $0xf0] sm:$0xff]  ;;  %v424_v60 = vld [vmem:[#allocation4 + $0x140] sm:$0xff] }
  0x43   :  { %4266 = vmatmul.mubr.msk.f32.vlgmr.msra.gmra.mrb[0].mxu1 %vm110_vm0, %v80_v21  ;;  %v417_v58 = vld [vmem:[#allocation4 + $0x108] sm:$0xff]  ;;  %v6416_v61 = vpack.c.bf16 %v401_v55, %v398_v54  ;;  %v404_v1 = vld [vmem:[#allocation4 + $0xa0] sm:$0xff]  ;;  %v407_v2 = vld [vmem:[#allocation4 + $0xb8] sm:$0xff]  ;;  %v105_v37 = vsub.s32 2, %v6519_v36 }
  0x44   :  { %3889 = vmatmul.mubr.msk.f32.gmra.mrb[4].mxu0 %vm110_vm0, %v81_v30  ;;  %4958 = vmatpush3.bf16.msra.mxu1 %v6384_v40  ;;  %v421_v59 = vld [vmem:[#allocation4 + $0x128] sm:$0xff]  ;;  %v6423_v63 = vpack.c.bf16 %v417_v58, %v414_v57  ;;  %v420_v4 = vld [vmem:[#allocation4 + $0x120] sm:$0xff]  ;;  %v423_v5 = vld [vmem:[#allocation4 + $0x138] sm:$0xff]  ;;  %v6432_v8 = vpack.c.bf16 %v407_v2, %v404_v1 }
  0x45   :  { %4935 = vmatpush1.bf16.msra.mxu0 %v6378_v31  ;;  %217 = vmatprep.mubr.f32.mxu0 %v6216_v0  ;;  %v84_v62 = vld [vmem:[%s7402_s0 + $0x28] sm:$0xff]  ;;  %v6426_v3 = vpack.c.bf16 %v424_v60, %v421_v59  ;;  %v427_v6 = vld [vmem:[#allocation4 + $0x158] sm:$0xff]  ;;  %v430_v7 = vld [vmem:[#allocation4 + $0x170] sm:$0xff]  ;;  %v6439_v10 = vpack.c.bf16 %v423_v5, %v420_v4  ;;  %v101_v5 = vsub.s32 1, %v6519_v36 }
  0x46   :  { %4937 = vmatprep.subr.bf16.mxu0 %v6381_v33  ;;  %4959 = vmatprep.subr.bf16.mxu1 %v6217_v48  ;;  %v85_v9 = vld [vmem:[%s7402_s0 + $0x30] sm:$0xff]  ;;  %v413_v13 = vld [vmem:[#allocation4 + $0xe8] sm:$0xff]  ;;  %v6442_v14 = vpack.c.bf16 %v430_v7, %v427_v6  ;;  %v86_v20 = vld [vmem:[%s7402_s0 + $0x38] sm:$0xff] }
  0x47   :  { %4268 = vmatprep.mubr.msk.f32.mxu1 %vm110_vm0, %v81_v30  ;;  %v410_v11 = vld [vmem:[#allocation4 + $0xd0] sm:$0xff]  ;;  %v429_v18 = vld [vmem:[#allocation4 + $0x168] sm:$0xff]  ;;  %v416_v24 = vld [vmem:[#allocation4 + $0x100] sm:$0xff] }
  0x48   :  { %3890 = vmatmul.mubr.msk.f32.gmra.mrb[6].mxu0 %vm110_vm0, %v82_v41  ;;  %4961 = vmatpush3.bf16.msra.mxu1 %v6400_v51  ;;  %v426_v17 = vld [vmem:[#allocation4 + $0x150] sm:$0xff]  ;;  %v6448_v19 = vpack.c.bf16 %v413_v13, %v410_v11  ;;  %v419_v25 = vld [vmem:[#allocation4 + $0x118] sm:$0xff]  ;;  %v425_v28 = vld [vmem:[#allocation4 + $0x148] sm:$0xff] }
  0x49   :  { %4939 = vmatpush1.bf16.msra.mxu0 %v6391_v42  ;;  %223 = vmatprep.mubr.f32.mxu0 %v6216_v0  ;;  %v6455_v21 = vpack.c.bf16 %v429_v18, %v426_v17  ;;  %v6462_v26 = vpack.c.bf16 %v419_v25, %v416_v24  ;;  %v422_v27 = vld [vmem:[#allocation4 + $0x130] sm:$0xff]  ;;  %v428_v30 = vld [vmem:[#allocation4 + $0x160] sm:$0xff]  ;;  %v431_v32 = vld [vmem:[#allocation4 + $0x178] sm:$0xff] }
  0x4a   :  { %4941 = vmatprep.subr.bf16.mxu0 %v6394_v45  ;;  %4962 = vmatprep.subr.bf16.mxu1 %v6217_v48  ;;  %v6472_v29 = vpack.c.bf16 %v425_v28, %v422_v27  ;;  %v6481_v34 = vpack.c.bf16 %v431_v32, %v428_v30  ;;  %v93_v38 = vld [vmem:[%s7405_s3] sm:$0x7] }
  0x4b   :  { %4269 = vmatmul.mubr.msk.f32.gmra.mrb[2].mxu1 %vm110_vm0, %v82_v41  ;;  %v106_v39 = vrot.slane %v93_v38, %v105_v37  ;;  %v6550_v11 = vrot.slane %v93_v38, %v101_v5  ;;  %v6556_v27 = vld [vmem:[%s7406_s4] ss:$0 sm:$0xff] }
  0x4c   :  { %3891 = vmatmul.mubr.msk.f32.gmra.mrb[8].mxu0 %vm110_vm0, %v83_v52  ;;  %4964 = vmatpush3.bf16.msra.mxu1 %v6416_v61 }
  0x4d   :  { %4943 = vmatpush1.bf16.msra.mxu0 %v6407_v53  ;;  %229 = vmatprep.mubr.f32.mxu0 %v6216_v0 }
  0x4e   :  { %4945 = vmatprep.subr.bf16.mxu0 %v6410_v56  ;;  %4965 = vmatprep.subr.bf16.mxu1 %v6217_v48 }
  0x4f   :  { %4271 = vmatprep.mubr.msk.f32.mxu1 %vm110_vm0, %v83_v52  ;;  %v97_v52 = vsub.s32 0, %v6519_v36 }
  0x50   :  { %3892 = vmatmul.mubr.msk.f32.gmra.mrb[10].mxu0 %vm110_vm0, %v84_v62  ;;  %4967 = vmatpush3.bf16.msra.mxu1 %v6432_v8 }
  0x51   :  { %4947 = vmatpush1.bf16.msra.mxu0 %v6423_v63  ;;  %235 = vmatprep.mubr.f32.mxu0 %v6216_v0  ;;  %v6538_v58 = vrot.slane %v93_v38, %v97_v52 }
  0x52   :  { %4949 = vmatprep.subr.bf16.mxu0 %v6426_v3  ;;  %4968 = vmatprep.subr.bf16.mxu1 %v6217_v48 }
  0x53   :  { %4272 = vmatmul.mubr.msk.f32.gmra.mrb[4].mxu1 %vm110_vm0, %v84_v62 }
  0x54   :  { %3893 = vmatmul.mubr.msk.f32.gmra.mrb[12].mxu0 %vm110_vm0, %v85_v9  ;;  %4970 = vmatpush3.bf16.msra.mxu1 %v6448_v19 }
  0x55   :  { %4951 = vmatpush1.bf16.msra.mxu0 %v6439_v10  ;;  %241 = vmatprep.mubr.f32.mxu0 %v6216_v0 }
  0x56   :  { %4953 = vmatprep.subr.bf16.mxu0 %v6442_v14  ;;  %4971 = vmatprep.subr.bf16.mxu1 %v6217_v48 }
  0x57   :  { %4274 = vmatprep.mubr.msk.f32.mxu1 %vm110_vm0, %v85_v9 }
  0x58   :  { %3894 = vmatmul.mubr.msk.f32.gmra.mrb[14].mxu0 %vm110_vm0, %v86_v20  ;;  %4275 = vmatmul.mubr.msk.f32.gmra.mrb[6].mxu1 %vm110_vm0, %v86_v20 }
  0x59   :  { %4955 = vmatpush1.bf16.msra.mxu0 %v6455_v21  ;;  %496 = vmatprep.mubr.f32.mxu0 %v6216_v0 }
  0x5a   :  { %4981 = vmatprep.subr.bf16.mxu0 %v6348_v12  ;;  %4973 = vmatpush3.bf16.msra.mxu1 %v6462_v26 }
  0x5b   :  { %4974 = vmatprep.subr.bf16.mxu1 %v6217_v48  ;;  %4309 = vmatprep.mubr.msk.f32.mxu1 %vm6218_vm1, %v6216_v0 }
  0x5c   :  { %497 = vmatmul.mubr.f32.vlgmr.msra.gmra.mrb[0].mxu0 %v6216_v0 }
  0x5d   :  { %4983 = vmatpush1.bf16.msra.mxu0 %v6350_v15  ;;  %710 = vmatprep.mubr.f32.mxu0 %v6216_v0 }
  0x5e   :  { %4985 = vmatprep.subr.bf16.mxu0 %v6353_v16  ;;  %4976 = vmatpush3.bf16.msra.mxu1 %v6472_v29 }
  0x5f   :  { %4977 = vmatprep.subr.bf16.mxu1 %v6217_v48 }
  0x61   :  { %4987 = vmatpush1.bf16.msra.mxu0 %v6361_v22 }
  0x62   :  { %4989 = vmatprep.subr.bf16.mxu0 %v6364_v23  ;;  %4979 = vmatpush3.bf16.msra.mxu1 %v6481_v34 }
  0x63   :  { %5012 = vmatprep.subr.bf16.mxu1 %v6217_v48 }
  0x65   :  { %4991 = vmatpush1.bf16.msra.mxu0 %v6378_v31  ;;  %4310 = vmatmul.mubr.f32.vlgmr.msra.gmra.mrb[8].mxu1 %v6216_v0 }
  0x66   :  { %4993 = vmatprep.subr.bf16.mxu0 %v6381_v33  ;;  %5014 = vmatpush3.bf16.msra.mxu1 %v6384_v40 }
  0x67   :  { %4344 = vmatprep.mubr.msk.f32.mxu1 %vm6218_vm1, %v6216_v0  ;;  %5015 = vmatprep.subr.bf16.mxu1 %v6217_v48 }
  0x69   :  { %4995 = vmatpush1.bf16.msra.mxu0 %v6391_v42 }
  0x6a   :  { %4997 = vmatprep.subr.bf16.mxu0 %v6394_v45  ;;  %5017 = vmatpush3.bf16.msra.mxu1 %v6400_v51 }
  0x6b   :  { %5018 = vmatprep.subr.bf16.mxu1 %v6217_v48 }
  0x6d   :  { %4999 = vmatpush1.bf16.msra.mxu0 %v6407_v53 }
  0x6e   :  { %5001 = vmatprep.subr.bf16.mxu0 %v6410_v56  ;;  %5020 = vmatpush3.bf16.msra.mxu1 %v6416_v61 }
  0x6f   :  { %5021 = vmatprep.subr.bf16.mxu1 %v6217_v48 }
  0x71   :  { %5003 = vmatpush1.bf16.msra.mxu0 %v6423_v63 }
  0x72   :  { %5005 = vmatprep.subr.bf16.mxu0 %v6426_v3  ;;  %5023 = vmatpush3.bf16.msra.mxu1 %v6432_v8 }
  0x73   :  { %5024 = vmatprep.subr.bf16.mxu1 %v6217_v48 }
  0x75   :  { %5007 = vmatpush1.bf16.msra.mxu0 %v6439_v10 }
  0x76   :  { %5009 = vmatprep.subr.bf16.mxu0 %v6442_v14  ;;  %5026 = vmatpush3.bf16.msra.mxu1 %v6448_v19 }
  0x77   :  { %5027 = vmatprep.subr.bf16.mxu1 %v6217_v48 }
  0x79   :  { %5011 = vmatpush1.bf16.msra.mxu0 %v6455_v21 }
  0x7a   :  { %5037 = vmatprep.subr.bf16.mxu0 %v6348_v12  ;;  %5029 = vmatpush3.bf16.msra.mxu1 %v6462_v26 }
  0x7b   :  { %5030 = vmatprep.subr.bf16.mxu1 %v6217_v48 }
  0x7e   :  { %5032 = vmatpush3.bf16.msra.mxu1 %v6472_v29 }
  0x7f   :  { %5033 = vmatprep.subr.bf16.mxu1 %v6217_v48 }
  0x82   :  { %5035 = vmatpush3.bf16.msra.mxu1 %v6481_v34 }
  0x83   :  { %5068 = vmatprep.subr.bf16.mxu1 %v6217_v48 }
 0x116   :  { %v4267_v41 = vpop.f32.mrb[0].mxu1 }
 0x117   :  { %v6527_v43 = vadd.f32 %v4267_v41, %v106_v39  ;;  %v314_v44 = vpop.f32.mrb[1].mxu1 }
 0x118   :  { %v315_v35 = vadd.f32 %v314_v44, %v106_v39 }
 0x11e   :  { %v4270_v46 = vpop.f32.mrb[2].mxu1 }
 0x11f   :  { %v6529_v47 = vadd.f32 %v4270_v46, %v106_v39  ;;  %v324_v49 = vpop.f32.mrb[3].mxu1 }
 0x120   :  { %v6531_v50 = vadd.f32 %v324_v49, %v106_v39 }
 0x126   :  { %v4273_v54 = vpop.f32.mrb[4].mxu1 }
 0x127   :  { %v6534_v55 = vadd.f32 %v4273_v54, %v106_v39  ;;  %v334_v57 = vpop.f32.mrb[5].mxu1 }
 0x128   :  { %v6540_v59 = vadd.f32 %v334_v57, %v106_v39 }
 0x12b   :  { %v4276_v60 = vpop.f32.mrb[6].mxu1 }
 0x12c   :  { %v6542_v1 = vadd.f32 %v4276_v60, %v106_v39  ;;  %v344_v2 = vpop.f32.mrb[7].mxu1 }
 0x12d   :  { %v6546_v7 = vadd.f32 %v344_v2, %v106_v39 }
 0x12f   :  { %v498_v62 = vpop.f32.mrb[0].mxu0 }
 0x130   :  { %v5908_v4 = vadd.f32 %v498_v62, %v6538_v58  ;;  %v500_v6 = vpop.f32.mrb[1].mxu0 }
 0x131   :  { %v5909_v13 = vadd.f32 %v500_v6, %v6550_v11 }
 0x132   :  { %v3904_v9 = vmul.f32 -1.442695, %v5908_v4 }
 0x133   :  { %v3905_v20 = vmul.f32 -1.442695, %v5909_v13 }
 0x134   :  { %5980 = vpow2.f32 %v3904_v9 }
 0x135   :  { %5982 = vpow2.f32 %v3905_v20 }
 0x138   :  { %v569_v17 = vpop.f32.mrb[8].mxu1 }
 0x139   :  { %v4311_v18 = vpop.f32.mrb[9].mxu1  ;;  %v590_v28 = vadd.f32 %v6556_v27, %v569_v17 }
 0x13e   :  { %v5981_v24 = vpop.eup %5980 }
 0x13f   :  { %v583_v25 = vadd.f32 1.0, %v5981_v24  ;;  %v5983_v30 = vpop.eup %5982 }
 0x140   :  { %v584_v41 = vadd.f32 1.0, %v5983_v30 }
 0x141   :  { %5984 = vrcp.f32 %v583_v25 }
 0x14b   :  { %v5985_v32 = vpop.eup %5984 }
 0x14c   :  { %v591_v38 = vmul.f32 %v5985_v32, %v590_v28 }
 0x14e   :  { %v592_v46 = vadd.f32 %v591_v38, %v315_v35 }
 0x150   :  { %5986 = vtanh.f32 %v592_v46 }
 0x151   :  { %5988 = vrcp.f32 %v584_v41 }
 0x15a   :  { %v5987_v49 = vpop.eup %5986 }
 0x15b   :  { %v594_v54 = vsub.f32 0.0, %v5987_v49  ;;  %v5989_v57 = vpop.eup %5988 }
 0x15d   :  { %v595_v60 = vmul.f32 %v5989_v57, %v594_v54 }
 0x15f   :  { %v6559_v62 = vadd.f32 %v5987_v49, %v595_v60  ;;  %v1240_v60 = vld [vmem:[#allocation4] sm:$0xff] }
 0x161   :  { %711 = vmatmul.mubr.f32.vlgmr.msra.gmra.mrb[2].mxu0 %v6559_v62  ;;  %4345 = vmatmul.mubr.f32.vlgmr.msra.gmra.mrb[10].mxu1 %v6559_v62 }
 0x162   :  { %5039 = vmatpush1.bf16.msra.mxu0 %v6350_v15  ;;  %5070 = vmatpush3.bf16.msra.mxu1 %v6384_v40 }
 0x163   :  { %5041 = vmatprep.subr.bf16.mxu0 %v6353_v16  ;;  %5071 = vmatprep.subr.bf16.mxu1 %v6217_v48 }
 0x164   :  { %924 = vmatprep.mubr.f32.mxu0 %v6216_v0  ;;  %4379 = vmatprep.mubr.msk.f32.mxu1 %vm6218_vm1, %v6216_v0 }
 0x166   :  { %5043 = vmatpush1.bf16.msra.mxu0 %v6361_v22  ;;  %5073 = vmatpush3.bf16.msra.mxu1 %v6400_v51 }
 0x167   :  { %5045 = vmatprep.subr.bf16.mxu0 %v6364_v23  ;;  %5074 = vmatprep.subr.bf16.mxu1 %v6217_v48 }
 0x16a   :  { %5047 = vmatpush1.bf16.msra.mxu0 %v6378_v31  ;;  %5076 = vmatpush3.bf16.msra.mxu1 %v6416_v61 }
 0x16b   :  { %5049 = vmatprep.subr.bf16.mxu0 %v6381_v33  ;;  %5077 = vmatprep.subr.bf16.mxu1 %v6217_v48 }
 0x16e   :  { %5051 = vmatpush1.bf16.msra.mxu0 %v6391_v42  ;;  %5079 = vmatpush3.bf16.msra.mxu1 %v6432_v8 }
 0x16f   :  { %5053 = vmatprep.subr.bf16.mxu0 %v6394_v45  ;;  %5080 = vmatprep.subr.bf16.mxu1 %v6217_v48 }
 0x172   :  { %5055 = vmatpush1.bf16.msra.mxu0 %v6407_v53  ;;  %5082 = vmatpush3.bf16.msra.mxu1 %v6448_v19 }
 0x173   :  { %5057 = vmatprep.subr.bf16.mxu0 %v6410_v56  ;;  %5083 = vmatprep.subr.bf16.mxu1 %v6217_v48 }
 0x176   :  { %5059 = vmatpush1.bf16.msra.mxu0 %v6423_v63  ;;  %5085 = vmatpush3.bf16.msra.mxu1 %v6462_v26 }
 0x177   :  { %5061 = vmatprep.subr.bf16.mxu0 %v6426_v3  ;;  %5086 = vmatprep.subr.bf16.mxu1 %v6217_v48 }
 0x17a   :  { %5063 = vmatpush1.bf16.msra.mxu0 %v6439_v10  ;;  %5088 = vmatpush3.bf16.msra.mxu1 %v6472_v29 }
 0x17b   :  { %5065 = vmatprep.subr.bf16.mxu0 %v6442_v14  ;;  %5089 = vmatprep.subr.bf16.mxu1 %v6217_v48 }
 0x17e   :  { %5067 = vmatpush1.bf16.msra.mxu0 %v6455_v21  ;;  %5091 = vmatpush3.bf16.msra.mxu1 %v6481_v34 }
 0x17f   :  { %5093 = vmatprep.subr.bf16.mxu0 %v6348_v12  ;;  %5124 = vmatprep.subr.bf16.mxu1 %v6217_v48 }
 0x234   :  { %v712_v39 = vpop.f32.mrb[2].mxu0  ;;  %v783_v44 = vpop.f32.mrb[10].mxu1 }
 0x235   :  { %v5910_v2 = vadd.f32 %v712_v39, %v6538_v58  ;;  %v714_v4 = vpop.f32.mrb[3].mxu0  ;;  %v4346_v6 = vpop.f32.mrb[11].mxu1  ;;  %v804_v12 = vadd.f32 %v6556_v27, %v783_v44  ;;  %v1243_v39 = vld [vmem:[#allocation4 + $0x18] sm:$0xff] }
 0x236   :  { %v5911_v13 = vadd.f32 %v714_v4, %v6550_v11  ;;  %v6663_v44 = vpack.c.bf16 %v1243_v39, %v1240_v60  ;;  %v1246_v4 = vld [vmem:[#allocation4 + $0x30] sm:$0xff]  ;;  %v1283_v60 = vld [vmem:[#allocation4 + $0x158] sm:$0xff] }
 0x237   :  { %v3906_v9 = vmul.f32 -1.442695, %v5910_v2  ;;  %v1286_v39 = vld [vmem:[#allocation4 + $0x170] sm:$0xff] }
 0x238   :  { %v3907_v17 = vmul.f32 -1.442695, %v5911_v13  ;;  %v1256_v13 = vld [vmem:[#allocation4 + $0x80] sm:$0xff] }
 0x239   :  { %5990 = vpow2.f32 %v3906_v9  ;;  %v1253_v9 = vld [vmem:[#allocation4 + $0x68] sm:$0xff] }
 0x23a   :  { %5992 = vpow2.f32 %v3907_v17  ;;  %v6673_v17 = vpack.c.bf16 %v1256_v13, %v1253_v9  ;;  %v1285_v9 = vld [vmem:[#allocation4 + $0x168] sm:$0xff]  ;;  %v1284_v13 = vld [vmem:[#allocation4 + $0x160] sm:$0xff] }
 0x243   :  { %v5991_v18 = vpop.eup %5990 }
 0x244   :  { %v797_v20 = vadd.f32 1.0, %v5991_v18  ;;  %v5993_v24 = vpop.eup %5992  ;;  %v1252_v18 = vld [vmem:[#allocation4 + $0x60] sm:$0xff] }
 0x245   :  { %v798_v32 = vadd.f32 1.0, %v5993_v24 }
 0x246   :  { %5994 = vrcp.f32 %v797_v20  ;;  %v1255_v20 = vld [vmem:[#allocation4 + $0x78] sm:$0xff] }
 0x247   :  { %v6675_v24 = vpack.c.bf16 %v1255_v20, %v1252_v18  ;;  %v1287_v18 = vld [vmem:[#allocation4 + $0x178] sm:$0xff] }
 0x250   :  { %v5995_v25 = vpop.eup %5994 }
 0x251   :  { %v805_v28 = vmul.f32 %v5995_v25, %v804_v12  ;;  %v1259_v12 = vld [vmem:[#allocation4 + $0x98] sm:$0xff]  ;;  %v1262_v25 = vld [vmem:[#allocation4 + $0xb0] sm:$0xff] }
 0x253   :  { %v806_v30 = vadd.f32 %v805_v28, %v6527_v43  ;;  %v6679_v28 = vpack.c.bf16 %v1262_v25, %v1259_v12  ;;  %v6719_v12 = vpack.c.bf16 %v1287_v18, %v1284_v13  ;;  %v1468_v18 = vld [vmem:[#allocation4 + $0x70] sm:$0xff] }
 0x255   :  { %5996 = vtanh.f32 %v806_v30  ;;  %v1258_v30 = vld [vmem:[#allocation4 + $0x90] sm:$0xff] }
 0x256   :  { %5998 = vrcp.f32 %v798_v32  ;;  %v1261_v32 = vld [vmem:[#allocation4 + $0xa8] sm:$0xff] }
 0x25f   :  { %v5997_v35 = vpop.eup %5996 }
 0x260   :  { %v808_v38 = vsub.f32 %v6559_v62, %v5997_v35  ;;  %v5999_v41 = vpop.eup %5998 }
 0x262   :  { %v809_v46 = vmul.f32 %v5999_v41, %v808_v38  ;;  %v1265_v38 = vld [vmem:[#allocation4 + $0xc8] sm:$0xff]  ;;  %v1268_v41 = vld [vmem:[#allocation4 + $0xe0] sm:$0xff] }
 0x264   :  { %v6603_v49 = vadd.f32 %v5997_v35, %v809_v46  ;;  %v6681_v35 = vpack.c.bf16 %v1261_v32, %v1258_v30  ;;  %v6685_v46 = vpack.c.bf16 %v1268_v41, %v1265_v38 }
 0x266   :  { %925 = vmatmul.mubr.f32.vlgmr.msra.gmra.mrb[4].mxu0 %v6603_v49  ;;  %4380 = vmatmul.mubr.f32.vlgmr.msra.gmra.mrb[12].mxu1 %v6603_v49 }
 0x267   :  { %5095 = vmatpush1.bf16.msra.mxu0 %v6350_v15  ;;  %5126 = vmatpush3.bf16.msra.mxu1 %v6384_v40 }
 0x268   :  { %5097 = vmatprep.subr.bf16.mxu0 %v6353_v16  ;;  %5127 = vmatprep.subr.bf16.mxu1 %v6217_v48 }
 0x269   :  { %1138 = vmatprep.mubr.f32.mxu0 %v6216_v0  ;;  %4414 = vmatprep.mubr.msk.f32.mxu1 %vm6218_vm1, %v6216_v0 }
 0x26b   :  { %5099 = vmatpush1.bf16.msra.mxu0 %v6361_v22  ;;  %5129 = vmatpush3.bf16.msra.mxu1 %v6400_v51 }
 0x26c   :  { %5101 = vmatprep.subr.bf16.mxu0 %v6364_v23  ;;  %5130 = vmatprep.subr.bf16.mxu1 %v6217_v48 }
 0x26f   :  { %5103 = vmatpush1.bf16.msra.mxu0 %v6378_v31  ;;  %5132 = vmatpush3.bf16.msra.mxu1 %v6416_v61 }
 0x270   :  { %5105 = vmatprep.subr.bf16.mxu0 %v6381_v33  ;;  %5133 = vmatprep.subr.bf16.mxu1 %v6217_v48 }
 0x273   :  { %5107 = vmatpush1.bf16.msra.mxu0 %v6391_v42  ;;  %5135 = vmatpush3.bf16.msra.mxu1 %v6432_v8 }
 0x274   :  { %5109 = vmatprep.subr.bf16.mxu0 %v6394_v45  ;;  %5136 = vmatprep.subr.bf16.mxu1 %v6217_v48 }
 0x277   :  { %5111 = vmatpush1.bf16.msra.mxu0 %v6407_v53  ;;  %5138 = vmatpush3.bf16.msra.mxu1 %v6448_v19 }
 0x278   :  { %5113 = vmatprep.subr.bf16.mxu0 %v6410_v56  ;;  %5139 = vmatprep.subr.bf16.mxu1 %v6217_v48 }
 0x27b   :  { %5115 = vmatpush1.bf16.msra.mxu0 %v6423_v63  ;;  %5141 = vmatpush3.bf16.msra.mxu1 %v6462_v26 }
 0x27c   :  { %5117 = vmatprep.subr.bf16.mxu0 %v6426_v3  ;;  %5142 = vmatprep.subr.bf16.mxu1 %v6217_v48 }
 0x27f   :  { %5119 = vmatpush1.bf16.msra.mxu0 %v6439_v10  ;;  %5144 = vmatpush3.bf16.msra.mxu1 %v6472_v29 }
 0x280   :  { %5121 = vmatprep.subr.bf16.mxu0 %v6442_v14  ;;  %5145 = vmatprep.subr.bf16.mxu1 %v6217_v48 }
 0x283   :  { %5123 = vmatpush1.bf16.msra.mxu0 %v6455_v21  ;;  %5147 = vmatpush3.bf16.msra.mxu1 %v6481_v34 }
 0x284   :  { %5180 = vmatprep.subr.bf16.mxu1 %v6217_v48 }
 0x339   :  { %v926_v15 = vpop.f32.mrb[4].mxu0  ;;  %v997_v16 = vpop.f32.mrb[12].mxu1 }
 0x33a   :  { %v5912_v22 = vadd.f32 %v926_v15, %v6538_v58  ;;  %v928_v23 = vpop.f32.mrb[5].mxu0  ;;  %v4381_v31 = vpop.f32.mrb[13].mxu1  ;;  %v1018_v3 = vadd.f32 %v6556_v27, %v997_v16  ;;  %v1264_v15 = vld [vmem:[#allocation4 + $0xc0] sm:$0xff]  ;;  %v1267_v16 = vld [vmem:[#allocation4 + $0xd8] sm:$0xff] }
 0x33b   :  { %v5913_v42 = vadd.f32 %v928_v23, %v6550_v11  ;;  %v6687_v23 = vpack.c.bf16 %v1267_v16, %v1264_v15  ;;  %v1269_v31 = vld [vmem:[#allocation4 + $0xe8] sm:$0xff] }
 0x33c   :  { %v3908_v33 = vmul.f32 -1.442695, %v5912_v22  ;;  %v1266_v22 = vld [vmem:[#allocation4 + $0xd0] sm:$0xff] }
 0x33d   :  { %v3909_v45 = vmul.f32 -1.442695, %v5913_v42  ;;  %v1274_v42 = vld [vmem:[#allocation4 + $0x110] sm:$0xff] }
 0x33e   :  { %6000 = vpow2.f32 %v3908_v33  ;;  %v1271_v33 = vld [vmem:[#allocation4 + $0xf8] sm:$0xff] }
 0x33f   :  { %6002 = vpow2.f32 %v3909_v45  ;;  %v6690_v45 = vpack.c.bf16 %v1269_v31, %v1266_v22 }
 0x348   :  { %v6001_v53 = vpop.eup %6000 }
 0x349   :  { %v1011_v56 = vadd.f32 1.0, %v6001_v53  ;;  %v6003_v63 = vpop.eup %6002  ;;  %v6692_v53 = vpack.c.bf16 %v1274_v42, %v1271_v33 }
 0x34a   :  { %v1012_v21 = vadd.f32 1.0, %v6003_v63  ;;  %v1273_v63 = vld [vmem:[#allocation4 + $0x108] sm:$0xff] }
 0x34b   :  { %6004 = vrcp.f32 %v1011_v56  ;;  %v1270_v56 = vld [vmem:[#allocation4 + $0xf0] sm:$0xff] }
 0x355   :  { %v6005_v10 = vpop.eup %6004 }
 0x356   :  { %v1019_v14 = vmul.f32 %v6005_v10, %v1018_v3  ;;  %v1272_v3 = vld [vmem:[#allocation4 + $0x100] sm:$0xff]  ;;  %v6695_v10 = vpack.c.bf16 %v1273_v63, %v1270_v56 }
 0x358   :  { %v1020_v19 = vadd.f32 %v1019_v14, %v6531_v50  ;;  %v1244_v50 = vld [vmem:[#allocation4 + $0x20] sm:$0xff]  ;;  %v1275_v14 = vld [vmem:[#allocation4 + $0x118] sm:$0xff] }
 0x35a   :  { %6006 = vtanh.f32 %v1020_v19  ;;  %v1277_v19 = vld [vmem:[#allocation4 + $0x128] sm:$0xff] }
 0x35b   :  { %6008 = vrcp.f32 %v1012_v21  ;;  %v1280_v21 = vld [vmem:[#allocation4 + $0x140] sm:$0xff] }
 0x364   :  { %v6007_v26 = vpop.eup %6006 }
 0x365   :  { %v1022_v29 = vsub.f32 %v6603_v49, %v6007_v26  ;;  %v6009_v34 = vpop.eup %6008 }
 0x367   :  { %v1023_v43 = vmul.f32 %v6009_v34, %v1022_v29  ;;  %v6701_v29 = vpack.c.bf16 %v1280_v21, %v1277_v19  ;;  %v1276_v34 = vld [vmem:[#allocation4 + $0x120] sm:$0xff] }
 0x369   :  { %v6646_v54 = vadd.f32 %v6007_v26, %v1023_v43  ;;  %v6699_v26 = vpack.c.bf16 %v1275_v14, %v1272_v3  ;;  %v1279_v43 = vld [vmem:[#allocation4 + $0x138] sm:$0xff] }
 0x36b   :  { %1139 = vmatmul.mubr.f32.vlgmr.msra.gmra.mrb[6].mxu0 %v6646_v54  ;;  %4415 = vmatmul.mubr.f32.vlgmr.msra.gmra.mrb[14].mxu1 %v6646_v54 }
 0x36c   :  { %5182 = vmatpush3.bf16.msra.mxu1 %v6384_v40  ;;  %1352 = vmatprep.mubr.f32.mxu0 %v6216_v0  ;;  %v1241_v40 = vld [vmem:[#allocation4 + $0x8] sm:$0xff] }
 0x36d   :  { %5183 = vmatprep.subr.bf16.mxu1 %v6217_v48  ;;  %4449 = vmatprep.mubr.msk.f32.mxu1 %vm6218_vm1, %v6216_v0  ;;  %v6661_v57 = vpack.c.bf16 %v1244_v50, %v1241_v40  ;;  %v1278_v40 = vld [vmem:[#allocation4 + $0x130] sm:$0xff]  ;;  %v1281_v50 = vld [vmem:[#allocation4 + $0x148] sm:$0xff] }
 0x36f   :  { %5149 = vmatprep.subr.bf16.mxu0 %v6661_v57 }
 0x370   :  { %5185 = vmatpush3.bf16.msra.mxu1 %v6400_v51  ;;  %5151 = vmatpush1.bf16.msra.mxu0 %v6663_v44  ;;  %v1247_v51 = vld [vmem:[#allocation4 + $0x38] sm:$0xff] }
 0x371   :  { %5186 = vmatprep.subr.bf16.mxu1 %v6217_v48 }
 0x374   :  { %5188 = vmatpush3.bf16.msra.mxu1 %v6416_v61  ;;  %v1250_v61 = vld [vmem:[#allocation4 + $0x50] sm:$0xff] }
 0x375   :  { %5189 = vmatprep.subr.bf16.mxu1 %v6217_v48  ;;  %v6667_v2 = vpack.c.bf16 %v1250_v61, %v1247_v51  ;;  %v6705_v51 = vpack.c.bf16 %v1279_v43, %v1276_v34  ;;  %v6709_v61 = vpack.c.bf16 %v1281_v50, %v1278_v40 }
 0x377   :  { %5153 = vmatprep.subr.bf16.mxu0 %v6667_v2 }
 0x378   :  { %5191 = vmatpush3.bf16.msra.mxu1 %v6432_v8  ;;  %v1249_v8 = vld [vmem:[#allocation4 + $0x48] sm:$0xff] }
 0x379   :  { %5192 = vmatprep.subr.bf16.mxu1 %v6217_v48  ;;  %v6669_v6 = vpack.c.bf16 %v1249_v8, %v1246_v4  ;;  %v6711_v4 = vpack.c.bf16 %v1286_v39, %v1283_v60  ;;  %v1282_v8 = vld [vmem:[#allocation4 + $0x150] sm:$0xff]  ;;  %v1459_v60 = vld [vmem:[#allocation4 + $0x28] sm:$0xff] }
 0x37a   :  { %v6715_v20 = vpack.c.bf16 %v1285_v9, %v1282_v8  ;;  %v1462_v8 = vld [vmem:[#allocation4 + $0x40] sm:$0xff]  ;;  %v1465_v9 = vld [vmem:[#allocation4 + $0x58] sm:$0xff] }
 0x37b   :  { %5155 = vmatpush1.bf16.msra.mxu0 %v6669_v6  ;;  %v6758_v13 = vpack.c.bf16 %v1465_v9, %v1462_v8 }
 0x37c   :  { %5157 = vmatprep.subr.bf16.mxu0 %v6673_v17  ;;  %5194 = vmatpush3.bf16.msra.mxu1 %v6690_v45 }
 0x37d   :  { %5195 = vmatprep.subr.bf16.mxu1 %v6217_v48 }
 0x37f   :  { %5159 = vmatpush1.bf16.msra.mxu0 %v6675_v24 }
 0x380   :  { %5161 = vmatprep.subr.bf16.mxu0 %v6679_v28  ;;  %5197 = vmatpush3.bf16.msra.mxu1 %v6699_v26 }
 0x381   :  { %5198 = vmatprep.subr.bf16.mxu1 %v6217_v48 }
 0x383   :  { %5163 = vmatpush1.bf16.msra.mxu0 %v6681_v35 }
 0x384   :  { %5165 = vmatprep.subr.bf16.mxu0 %v6685_v46  ;;  %5200 = vmatpush3.bf16.msra.mxu1 %v6709_v61 }
 0x385   :  { %5201 = vmatprep.subr.bf16.mxu1 %v6217_v48 }
 0x387   :  { %5167 = vmatpush1.bf16.msra.mxu0 %v6687_v23 }
 0x388   :  { %5169 = vmatprep.subr.bf16.mxu0 %v6692_v53  ;;  %5203 = vmatpush3.bf16.msra.mxu1 %v6719_v12 }
 0x389   :  { %5236 = vmatprep.subr.bf16.mxu1 %v6217_v48 }
 0x38b   :  { %5171 = vmatpush1.bf16.msra.mxu0 %v6695_v10 }
 0x38c   :  { %5173 = vmatprep.subr.bf16.mxu0 %v6701_v29 }
 0x38f   :  { %5175 = vmatpush1.bf16.msra.mxu0 %v6705_v51 }
 0x390   :  { %5177 = vmatprep.subr.bf16.mxu0 %v6711_v4 }
 0x393   :  { %5179 = vmatpush1.bf16.msra.mxu0 %v6715_v20 }
 0x394   :  { %5205 = vmatprep.subr.bf16.mxu0 %v6661_v57 }
 0x43e   :  { %v1140_v25 = vpop.f32.mrb[6].mxu0  ;;  %v1211_v30 = vpop.f32.mrb[14].mxu1 }
 0x43f   :  { %v5914_v32 = vadd.f32 %v1140_v25, %v6538_v58  ;;  %v1142_v38 = vpop.f32.mrb[7].mxu0  ;;  %v4416_v41 = vpop.f32.mrb[15].mxu1  ;;  %v1232_v56 = vadd.f32 %v6556_v27, %v1211_v30  ;;  %v1471_v25 = vld [vmem:[#allocation4 + $0x88] sm:$0xff] }
 0x440   :  { %v5915_v16 = vadd.f32 %v1142_v38, %v6550_v11  ;;  %v6762_v30 = vpack.c.bf16 %v1471_v25, %v1468_v18  ;;  %v1477_v38 = vld [vmem:[#allocation4 + $0xb8] sm:$0xff] }
 0x441   :  { %v3910_v15 = vmul.f32 -1.442695, %v5914_v32  ;;  %v1474_v32 = vld [vmem:[#allocation4 + $0xa0] sm:$0xff] }
 0x442   :  { %v3911_v22 = vmul.f32 -1.442695, %v5915_v16  ;;  %v6766_v41 = vpack.c.bf16 %v1477_v38, %v1474_v32 }
 0x443   :  { %6010 = vpow2.f32 %v3910_v15 }
 0x444   :  { %6012 = vpow2.f32 %v3911_v22 }
 0x44d   :  { %v6011_v31 = vpop.eup %6010 }
 0x44e   :  { %v1225_v33 = vadd.f32 1.0, %v6011_v31  ;;  %v6013_v42 = vpop.eup %6012 }
 0x44f   :  { %v1226_v19 = vadd.f32 1.0, %v6013_v42 }
 0x450   :  { %6014 = vrcp.f32 %v1225_v33 }
 0x45a   :  { %v6015_v63 = vpop.eup %6014 }
 0x45b   :  { %v1233_v3 = vmul.f32 %v6015_v63, %v1232_v56 }
 0x45d   :  { %v1234_v14 = vadd.f32 %v1233_v3, %v6529_v47  ;;  %v1456_v47 = vld [vmem:[#allocation4 + $0x10] sm:$0xff] }
 0x45e   :  { %v6754_v39 = vpack.c.bf16 %v1459_v60, %v1456_v47 }
 0x45f   :  { %6016 = vtanh.f32 %v1234_v14 }
 0x460   :  { %6018 = vrcp.f32 %v1226_v19 }
 0x469   :  { %v6017_v21 = vpop.eup %6016 }
 0x46a   :  { %v1236_v34 = vsub.f32 %v6646_v54, %v6017_v21  ;;  %v6019_v43 = vpop.eup %6018 }
 0x46c   :  { %v1237_v40 = vmul.f32 %v6019_v43, %v1236_v34 }
 0x46e   :  { %v6731_v50 = vadd.f32 %v6017_v21, %v1237_v40 }
 0x470   :  { %1353 = vmatmul.mubr.f32.vlgmr.msra.gmra.mrb[8].mxu0 %v6731_v50  ;;  %4450 = vmatmul.mubr.f32.vlgmr.msra.gmra.mrb[16].mxu1 %v6731_v50 }
 0x471   :  { %5207 = vmatpush1.bf16.msra.mxu0 %v6663_v44  ;;  %1566 = vmatprep.mubr.f32.mxu0 %v6216_v0 }
 0x472   :  { %5209 = vmatprep.subr.bf16.mxu0 %v6667_v2  ;;  %4484 = vmatprep.mubr.msk.f32.mxu1 %vm6218_vm1, %v6216_v0 }
 0x473   :  { %5238 = vmatpush3.bf16.msra.mxu1 %v6754_v39 }
 0x474   :  { %5239 = vmatprep.subr.bf16.mxu1 %v6217_v48 }
 0x475   :  { %5211 = vmatpush1.bf16.msra.mxu0 %v6669_v6 }
 0x476   :  { %5213 = vmatprep.subr.bf16.mxu0 %v6673_v17 }
 0x477   :  { %5241 = vmatpush3.bf16.msra.mxu1 %v6758_v13 }
 0x478   :  { %5242 = vmatprep.subr.bf16.mxu1 %v6217_v48 }
 0x479   :  { %5215 = vmatpush1.bf16.msra.mxu0 %v6675_v24 }
 0x47a   :  { %5217 = vmatprep.subr.bf16.mxu0 %v6679_v28 }
 0x47b   :  { %5244 = vmatpush3.bf16.msra.mxu1 %v6762_v30 }
 0x47c   :  { %5245 = vmatprep.subr.bf16.mxu1 %v6217_v48 }
 0x47d   :  { %5219 = vmatpush1.bf16.msra.mxu0 %v6681_v35 }
 0x47e   :  { %5221 = vmatprep.subr.bf16.mxu0 %v6685_v46 }
 0x47f   :  { %5247 = vmatpush3.bf16.msra.mxu1 %v6766_v41 }
 0x480   :  { %5248 = vmatprep.subr.bf16.mxu1 %v6217_v48 }
 0x481   :  { %5223 = vmatpush1.bf16.msra.mxu0 %v6687_v23 }
 0x482   :  { %5225 = vmatprep.subr.bf16.mxu0 %v6692_v53 }
 0x483   :  { %5250 = vmatpush3.bf16.msra.mxu1 %v6690_v45 }
 0x484   :  { %5251 = vmatprep.subr.bf16.mxu1 %v6217_v48 }
 0x485   :  { %5227 = vmatpush1.bf16.msra.mxu0 %v6695_v10 }
 0x486   :  { %5229 = vmatprep.subr.bf16.mxu0 %v6701_v29 }
 0x487   :  { %5253 = vmatpush3.bf16.msra.mxu1 %v6699_v26 }
 0x488   :  { %5254 = vmatprep.subr.bf16.mxu1 %v6217_v48 }
 0x489   :  { %5231 = vmatpush1.bf16.msra.mxu0 %v6705_v51 }
 0x48a   :  { %5233 = vmatprep.subr.bf16.mxu0 %v6711_v4 }
 0x48b   :  { %5256 = vmatpush3.bf16.msra.mxu1 %v6709_v61 }
 0x48c   :  { %5257 = vmatprep.subr.bf16.mxu1 %v6217_v48 }
 0x48d   :  { %5235 = vmatpush1.bf16.msra.mxu0 %v6715_v20 }
 0x48e   :  { %5261 = vmatprep.subr.bf16.mxu0 %v6661_v57 }
 0x48f   :  { %5259 = vmatpush3.bf16.msra.mxu1 %v6719_v12 }
 0x490   :  { %5292 = vmatprep.subr.bf16.mxu1 %v6217_v48 }
 0x543   :  { %v1354_v15 = vpop.f32.mrb[8].mxu0  ;;  %v1425_v16 = vpop.f32.mrb[16].mxu1 }
 0x544   :  { %v5916_v22 = vadd.f32 %v1354_v15, %v6538_v58  ;;  %v1356_v31 = vpop.f32.mrb[9].mxu0  ;;  %v4451_v33 = vpop.f32.mrb[17].mxu1  ;;  %v1446_v21 = vadd.f32 %v6556_v27, %v1425_v16 }
 0x545   :  { %v5917_v56 = vadd.f32 %v1356_v31, %v6550_v11 }
 0x546   :  { %v3912_v42 = vmul.f32 -1.442695, %v5916_v22 }
 0x547   :  { %v3913_v63 = vmul.f32 -1.442695, %v5917_v56 }
 0x548   :  { %6020 = vpow2.f32 %v3912_v42 }
 0x549   :  { %6022 = vpow2.f32 %v3913_v63 }
 0x552   :  { %v6021_v3 = vpop.eup %6020 }
 0x553   :  { %v1439_v14 = vadd.f32 1.0, %v6021_v3  ;;  %v6023_v19 = vpop.eup %6022 }
 0x554   :  { %v1440_v47 = vadd.f32 1.0, %v6023_v19 }
 0x555   :  { %6024 = vrcp.f32 %v1439_v14 }
 0x55f   :  { %v6025_v34 = vpop.eup %6024 }
 0x560   :  { %v1447_v43 = vmul.f32 %v6025_v34, %v1446_v21 }
 0x562   :  { %v1448_v40 = vadd.f32 %v1447_v43, %v6540_v59 }
 0x564   :  { %6026 = vtanh.f32 %v1448_v40 }
 0x565   :  { %6028 = vrcp.f32 %v1440_v47 }
 0x56e   :  { %v6027_v60 = vpop.eup %6026 }
 0x56f   :  { %v1450_v8 = vsub.f32 %v6731_v50, %v6027_v60  ;;  %v6029_v9 = vpop.eup %6028 }
 0x571   :  { %v1451_v18 = vmul.f32 %v6029_v9, %v1450_v8  ;;  %v2104_v8 = vld [vmem:[#allocation6] sm:$0xff]  ;;  %v2107_v9 = vld [vmem:[#allocation6 + $0x18] sm:$0xff] }
 0x573   :  { %v6783_v25 = vadd.f32 %v6027_v60, %v1451_v18 }
 0x575   :  { %1567 = vmatmul.mubr.f32.vlgmr.msra.gmra.mrb[10].mxu0 %v6783_v25  ;;  %4485 = vmatmul.mubr.f32.vlgmr.msra.gmra.mrb[18].mxu1 %v6783_v25 }
 0x576   :  { %5263 = vmatpush1.bf16.msra.mxu0 %v6663_v44  ;;  %5294 = vmatpush3.bf16.msra.mxu1 %v6754_v39 }
 0x577   :  { %5265 = vmatprep.subr.bf16.mxu0 %v6667_v2  ;;  %5295 = vmatprep.subr.bf16.mxu1 %v6217_v48 }
 0x578   :  { %1780 = vmatprep.mubr.f32.mxu0 %v6216_v0  ;;  %4519 = vmatprep.mubr.msk.f32.mxu1 %vm6218_vm1, %v6216_v0 }
 0x57a   :  { %5267 = vmatpush1.bf16.msra.mxu0 %v6669_v6  ;;  %5297 = vmatpush3.bf16.msra.mxu1 %v6758_v13 }
 0x57b   :  { %5269 = vmatprep.subr.bf16.mxu0 %v6673_v17  ;;  %5298 = vmatprep.subr.bf16.mxu1 %v6217_v48 }
 0x57e   :  { %5271 = vmatpush1.bf16.msra.mxu0 %v6675_v24  ;;  %5300 = vmatpush3.bf16.msra.mxu1 %v6762_v30 }
 0x57f   :  { %5273 = vmatprep.subr.bf16.mxu0 %v6679_v28  ;;  %5301 = vmatprep.subr.bf16.mxu1 %v6217_v48 }
 0x582   :  { %5275 = vmatpush1.bf16.msra.mxu0 %v6681_v35  ;;  %5303 = vmatpush3.bf16.msra.mxu1 %v6766_v41 }
 0x583   :  { %5277 = vmatprep.subr.bf16.mxu0 %v6685_v46  ;;  %5304 = vmatprep.subr.bf16.mxu1 %v6217_v48 }
 0x586   :  { %5279 = vmatpush1.bf16.msra.mxu0 %v6687_v23  ;;  %5306 = vmatpush3.bf16.msra.mxu1 %v6690_v45 }
 0x587   :  { %5281 = vmatprep.subr.bf16.mxu0 %v6692_v53  ;;  %5307 = vmatprep.subr.bf16.mxu1 %v6217_v48 }
 0x58a   :  { %5283 = vmatpush1.bf16.msra.mxu0 %v6695_v10  ;;  %5309 = vmatpush3.bf16.msra.mxu1 %v6699_v26 }
 0x58b   :  { %5285 = vmatprep.subr.bf16.mxu0 %v6701_v29  ;;  %5310 = vmatprep.subr.bf16.mxu1 %v6217_v48 }
 0x58e   :  { %5287 = vmatpush1.bf16.msra.mxu0 %v6705_v51  ;;  %5312 = vmatpush3.bf16.msra.mxu1 %v6709_v61 }
 0x58f   :  { %5289 = vmatprep.subr.bf16.mxu0 %v6711_v4  ;;  %5313 = vmatprep.subr.bf16.mxu1 %v6217_v48 }
 0x592   :  { %5291 = vmatpush1.bf16.msra.mxu0 %v6715_v20  ;;  %5315 = vmatpush3.bf16.msra.mxu1 %v6719_v12 }
 0x593   :  { %5317 = vmatprep.subr.bf16.mxu0 %v6661_v57  ;;  %5348 = vmatprep.subr.bf16.mxu1 %v6217_v48 }
 0x648   :  { %v1568_v59 = vpop.f32.mrb[10].mxu0  ;;  %v1639_v32 = vpop.f32.mrb[18].mxu1 }
 0x649   :  { %v5918_v38 = vadd.f32 %v1568_v59, %v6538_v58  ;;  %v1570_v15 = vpop.f32.mrb[11].mxu0  ;;  %v4486_v16 = vpop.f32.mrb[19].mxu1  ;;  %v1660_v57 = vadd.f32 %v6556_v27, %v1639_v32  ;;  %v2111_v59 = vld [vmem:[#allocation6 + $0x38] sm:$0xff]  ;;  %v2114_v32 = vld [vmem:[#allocation6 + $0x50] sm:$0xff] }
 0x64a   :  { %v5919_v31 = vadd.f32 %v1570_v15, %v6550_v11  ;;  %v2112_v15 = vld [vmem:[#allocation6 + $0x40] sm:$0xff]  ;;  %v2115_v16 = vld [vmem:[#allocation6 + $0x58] sm:$0xff] }
 0x64b   :  { %v3914_v22 = vmul.f32 -1.442695, %v5918_v38 }
 0x64c   :  { %v3915_v33 = vmul.f32 -1.442695, %v5919_v31  ;;  %v5376_v31 = vpack.c.bf16 %v2114_v32, %v2111_v59  ;;  %v2142_v59 = vld [vmem:[#allocation6 + $0x130] sm:$0xff]  ;;  %v2145_v32 = vld [vmem:[#allocation6 + $0x148] sm:$0xff] }
 0x64d   :  { %6030 = vpow2.f32 %v3914_v22  ;;  %v5374_v22 = vpack.c.bf16 %v2107_v9, %v2104_v8  ;;  %v2137_v8 = vld [vmem:[#allocation6 + $0x108] sm:$0xff] }
 0x64e   :  { %6032 = vpow2.f32 %v3915_v33  ;;  %v2110_v33 = vld [vmem:[#allocation6 + $0x30] sm:$0xff]  ;;  %v2141_v9 = vld [vmem:[#allocation6 + $0x128] sm:$0xff] }
 0x657   :  { %v6031_v42 = vpop.eup %6030 }
 0x658   :  { %v1653_v56 = vadd.f32 1.0, %v6031_v42  ;;  %v6033_v63 = vpop.eup %6032  ;;  %v2117_v42 = vld [vmem:[#allocation6 + $0x68] sm:$0xff] }
 0x659   :  { %v1654_v21 = vadd.f32 1.0, %v6033_v63  ;;  %v2120_v63 = vld [vmem:[#allocation6 + $0x80] sm:$0xff] }
 0x65a   :  { %6034 = vrcp.f32 %v1653_v56  ;;  %v5408_v56 = vpack.c.bf16 %v2115_v16, %v2112_v15  ;;  %v5428_v16 = vpack.c.bf16 %v2145_v32, %v2142_v59  ;;  %v2458_v59 = vld [vmem:[#allocation8 + $0x140] sm:$0xff] }
 0x65b   :  { %v2454_v32 = vld [vmem:[#allocation8 + $0x120] sm:$0xff] }
 0x664   :  { %v6035_v3 = vpop.eup %6034 }
 0x665   :  { %v1661_v14 = vmul.f32 %v6035_v3, %v1660_v57  ;;  %v2118_v57 = vld [vmem:[#allocation6 + $0x70] sm:$0xff]  ;;  %v2121_v3 = vld [vmem:[#allocation6 + $0x88] sm:$0xff] }
 0x667   :  { %v1662_v19 = vadd.f32 %v1661_v14, %v6534_v55  ;;  %v2105_v55 = vld [vmem:[#allocation6 + $0x8] sm:$0xff] }
 0x669   :  { %6036 = vtanh.f32 %v1662_v19  ;;  %v5380_v19 = vpack.c.bf16 %v2120_v63, %v2117_v42  ;;  %v2148_v42 = vld [vmem:[#allocation6 + $0x160] sm:$0xff] }
 0x66a   :  { %6038 = vrcp.f32 %v1654_v21  ;;  %v5412_v21 = vpack.c.bf16 %v2121_v3, %v2118_v57 }
 0x673   :  { %v6037_v34 = vpop.eup %6036 }
 0x674   :  { %v1664_v43 = vsub.f32 %v6783_v25, %v6037_v34  ;;  %v6039_v40 = vpop.eup %6038 }
 0x676   :  { %v1665_v47 = vmul.f32 %v6039_v40, %v1664_v43  ;;  %v2119_v43 = vld [vmem:[#allocation6 + $0x78] sm:$0xff] }
 0x677   :  { %v2123_v40 = vld [vmem:[#allocation6 + $0x98] sm:$0xff] }
 0x678   :  { %v6827_v60 = vadd.f32 %v6037_v34, %v1665_v47  ;;  %v2116_v34 = vld [vmem:[#allocation6 + $0x60] sm:$0xff]  ;;  %v2126_v47 = vld [vmem:[#allocation6 + $0xb0] sm:$0xff] }
 0x67a   :  { %1781 = vmatmul.mubr.f32.vlgmr.msra.gmra.mrb[12].mxu0 %v6827_v60  ;;  %4520 = vmatmul.mubr.f32.vlgmr.msra.gmra.mrb[20].mxu1 %v6827_v60 }
 0x67b   :  { %5319 = vmatpush1.bf16.msra.mxu0 %v6663_v44  ;;  %5350 = vmatpush3.bf16.msra.mxu1 %v6754_v39  ;;  %v2108_v44 = vld [vmem:[#allocation6 + $0x20] sm:$0xff] }
 0x67c   :  { %5321 = vmatprep.subr.bf16.mxu0 %v6667_v2  ;;  %5351 = vmatprep.subr.bf16.mxu1 %v6217_v48  ;;  %v2106_v2 = vld [vmem:[#allocation6 + $0x10] sm:$0xff] }
 0x67d   :  { %1994 = vmatprep.mubr.f32.mxu0 %v6216_v0  ;;  %4554 = vmatprep.mubr.msk.f32.mxu1 %vm6218_vm1, %v6216_v0 }
 0x67f   :  { %5323 = vmatpush1.bf16.msra.mxu0 %v6669_v6  ;;  %5353 = vmatpush3.bf16.msra.mxu1 %v6758_v13  ;;  %v5372_v6 = vpack.c.bf16 %v2108_v44, %v2105_v55  ;;  %v2124_v55 = vld [vmem:[#allocation6 + $0xa0] sm:$0xff]  ;;  %v2127_v44 = vld [vmem:[#allocation6 + $0xb8] sm:$0xff] }
 0x680   :  { %5325 = vmatprep.subr.bf16.mxu0 %v6673_v17  ;;  %5354 = vmatprep.subr.bf16.mxu1 %v6217_v48  ;;  %v2109_v17 = vld [vmem:[#allocation6 + $0x28] sm:$0xff] }
 0x683   :  { %5327 = vmatpush1.bf16.msra.mxu0 %v6675_v24  ;;  %5356 = vmatpush3.bf16.msra.mxu1 %v6762_v30  ;;  %v5404_v24 = vpack.c.bf16 %v2109_v17, %v2106_v2  ;;  %v5382_v2 = vpack.c.bf16 %v2119_v43, %v2116_v34  ;;  %v5416_v17 = vpack.c.bf16 %v2127_v44, %v2124_v55  ;;  %v2418_v34 = vld [vmem:[#allocation8] sm:$0xff]  ;;  %v2427_v55 = vld [vmem:[#allocation8 + $0x48] sm:$0xff] }
 0x684   :  { %5329 = vmatprep.subr.bf16.mxu0 %v6679_v28  ;;  %5357 = vmatprep.subr.bf16.mxu1 %v6217_v48 }
 0x687   :  { %5331 = vmatpush1.bf16.msra.mxu0 %v6681_v35  ;;  %5359 = vmatpush3.bf16.msra.mxu1 %v6766_v41 }
 0x688   :  { %5333 = vmatprep.subr.bf16.mxu0 %v6685_v46  ;;  %5360 = vmatprep.subr.bf16.mxu1 %v6217_v48 }
 0x68b   :  { %5335 = vmatpush1.bf16.msra.mxu0 %v6687_v23  ;;  %5362 = vmatpush3.bf16.msra.mxu1 %v6690_v45 }
 0x68c   :  { %5337 = vmatprep.subr.bf16.mxu0 %v6692_v53  ;;  %5363 = vmatprep.subr.bf16.mxu1 %v6217_v48 }
 0x68f   :  { %5339 = vmatpush1.bf16.msra.mxu0 %v6695_v10  ;;  %5365 = vmatpush3.bf16.msra.mxu1 %v6699_v26 }
 0x690   :  { %5341 = vmatprep.subr.bf16.mxu0 %v6701_v29  ;;  %5366 = vmatprep.subr.bf16.mxu1 %v6217_v48 }
 0x693   :  { %5343 = vmatpush1.bf16.msra.mxu0 %v6705_v51  ;;  %5368 = vmatpush3.bf16.msra.mxu1 %v6709_v61 }
 0x694   :  { %5345 = vmatprep.subr.bf16.mxu0 %v6711_v4  ;;  %5369 = vmatprep.subr.bf16.mxu1 %v6217_v48 }
 0x697   :  { %5347 = vmatpush1.bf16.msra.mxu0 %v6715_v20  ;;  %5371 = vmatpush3.bf16.msra.mxu1 %v6719_v12 }
 0x698   :  { %5373 = vmatprep.subr.bf16.mxu0 %v5372_v6  ;;  %5405 = vmatprep.subr.bf16.mxu1 %v5404_v24  ;;  %v5384_v6 = vpack.c.bf16 %v2126_v47, %v2123_v40  ;;  %v2424_v47 = vld [vmem:[#allocation8 + $0x30] sm:$0xff] }
 0x699   :  { %v6904_v44 = vpack.c.bf16 %v2427_v55, %v2424_v47  ;;  %v2444_v47 = vld [vmem:[#allocation8 + $0xd0] sm:$0xff]  ;;  %v2447_v55 = vld [vmem:[#allocation8 + $0xe8] sm:$0xff] }
 0x74d   :  { %v1782_v28 = vpop.f32.mrb[12].mxu0  ;;  %v1853_v35 = vpop.f32.mrb[20].mxu1 }
 0x74e   :  { %v5920_v46 = vadd.f32 %v1782_v28, %v6538_v58  ;;  %v1784_v23 = vpop.f32.mrb[13].mxu0  ;;  %v4521_v45 = vpop.f32.mrb[21].mxu1  ;;  %v1874_v4 = vadd.f32 %v6556_v27, %v1853_v35  ;;  %v2125_v28 = vld [vmem:[#allocation6 + $0xa8] sm:$0xff] }
 0x74f   :  { %v5921_v10 = vadd.f32 %v1784_v23, %v6550_v11  ;;  %v2129_v35 = vld [vmem:[#allocation6 + $0xc8] sm:$0xff]  ;;  %v2130_v23 = vld [vmem:[#allocation6 + $0xd0] sm:$0xff] }
 0x750   :  { %v3916_v53 = vmul.f32 -1.442695, %v5920_v46  ;;  %v2132_v46 = vld [vmem:[#allocation6 + $0xe0] sm:$0xff]  ;;  %v2133_v45 = vld [vmem:[#allocation6 + $0xe8] sm:$0xff] }
 0x751   :  { %v3917_v26 = vmul.f32 -1.442695, %v5921_v10  ;;  %v5388_v10 = vpack.c.bf16 %v2132_v46, %v2129_v35  ;;  %v2437_v46 = vld [vmem:[#allocation8 + $0x98] sm:$0xff] }
 0x752   :  { %6040 = vpow2.f32 %v3916_v53 }
 0x753   :  { %6042 = vpow2.f32 %v3917_v26  ;;  %v5420_v26 = vpack.c.bf16 %v2133_v45, %v2130_v23  ;;  %v2440_v23 = vld [vmem:[#allocation8 + $0xb0] sm:$0xff] }
 0x754   :  { %v6914_v45 = vpack.c.bf16 %v2440_v23, %v2437_v46  ;;  %v2456_v46 = vld [vmem:[#allocation8 + $0x130] sm:$0xff]  ;;  %v2459_v23 = vld [vmem:[#allocation8 + $0x148] sm:$0xff] }
 0x75c   :  { %v6041_v29 = vpop.eup %6040 }
 0x75d   :  { %v1867_v51 = vadd.f32 1.0, %v6041_v29  ;;  %v6043_v61 = vpop.eup %6042  ;;  %v2128_v29 = vld [vmem:[#allocation6 + $0xc0] sm:$0xff] }
 0x75e   :  { %v1868_v13 = vadd.f32 1.0, %v6043_v61  ;;  %v2135_v61 = vld [vmem:[#allocation6 + $0xf8] sm:$0xff] }
 0x75f   :  { %6044 = vrcp.f32 %v1867_v51  ;;  %v2131_v51 = vld [vmem:[#allocation6 + $0xd8] sm:$0xff] }
 0x769   :  { %v6045_v20 = vpop.eup %6044 }
 0x76a   :  { %v1875_v12 = vmul.f32 %v6045_v20, %v1874_v4  ;;  %v2138_v4 = vld [vmem:[#allocation6 + $0x110] sm:$0xff]  ;;  %v2136_v20 = vld [vmem:[#allocation6 + $0x100] sm:$0xff] }
 0x76c   :  { %v1876_v39 = vadd.f32 %v1875_v12, %v6546_v7  ;;  %v2113_v7 = vld [vmem:[#allocation6 + $0x48] sm:$0xff]  ;;  %v2139_v12 = vld [vmem:[#allocation6 + $0x118] sm:$0xff] }
 0x76d   :  { %v5378_v14 = vpack.c.bf16 %v2113_v7, %v2110_v33  ;;  %v2147_v33 = vld [vmem:[#allocation6 + $0x158] sm:$0xff]  ;;  %v2150_v7 = vld [vmem:[#allocation6 + $0x170] sm:$0xff] }
 0x76e   :  { %6046 = vtanh.f32 %v1876_v39  ;;  %v5390_v39 = vpack.c.bf16 %v2131_v51, %v2128_v29  ;;  %v5400_v57 = vpack.c.bf16 %v2150_v7, %v2147_v33  ;;  %v2443_v29 = vld [vmem:[#allocation8 + $0xc8] sm:$0xff]  ;;  %v2446_v51 = vld [vmem:[#allocation8 + $0xe0] sm:$0xff]  ;;  %v2461_v7 = vld [vmem:[#allocation8 + $0x158] sm:$0xff] }
 0x76f   :  { %6048 = vrcp.f32 %v1868_v13  ;;  %v5392_v13 = vpack.c.bf16 %v2138_v4, %v2135_v61  ;;  %v6920_v61 = vpack.c.bf16 %v2446_v51, %v2443_v29  ;;  %v2442_v4 = vld [vmem:[#allocation8 + $0xc0] sm:$0xff]  ;;  %v2465_v29 = vld [vmem:[#allocation8 + $0x178] sm:$0xff] }
 0x778   :  { %v6047_v30 = vpop.eup %6046 }
 0x779   :  { %v1878_v41 = vsub.f32 %v6827_v60, %v6047_v30  ;;  %v6049_v18 = vpop.eup %6048 }
 0x77b   :  { %v1879_v38 = vmul.f32 %v6049_v18, %v1878_v41  ;;  %v2134_v41 = vld [vmem:[#allocation6 + $0xf0] sm:$0xff]  ;;  %v2144_v18 = vld [vmem:[#allocation6 + $0x140] sm:$0xff] }
 0x77c   :  { %v5396_v15 = vpack.c.bf16 %v2144_v18, %v2141_v9  ;;  %v2455_v18 = vld [vmem:[#allocation8 + $0x128] sm:$0xff] }
 0x77d   :  { %v6869_v27 = vadd.f32 %v6047_v30, %v1879_v38  ;;  %v5424_v30 = vpack.c.bf16 %v2139_v12, %v2136_v20  ;;  %v5394_v38 = vpack.c.bf16 %v2137_v8, %v2134_v41  ;;  %v2445_v20 = vld [vmem:[#allocation8 + $0xd8] sm:$0xff]  ;;  %v2448_v41 = vld [vmem:[#allocation8 + $0xf0] sm:$0xff]  ;;  %v2451_v8 = vld [vmem:[#allocation8 + $0x108] sm:$0xff] }
 0x77e   :  { %v6922_v12 = vpack.c.bf16 %v2445_v20, %v2442_v4  ;;  %v6928_v9 = vpack.c.bf16 %v2451_v8, %v2448_v41 }
 0x77f   :  { %1995 = vmatmul.mubr.f32.vlgmr.msra.gmra.mrb[14].mxu0 %v6869_v27  ;;  %4555 = vmatmul.mubr.f32.vlgmr.msra.gmra.mrb[22].mxu1 %v6869_v27 }
 0x780   :  { %5375 = vmatpush1.bf16.msra.mxu0 %v5374_v22  ;;  %5407 = vmatpush3.bf16.msra.mxu1 %v5404_v24  ;;  %v2122_v24 = vld [vmem:[#allocation6 + $0x90] sm:$0xff]  ;;  %v2140_v22 = vld [vmem:[#allocation6 + $0x120] sm:$0xff] }
 0x781   :  { %4589 = vmatprep.mubr.f32.mxu1 %v6559_v62  ;;  %5377 = vmatprep.subr.bf16.mxu0 %v5376_v31  ;;  %v5386_v53 = vpack.c.bf16 %v2125_v28, %v2122_v24  ;;  %v2143_v31 = vld [vmem:[#allocation6 + $0x138] sm:$0xff]  ;;  %v2430_v24 = vld [vmem:[#allocation8 + $0x60] sm:$0xff] }
 0x782   :  { %5409 = vmatprep.subr.bf16.mxu1 %v5408_v56  ;;  %2233 = vmatprep.mubr.f32.mxu0 %v6216_v0  ;;  %v5398_v63 = vpack.c.bf16 %v2143_v31, %v2140_v22  ;;  %v2433_v28 = vld [vmem:[#allocation8 + $0x78] sm:$0xff]  ;;  %v2423_v22 = vld [vmem:[#allocation8 + $0x28] sm:$0xff] }
 0x783   :  { %v6910_v35 = vpack.c.bf16 %v2433_v28, %v2430_v24  ;;  %v2453_v24 = vld [vmem:[#allocation8 + $0x118] sm:$0xff] }
 0x784   :  { %5379 = vmatpush1.bf16.msra.mxu0 %v5378_v14  ;;  %5411 = vmatpush3.bf16.msra.mxu1 %v5408_v56  ;;  %v2151_v56 = vld [vmem:[#allocation6 + $0x178] sm:$0xff]  ;;  %v2146_v14 = vld [vmem:[#allocation6 + $0x150] sm:$0xff] }
 0x785   :  { %5381 = vmatprep.subr.bf16.mxu0 %v5380_v19  ;;  %5413 = vmatprep.subr.bf16.mxu1 %v5412_v21  ;;  %v5432_v3 = vpack.c.bf16 %v2151_v56, %v2148_v42  ;;  %v2149_v19 = vld [vmem:[#allocation6 + $0x168] sm:$0xff]  ;;  %v2464_v42 = vld [vmem:[#allocation8 + $0x170] sm:$0xff] }
 0x786   :  { %v6942_v56 = vpack.c.bf16 %v2464_v42, %v2461_v7 }
 0x788   :  { %5383 = vmatpush1.bf16.msra.mxu0 %v5382_v2  ;;  %5415 = vmatpush3.bf16.msra.mxu1 %v5412_v21  ;;  %v5402_v21 = vpack.c.bf16 %v2149_v19, %v2146_v14  ;;  %v2431_v2 = vld [vmem:[#allocation8 + $0x68] sm:$0xff]  ;;  %v2426_v14 = vld [vmem:[#allocation8 + $0x40] sm:$0xff]  ;;  %v2429_v19 = vld [vmem:[#allocation8 + $0x58] sm:$0xff] }
 0x789   :  { %5385 = vmatprep.subr.bf16.mxu0 %v5384_v6  ;;  %5417 = vmatprep.subr.bf16.mxu1 %v5416_v17  ;;  %v2434_v6 = vld [vmem:[#allocation8 + $0x80] sm:$0xff] }
 0x78c   :  { %5387 = vmatpush1.bf16.msra.mxu0 %v5386_v53  ;;  %5419 = vmatpush3.bf16.msra.mxu1 %v5416_v17  ;;  %v6908_v17 = vpack.c.bf16 %v2434_v6, %v2431_v2  ;;  %v2436_v53 = vld [vmem:[#allocation8 + $0x90] sm:$0xff]  ;;  %v6960_v2 = vpack.c.bf16 %v2447_v55, %v2444_v47  ;;  %v2450_v6 = vld [vmem:[#allocation8 + $0x100] sm:$0xff] }
 0x78d   :  { %5389 = vmatprep.subr.bf16.mxu0 %v5388_v10  ;;  %5421 = vmatprep.subr.bf16.mxu1 %v5420_v26  ;;  %v2439_v10 = vld [vmem:[#allocation8 + $0xa8] sm:$0xff]  ;;  %v6964_v28 = vpack.c.bf16 %v2453_v24, %v2450_v6 }
 0x790   :  { %5391 = vmatpush1.bf16.msra.mxu0 %v5390_v39  ;;  %5423 = vmatpush3.bf16.msra.mxu1 %v5420_v26  ;;  %v6916_v26 = vpack.c.bf16 %v2439_v10, %v2436_v53  ;;  %v2449_v39 = vld [vmem:[#allocation8 + $0xf8] sm:$0xff]  ;;  %v6968_v53 = vpack.c.bf16 %v2459_v23, %v2456_v46  ;;  %v2462_v10 = vld [vmem:[#allocation8 + $0x160] sm:$0xff] }
 0x791   :  { %5393 = vmatprep.subr.bf16.mxu0 %v5392_v13  ;;  %5425 = vmatprep.subr.bf16.mxu1 %v5424_v30  ;;  %v2452_v13 = vld [vmem:[#allocation8 + $0x110] sm:$0xff]  ;;  %v6972_v51 = vpack.c.bf16 %v2465_v29, %v2462_v10 }
 0x794   :  { %5395 = vmatpush1.bf16.msra.mxu0 %v5394_v38  ;;  %5427 = vmatpush3.bf16.msra.mxu1 %v5424_v30  ;;  %v6926_v30 = vpack.c.bf16 %v2452_v13, %v2449_v39  ;;  %v6931_v38 = vpack.c.bf16 %v2458_v59, %v2455_v18 }
 0x795   :  { %5397 = vmatprep.subr.bf16.mxu0 %v5396_v15  ;;  %5429 = vmatprep.subr.bf16.mxu1 %v5428_v16  ;;  %v2457_v15 = vld [vmem:[#allocation8 + $0x138] sm:$0xff] }
 0x796   :  { %v6934_v31 = vpack.c.bf16 %v2457_v15, %v2454_v32 }
 0x798   :  { %5399 = vmatpush1.bf16.msra.mxu0 %v5398_v63  ;;  %5431 = vmatpush3.bf16.msra.mxu1 %v5428_v16  ;;  %v2420_v16 = vld [vmem:[#allocation8 + $0x10] sm:$0xff] }
 0x799   :  { %5401 = vmatprep.subr.bf16.mxu0 %v5400_v57  ;;  %5433 = vmatprep.subr.bf16.mxu1 %v5432_v3  ;;  %v6936_v33 = vpack.c.bf16 %v2423_v22, %v2420_v16  ;;  %v2460_v63 = vld [vmem:[#allocation8 + $0x150] sm:$0xff]  ;;  %v2463_v57 = vld [vmem:[#allocation8 + $0x168] sm:$0xff]  ;;  %v6140_v22 = vld [vmem:[%s7406_s4] ss:$0 sm:$0xff] }
 0x79c   :  { %5403 = vmatpush1.bf16.msra.mxu0 %v5402_v21  ;;  %5435 = vmatpush3.bf16.msra.mxu1 %v5432_v3  ;;  %v6944_v3 = vpack.c.bf16 %v2463_v57, %v2460_v63  ;;  %v6947_v21 = vpack.c.bf16 %v2429_v19, %v2426_v14 }
 0x79d   :  { %5468 = vmatprep.subr.bf16.mxu1 %v6217_v48 }
 0x79f   :  { %2234 = vmatmul.mubr.f32.vlgmr.msra.gmra.mrb[16].mxu0 %v6559_v62  ;;  %4590 = vmatmul.mubr.f32.vlgmr.msra.gmra.mrb[24].mxu1 %v6603_v49  ;;  %v2419_v62 = vld [vmem:[#allocation8 + $0x8] sm:$0xff] }
 0x7a0   :  { %4592 = vmatprep.mubr.f32.mxu1 %v6646_v54  ;;  %2239 = vmatprep.mubr.f32.mxu0 %v6216_v0 }
 0x7a1   :  { %5470 = vmatpush3.bf16.msra.mxu1 %v6936_v33 }
 0x7a2   :  { %5471 = vmatprep.subr.bf16.mxu1 %v6217_v48 }
 0x7a3   :  { %2240 = vmatmul.mubr.f32.gmra.mrb[18].mxu0 %v6603_v49  ;;  %4593 = vmatmul.mubr.f32.gmra.mrb[26].mxu1 %v6731_v50  ;;  %v2422_v49 = vld [vmem:[#allocation8 + $0x20] sm:$0xff] }
 0x7a4   :  { %4595 = vmatprep.mubr.f32.mxu1 %v6783_v25  ;;  %2245 = vmatprep.mubr.f32.mxu0 %v6216_v0 }
 0x7a5   :  { %5473 = vmatpush3.bf16.msra.mxu1 %v6947_v21 }
 0x7a6   :  { %5474 = vmatprep.subr.bf16.mxu1 %v6217_v48 }
 0x7a7   :  { %2246 = vmatmul.mubr.f32.gmra.mrb[20].mxu0 %v6646_v54  ;;  %4596 = vmatmul.mubr.f32.gmra.mrb[28].mxu1 %v6827_v60  ;;  %v6896_v54 = vpack.c.bf16 %v2422_v49, %v2419_v62  ;;  %v2432_v62 = vld [vmem:[#allocation8 + $0x70] sm:$0xff]  ;;  %v2435_v49 = vld [vmem:[#allocation8 + $0x88] sm:$0xff] }
 0x7a8   :  { %4598 = vmatprep.mubr.f32.mxu1 %v6869_v27  ;;  %2251 = vmatprep.mubr.f32.mxu0 %v6216_v0 }
 0x7a9   :  { %5437 = vmatprep.subr.bf16.mxu0 %v6896_v54 }
 0x7ab   :  { %2252 = vmatmul.mubr.f32.gmra.mrb[22].mxu0 %v6731_v50  ;;  %v2421_v50 = vld [vmem:[#allocation8 + $0x18] sm:$0xff] }
 0x7ac   :  { %2257 = vmatprep.mubr.f32.mxu0 %v6216_v0  ;;  %v6898_v43 = vpack.c.bf16 %v2421_v50, %v2418_v34  ;;  %v2438_v34 = vld [vmem:[#allocation8 + $0xa0] sm:$0xff]  ;;  %v6953_v50 = vpack.c.bf16 %v2435_v49, %v2432_v62 }
 0x7ae   :  { %5439 = vmatpush1.bf16.msra.mxu0 %v6898_v43  ;;  %5476 = vmatpush3.bf16.msra.mxu1 %v6953_v50 }
 0x7af   :  { %2258 = vmatmul.mubr.f32.gmra.mrb[24].mxu0 %v6783_v25  ;;  %v2425_v25 = vld [vmem:[#allocation8 + $0x38] sm:$0xff]  ;;  %5477 = vmatprep.subr.bf16.mxu1 %v6217_v48 }
 0x7b0   :  { %2263 = vmatprep.mubr.f32.mxu0 %v6216_v0 }
 0x7b3   :  { %2264 = vmatmul.mubr.f32.gmra.mrb[26].mxu0 %v6827_v60  ;;  %v2428_v60 = vld [vmem:[#allocation8 + $0x50] sm:$0xff] }
 0x7b4   :  { %2269 = vmatprep.mubr.f32.mxu0 %v6216_v0  ;;  %v6902_v40 = vpack.c.bf16 %v2428_v60, %v2425_v25  ;;  %v2441_v25 = vld [vmem:[#allocation8 + $0xb8] sm:$0xff] }
 0x7b5   :  { %v6956_v60 = vpack.c.bf16 %v2441_v25, %v2438_v34 }
 0x7b6   :  { %5441 = vmatprep.subr.bf16.mxu0 %v6902_v40 }
 0x7b7   :  { %2270 = vmatmul.mubr.f32.gmra.mrb[28].mxu0 %v6869_v27  ;;  %5479 = vmatpush3.bf16.msra.mxu1 %v6956_v60 }
 0x7b8   :  { %2275 = vmatprep.mubr.f32.mxu0 %v6216_v0  ;;  %5443 = vmatpush1.bf16.msra.mxu0 %v6904_v44 }
 0x7b9   :  { %5445 = vmatprep.subr.bf16.mxu0 %v6908_v17  ;;  %5480 = vmatprep.subr.bf16.mxu1 %v6217_v48 }
 0x7bb   :  { %5482 = vmatpush3.bf16.msra.mxu1 %v6960_v2 }
 0x7bc   :  { %5447 = vmatpush1.bf16.msra.mxu0 %v6910_v35  ;;  %5483 = vmatprep.subr.bf16.mxu1 %v6217_v48 }
 0x7bd   :  { %5449 = vmatprep.subr.bf16.mxu0 %v6914_v45 }
 0x7bf   :  { %5485 = vmatpush3.bf16.msra.mxu1 %v6964_v28 }
 0x7c0   :  { %5451 = vmatpush1.bf16.msra.mxu0 %v6916_v26  ;;  %5486 = vmatprep.subr.bf16.mxu1 %v6217_v48 }
 0x7c1   :  { %5453 = vmatprep.subr.bf16.mxu0 %v6920_v61 }
 0x7c3   :  { %5488 = vmatpush3.bf16.msra.mxu1 %v6968_v53 }
 0x7c4   :  { %5455 = vmatpush1.bf16.msra.mxu0 %v6922_v12  ;;  %5489 = vmatprep.subr.bf16.mxu1 %v6217_v48 }
 0x7c5   :  { %5457 = vmatprep.subr.bf16.mxu0 %v6926_v30 }
 0x7c7   :  { %5491 = vmatpush3.bf16.msra.mxu1 %v6972_v51 }
 0x7c8   :  { %5459 = vmatpush1.bf16.msra.mxu0 %v6928_v9  ;;  %5524 = vmatprep.subr.bf16.mxu1 %v6217_v48 }
 0x7c9   :  { %5461 = vmatprep.subr.bf16.mxu0 %v6931_v38 }
 0x7cc   :  { %5463 = vmatpush1.bf16.msra.mxu0 %v6934_v31 }
 0x7cd   :  { %5465 = vmatprep.subr.bf16.mxu0 %v6942_v56 }
 0x7d0   :  { %5467 = vmatpush1.bf16.msra.mxu0 %v6944_v3 }
 0x7d1   :  { %5493 = vmatprep.subr.bf16.mxu0 %v6896_v54 }
 0x852   :  { %v1996_v4 = vpop.f32.mrb[14].mxu0  ;;  %v2067_v20 = vpop.f32.mrb[22].mxu1 }
 0x853   :  { %v5922_v39 = vadd.f32 %v1996_v4, %v6538_v58  ;;  %v1998_v13 = vpop.f32.mrb[15].mxu0  ;;  %v4556_v41 = vpop.f32.mrb[23].mxu1  ;;  %v2088_v7 = vadd.f32 %v6140_v22, %v2067_v20 }
 0x854   :  { %v5923_v18 = vadd.f32 %v1998_v13, %v6550_v11 }
 0x855   :  { %v3918_v8 = vmul.f32 -1.442695, %v5922_v39 }
 0x856   :  { %v3919_v59 = vmul.f32 -1.442695, %v5923_v18 }
 0x857   :  { %6050 = vpow2.f32 %v3918_v8 }
 0x858   :  { %6052 = vpow2.f32 %v3919_v59 }
 0x861   :  { %v6051_v32 = vpop.eup %6050 }
 0x862   :  { %v2081_v15 = vadd.f32 1.0, %v6051_v32  ;;  %v6053_v16 = vpop.eup %6052 }
 0x863   :  { %v2082_v57 = vadd.f32 1.0, %v6053_v16 }
 0x864   :  { %6054 = vrcp.f32 %v2081_v15 }
 0x86e   :  { %v6055_v42 = vpop.eup %6054 }
 0x86f   :  { %v2089_v63 = vmul.f32 %v6055_v42, %v2088_v7 }
 0x871   :  { %v2090_v58 = vadd.f32 %v2089_v63, %v6542_v1 }
 0x872   :  { %v6983_v14 = vpop.f32.mrb[24].mxu1 }
 0x873   :  { %6056 = vtanh.f32 %v2090_v58  ;;  %v6985_v11 = vpop.f32.mrb[25].mxu1 }
 0x874   :  { %6058 = vrcp.f32 %v2082_v57 }
 0x876   :  { %v6987_v19 = vpop.f32.mrb[26].mxu1 }
 0x877   :  { %v6989_v62 = vpop.f32.mrb[27].mxu1 }
 0x87a   :  { %v6991_v49 = vpop.f32.mrb[28].mxu1 }
 0x87b   :  { %v6993_v34 = vpop.f32.mrb[29].mxu1 }
 0x87d   :  { %v6057_v25 = vpop.eup %6056 }
 0x87e   :  { %v2092_v47 = vsub.f32 %v6869_v27, %v6057_v25  ;;  %v6059_v55 = vpop.eup %6058  ;;  %v2152_v27 = vld [vmem:[%s7409_s7] sm:$0x7] }
 0x87f   :  { %v7045_v23 = vrot.slane %v2152_v27, %v97_v52  ;;  %v7050_v41 = vrot.slane %v2152_v27, %v101_v5  ;;  %v7056_v52 = vld [vmem:[%s7410_s8] ss:$0 sm:$0xff]  ;;  %v7060_v15 = vrot.slane %v2152_v27, %v105_v37 }
 0x880   :  { %v2093_v1 = vmul.f32 %v6059_v55, %v2092_v47 }
 0x881   :  { %v2349_v7 = vadd.f32 %v6985_v11, %v7060_v15 }
 0x882   :  { %v2094_v6 = vadd.f32 %v6057_v25, %v2093_v1 }
 0x884   :  { %2276 = vmatmul.mubr.f32.gmra.mrb[30].mxu0 %v2094_v6  ;;  %4599 = vmatmul.mubr.f32.gmra.mrb[30].mxu1 %v2094_v6 }
 0x885   :  { %2530 = vmatprep.mubr.f32.mxu0 %v6216_v0  ;;  %4633 = vmatprep.mubr.msk.f32.mxu1 %vm6218_vm1, %v6216_v0 }
 0x888   :  { %2531 = vmatmul.mubr.f32.vlgmr.msra.gmra.mrb[16].mxu0 %v6216_v0  ;;  %4634 = vmatmul.mubr.f32.vlgmr.msra.gmra.mrb[32].mxu1 %v6216_v0 }
 0x889   :  { %5495 = vmatpush1.bf16.msra.mxu0 %v6898_v43  ;;  %5526 = vmatpush3.bf16.msra.mxu1 %v6936_v33 }
 0x88a   :  { %5497 = vmatprep.subr.bf16.mxu0 %v6902_v40  ;;  %5527 = vmatprep.subr.bf16.mxu1 %v6217_v48 }
 0x88b   :  { %2695 = vmatprep.mubr.f32.mxu0 %v6216_v0  ;;  %4668 = vmatprep.mubr.msk.f32.mxu1 %vm6218_vm1, %v6216_v0 }
 0x88d   :  { %5499 = vmatpush1.bf16.msra.mxu0 %v6904_v44  ;;  %5529 = vmatpush3.bf16.msra.mxu1 %v6947_v21 }
 0x88e   :  { %5501 = vmatprep.subr.bf16.mxu0 %v6908_v17  ;;  %5530 = vmatprep.subr.bf16.mxu1 %v6217_v48 }
 0x891   :  { %5503 = vmatpush1.bf16.msra.mxu0 %v6910_v35  ;;  %5532 = vmatpush3.bf16.msra.mxu1 %v6953_v50 }
 0x892   :  { %5505 = vmatprep.subr.bf16.mxu0 %v6914_v45  ;;  %5533 = vmatprep.subr.bf16.mxu1 %v6217_v48 }
 0x895   :  { %5507 = vmatpush1.bf16.msra.mxu0 %v6916_v26  ;;  %5535 = vmatpush3.bf16.msra.mxu1 %v6956_v60 }
 0x896   :  { %5509 = vmatprep.subr.bf16.mxu0 %v6920_v61  ;;  %5536 = vmatprep.subr.bf16.mxu1 %v6217_v48 }
 0x899   :  { %5511 = vmatpush1.bf16.msra.mxu0 %v6922_v12  ;;  %5538 = vmatpush3.bf16.msra.mxu1 %v6960_v2 }
 0x89a   :  { %5513 = vmatprep.subr.bf16.mxu0 %v6926_v30  ;;  %5539 = vmatprep.subr.bf16.mxu1 %v6217_v48 }
 0x89d   :  { %5515 = vmatpush1.bf16.msra.mxu0 %v6928_v9  ;;  %5541 = vmatpush3.bf16.msra.mxu1 %v6964_v28 }
 0x89e   :  { %5517 = vmatprep.subr.bf16.mxu0 %v6931_v38  ;;  %5542 = vmatprep.subr.bf16.mxu1 %v6217_v48 }
 0x8a1   :  { %5519 = vmatpush1.bf16.msra.mxu0 %v6934_v31  ;;  %5544 = vmatpush3.bf16.msra.mxu1 %v6968_v53 }
 0x8a2   :  { %5521 = vmatprep.subr.bf16.mxu0 %v6942_v56  ;;  %5545 = vmatprep.subr.bf16.mxu1 %v6217_v48 }
 0x8a5   :  { %5523 = vmatpush1.bf16.msra.mxu0 %v6944_v3  ;;  %5547 = vmatpush3.bf16.msra.mxu1 %v6972_v51 }
 0x8a6   :  { %5549 = vmatprep.subr.bf16.mxu0 %v6896_v54  ;;  %5580 = vmatprep.subr.bf16.mxu1 %v6217_v48 }
 0x957   :  { %v7039_v24 = vpop.f32.mrb[30].mxu1 }
 0x958   :  { %v7041_v46 = vpop.f32.mrb[31].mxu1 }
 0x95b   :  { %v2532_v10 = vpop.f32.mrb[16].mxu0  ;;  %v2603_v29 = vpop.f32.mrb[32].mxu1 }
 0x95c   :  { %v5924_v4 = vadd.f32 %v2532_v10, %v7045_v23  ;;  %v2534_v20 = vpop.f32.mrb[17].mxu0  ;;  %v4635_v39 = vpop.f32.mrb[33].mxu1  ;;  %v2624_v16 = vadd.f32 %v7056_v52, %v2603_v29 }
 0x95d   :  { %v5925_v8 = vadd.f32 %v2534_v20, %v7050_v41 }
 0x95e   :  { %v3921_v13 = vmul.f32 -1.442695, %v5924_v4 }
 0x95f   :  { %v3922_v18 = vmul.f32 -1.442695, %v5925_v8 }
 0x960   :  { %6060 = vpow2.f32 %v3921_v13 }
 0x961   :  { %6062 = vpow2.f32 %v3922_v18 }
 0x96a   :  { %v6061_v59 = vpop.eup %6060 }
 0x96b   :  { %v2617_v32 = vadd.f32 1.0, %v6061_v59  ;;  %v6063_v5 = vpop.eup %6062  ;;  %v2354_v59 = vadd.f32 %v6983_v14, %v7060_v15 }
 0x96c   :  { %v2618_v63 = vadd.f32 1.0, %v6063_v5 }
 0x96d   :  { %6064 = vrcp.f32 %v2617_v32 }
 0x977   :  { %v6065_v22 = vpop.eup %6064 }
 0x978   :  { %v2625_v42 = vmul.f32 %v6065_v22, %v2624_v16 }
 0x97a   :  { %v2626_v58 = vadd.f32 %v2625_v42, %v2349_v7 }
 0x97c   :  { %6066 = vtanh.f32 %v2626_v58 }
 0x97d   :  { %6068 = vrcp.f32 %v2618_v63 }
 0x986   :  { %v6067_v57 = vpop.eup %6066 }
 0x987   :  { %v2628_v25 = vsub.f32 0.0, %v6067_v57  ;;  %v6069_v47 = vpop.eup %6068 }
 0x989   :  { %v2629_v55 = vmul.f32 %v6069_v47, %v2628_v25 }
 0x98b   :  { %v7065_v1 = vadd.f32 %v6067_v57, %v2629_v55 }
 0x98d   :  { %2696 = vmatmul.mubr.f32.vlgmr.msra.gmra.mrb[18].mxu0 %v7065_v1  ;;  %4669 = vmatmul.mubr.f32.vlgmr.msra.gmra.mrb[34].mxu1 %v7065_v1 }
 0x98e   :  { %5551 = vmatpush1.bf16.msra.mxu0 %v6898_v43  ;;  %5582 = vmatpush3.bf16.msra.mxu1 %v6936_v33 }
 0x98f   :  { %5553 = vmatprep.subr.bf16.mxu0 %v6902_v40  ;;  %5583 = vmatprep.subr.bf16.mxu1 %v6217_v48 }
 0x990   :  { %2860 = vmatprep.mubr.f32.mxu0 %v6216_v0  ;;  %4703 = vmatprep.mubr.msk.f32.mxu1 %vm6218_vm1, %v6216_v0 }
 0x992   :  { %5555 = vmatpush1.bf16.msra.mxu0 %v6904_v44  ;;  %5585 = vmatpush3.bf16.msra.mxu1 %v6947_v21 }
 0x993   :  { %5557 = vmatprep.subr.bf16.mxu0 %v6908_v17  ;;  %5586 = vmatprep.subr.bf16.mxu1 %v6217_v48 }
 0x996   :  { %5559 = vmatpush1.bf16.msra.mxu0 %v6910_v35  ;;  %5588 = vmatpush3.bf16.msra.mxu1 %v6953_v50 }
 0x997   :  { %5561 = vmatprep.subr.bf16.mxu0 %v6914_v45  ;;  %5589 = vmatprep.subr.bf16.mxu1 %v6217_v48 }
 0x99a   :  { %5563 = vmatpush1.bf16.msra.mxu0 %v6916_v26  ;;  %5591 = vmatpush3.bf16.msra.mxu1 %v6956_v60 }
 0x99b   :  { %5565 = vmatprep.subr.bf16.mxu0 %v6920_v61  ;;  %5592 = vmatprep.subr.bf16.mxu1 %v6217_v48 }
 0x99e   :  { %5567 = vmatpush1.bf16.msra.mxu0 %v6922_v12  ;;  %5594 = vmatpush3.bf16.msra.mxu1 %v6960_v2 }
 0x99f   :  { %5569 = vmatprep.subr.bf16.mxu0 %v6926_v30  ;;  %5595 = vmatprep.subr.bf16.mxu1 %v6217_v48 }
 0x9a2   :  { %5571 = vmatpush1.bf16.msra.mxu0 %v6928_v9  ;;  %5597 = vmatpush3.bf16.msra.mxu1 %v6964_v28 }
 0x9a3   :  { %5573 = vmatprep.subr.bf16.mxu0 %v6931_v38  ;;  %5598 = vmatprep.subr.bf16.mxu1 %v6217_v48 }
 0x9a6   :  { %5575 = vmatpush1.bf16.msra.mxu0 %v6934_v31  ;;  %5600 = vmatpush3.bf16.msra.mxu1 %v6968_v53 }
 0x9a7   :  { %5577 = vmatprep.subr.bf16.mxu0 %v6942_v56  ;;  %5601 = vmatprep.subr.bf16.mxu1 %v6217_v48 }
 0x9aa   :  { %5579 = vmatpush1.bf16.msra.mxu0 %v6944_v3  ;;  %5603 = vmatpush3.bf16.msra.mxu1 %v6972_v51 }
 0x9ab   :  { %5605 = vmatprep.subr.bf16.mxu0 %v6896_v54  ;;  %5636 = vmatprep.subr.bf16.mxu1 %v6217_v48 }
 0xa60   :  { %v2697_v36 = vpop.f32.mrb[18].mxu0  ;;  %v2768_v37 = vpop.f32.mrb[34].mxu1 }
 0xa61   :  { %v5926_v11 = vadd.f32 %v2697_v36, %v7045_v23  ;;  %v2699_v6 = vpop.f32.mrb[19].mxu0  ;;  %v4670_v27 = vpop.f32.mrb[35].mxu1  ;;  %v2789_v8 = vadd.f32 %v7056_v52, %v2768_v37 }
 0xa62   :  { %v5927_v29 = vadd.f32 %v2699_v6, %v7050_v41 }
 0xa63   :  { %v3923_v10 = vmul.f32 -1.442695, %v5926_v11 }
 0xa64   :  { %v3924_v4 = vmul.f32 -1.442695, %v5927_v29 }
 0xa65   :  { %6070 = vpow2.f32 %v3923_v10 }
 0xa66   :  { %6072 = vpow2.f32 %v3924_v4  ;;  %v2359_v4 = vadd.f32 %v6989_v62, %v7060_v15 }
 0xa6f   :  { %v6071_v20 = vpop.eup %6070 }
 0xa70   :  { %v2782_v39 = vadd.f32 1.0, %v6071_v20  ;;  %v6073_v13 = vpop.eup %6072 }
 0xa71   :  { %v2783_v5 = vadd.f32 1.0, %v6073_v13 }
 0xa72   :  { %6074 = vrcp.f32 %v2782_v39 }
 0xa7c   :  { %v6075_v18 = vpop.eup %6074 }
 0xa7d   :  { %v2790_v32 = vmul.f32 %v6075_v18, %v2789_v8 }
 0xa7f   :  { %v2791_v16 = vadd.f32 %v2790_v32, %v2354_v59 }
 0xa81   :  { %6076 = vtanh.f32 %v2791_v16 }
 0xa82   :  { %6078 = vrcp.f32 %v2783_v5 }
 0xa8b   :  { %v6077_v22 = vpop.eup %6076 }
 0xa8c   :  { %v2793_v7 = vsub.f32 %v7065_v1, %v6077_v22  ;;  %v6079_v42 = vpop.eup %6078 }
 0xa8e   :  { %v2794_v63 = vmul.f32 %v6079_v42, %v2793_v7 }
 0xa90   :  { %v7110_v58 = vadd.f32 %v6077_v22, %v2794_v63 }
 0xa92   :  { %2861 = vmatmul.mubr.f32.vlgmr.msra.gmra.mrb[20].mxu0 %v7110_v58  ;;  %4704 = vmatmul.mubr.f32.vlgmr.msra.gmra.mrb[36].mxu1 %v7110_v58 }
 0xa93   :  { %5607 = vmatpush1.bf16.msra.mxu0 %v6898_v43  ;;  %5638 = vmatpush3.bf16.msra.mxu1 %v6936_v33 }
 0xa94   :  { %5609 = vmatprep.subr.bf16.mxu0 %v6902_v40  ;;  %5639 = vmatprep.subr.bf16.mxu1 %v6217_v48 }
 0xa95   :  { %3025 = vmatprep.mubr.f32.mxu0 %v6216_v0  ;;  %4738 = vmatprep.mubr.msk.f32.mxu1 %vm6218_vm1, %v6216_v0 }
 0xa97   :  { %5611 = vmatpush1.bf16.msra.mxu0 %v6904_v44  ;;  %5641 = vmatpush3.bf16.msra.mxu1 %v6947_v21 }
 0xa98   :  { %5613 = vmatprep.subr.bf16.mxu0 %v6908_v17  ;;  %5642 = vmatprep.subr.bf16.mxu1 %v6217_v48 }
 0xa9b   :  { %5615 = vmatpush1.bf16.msra.mxu0 %v6910_v35  ;;  %5644 = vmatpush3.bf16.msra.mxu1 %v6953_v50 }
 0xa9c   :  { %5617 = vmatprep.subr.bf16.mxu0 %v6914_v45  ;;  %5645 = vmatprep.subr.bf16.mxu1 %v6217_v48 }
 0xa9f   :  { %5619 = vmatpush1.bf16.msra.mxu0 %v6916_v26  ;;  %5647 = vmatpush3.bf16.msra.mxu1 %v6956_v60 }
 0xaa0   :  { %5621 = vmatprep.subr.bf16.mxu0 %v6920_v61  ;;  %5648 = vmatprep.subr.bf16.mxu1 %v6217_v48 }
 0xaa3   :  { %5623 = vmatpush1.bf16.msra.mxu0 %v6922_v12  ;;  %5650 = vmatpush3.bf16.msra.mxu1 %v6960_v2 }
 0xaa4   :  { %5625 = vmatprep.subr.bf16.mxu0 %v6926_v30  ;;  %5651 = vmatprep.subr.bf16.mxu1 %v6217_v48 }
 0xaa7   :  { %5627 = vmatpush1.bf16.msra.mxu0 %v6928_v9  ;;  %5653 = vmatpush3.bf16.msra.mxu1 %v6964_v28 }
 0xaa8   :  { %5629 = vmatprep.subr.bf16.mxu0 %v6931_v38  ;;  %5654 = vmatprep.subr.bf16.mxu1 %v6217_v48 }
 0xaab   :  { %5631 = vmatpush1.bf16.msra.mxu0 %v6934_v31  ;;  %5656 = vmatpush3.bf16.msra.mxu1 %v6968_v53 }
 0xaac   :  { %5633 = vmatprep.subr.bf16.mxu0 %v6942_v56  ;;  %5657 = vmatprep.subr.bf16.mxu1 %v6217_v48 }
 0xaaf   :  { %5635 = vmatpush1.bf16.msra.mxu0 %v6944_v3  ;;  %5659 = vmatpush3.bf16.msra.mxu1 %v6972_v51 }
 0xab0   :  { %5661 = vmatprep.subr.bf16.mxu0 %v6896_v54  ;;  %5692 = vmatprep.subr.bf16.mxu1 %v6217_v48 }
 0xb65   :  { %v2862_v14 = vpop.f32.mrb[20].mxu0  ;;  %v2933_v57 = vpop.f32.mrb[36].mxu1 }
 0xb66   :  { %v5928_v25 = vadd.f32 %v2862_v14, %v7045_v23  ;;  %v2864_v47 = vpop.f32.mrb[21].mxu0  ;;  %v4705_v55 = vpop.f32.mrb[37].mxu1  ;;  %v2954_v10 = vadd.f32 %v7056_v52, %v2933_v57 }
 0xb67   :  { %v5929_v36 = vadd.f32 %v2864_v47, %v7050_v41 }
 0xb68   :  { %v3925_v1 = vmul.f32 -1.442695, %v5928_v25 }
 0xb69   :  { %v3926_v37 = vmul.f32 -1.442695, %v5929_v36  ;;  %v2364_v36 = vadd.f32 %v6987_v19, %v7060_v15 }
 0xb6a   :  { %6080 = vpow2.f32 %v3925_v1 }
 0xb6b   :  { %6082 = vpow2.f32 %v3926_v37 }
 0xb74   :  { %v6081_v11 = vpop.eup %6080 }
 0xb75   :  { %v2947_v6 = vadd.f32 1.0, %v6081_v11  ;;  %v6083_v27 = vpop.eup %6082 }
 0xb76   :  { %v2948_v13 = vadd.f32 1.0, %v6083_v27 }
 0xb77   :  { %6084 = vrcp.f32 %v2947_v6 }
 0xb81   :  { %v6085_v29 = vpop.eup %6084 }
 0xb82   :  { %v2955_v20 = vmul.f32 %v6085_v29, %v2954_v10 }
 0xb84   :  { %v2956_v39 = vadd.f32 %v2955_v20, %v2359_v4 }
 0xb86   :  { %6086 = vtanh.f32 %v2956_v39 }
 0xb87   :  { %6088 = vrcp.f32 %v2948_v13 }
 0xb90   :  { %v6087_v8 = vpop.eup %6086 }
 0xb91   :  { %v2958_v18 = vsub.f32 %v7110_v58, %v6087_v8  ;;  %v6089_v59 = vpop.eup %6088 }
 0xb93   :  { %v2959_v32 = vmul.f32 %v6089_v59, %v2958_v18 }
 0xb95   :  { %v7155_v16 = vadd.f32 %v6087_v8, %v2959_v32 }
 0xb97   :  { %3026 = vmatmul.mubr.f32.vlgmr.msra.gmra.mrb[22].mxu0 %v7155_v16  ;;  %4739 = vmatmul.mubr.f32.vlgmr.msra.gmra.mrb[38].mxu1 %v7155_v16 }
 0xb98   :  { %5663 = vmatpush1.bf16.msra.mxu0 %v6898_v43  ;;  %5694 = vmatpush3.bf16.msra.mxu1 %v6936_v33 }
 0xb99   :  { %5665 = vmatprep.subr.bf16.mxu0 %v6902_v40  ;;  %5695 = vmatprep.subr.bf16.mxu1 %v6217_v48 }
 0xb9a   :  { %3190 = vmatprep.mubr.f32.mxu0 %v6216_v0  ;;  %4773 = vmatprep.mubr.msk.f32.mxu1 %vm6218_vm1, %v6216_v0 }
 0xb9c   :  { %5667 = vmatpush1.bf16.msra.mxu0 %v6904_v44  ;;  %5697 = vmatpush3.bf16.msra.mxu1 %v6947_v21 }
 0xb9d   :  { %5669 = vmatprep.subr.bf16.mxu0 %v6908_v17  ;;  %5698 = vmatprep.subr.bf16.mxu1 %v6217_v48 }
 0xba0   :  { %5671 = vmatpush1.bf16.msra.mxu0 %v6910_v35  ;;  %5700 = vmatpush3.bf16.msra.mxu1 %v6953_v50 }
 0xba1   :  { %5673 = vmatprep.subr.bf16.mxu0 %v6914_v45  ;;  %5701 = vmatprep.subr.bf16.mxu1 %v6217_v48 }
 0xba4   :  { %5675 = vmatpush1.bf16.msra.mxu0 %v6916_v26  ;;  %5703 = vmatpush3.bf16.msra.mxu1 %v6956_v60 }
 0xba5   :  { %5677 = vmatprep.subr.bf16.mxu0 %v6920_v61  ;;  %5704 = vmatprep.subr.bf16.mxu1 %v6217_v48 }
 0xba8   :  { %5679 = vmatpush1.bf16.msra.mxu0 %v6922_v12  ;;  %5706 = vmatpush3.bf16.msra.mxu1 %v6960_v2 }
 0xba9   :  { %5681 = vmatprep.subr.bf16.mxu0 %v6926_v30  ;;  %5707 = vmatprep.subr.bf16.mxu1 %v6217_v48 }
 0xbac   :  { %5683 = vmatpush1.bf16.msra.mxu0 %v6928_v9  ;;  %5709 = vmatpush3.bf16.msra.mxu1 %v6964_v28 }
 0xbad   :  { %5685 = vmatprep.subr.bf16.mxu0 %v6931_v38  ;;  %5710 = vmatprep.subr.bf16.mxu1 %v6217_v48 }
 0xbb0   :  { %5687 = vmatpush1.bf16.msra.mxu0 %v6934_v31  ;;  %5712 = vmatpush3.bf16.msra.mxu1 %v6968_v53 }
 0xbb1   :  { %5689 = vmatprep.subr.bf16.mxu0 %v6942_v56  ;;  %5713 = vmatprep.subr.bf16.mxu1 %v6217_v48 }
 0xbb4   :  { %5691 = vmatpush1.bf16.msra.mxu0 %v6944_v3  ;;  %5715 = vmatpush3.bf16.msra.mxu1 %v6972_v51 }
 0xbb5   :  { %5717 = vmatprep.subr.bf16.mxu0 %v6896_v54  ;;  %5748 = vmatprep.subr.bf16.mxu1 %v6217_v48 }
 0xc6a   :  { %v3027_v62 = vpop.f32.mrb[22].mxu0  ;;  %v3098_v5 = vpop.f32.mrb[38].mxu1 }
 0xc6b   :  { %v5930_v22 = vadd.f32 %v3027_v62, %v7045_v23  ;;  %v3029_v7 = vpop.f32.mrb[23].mxu0  ;;  %v4740_v42 = vpop.f32.mrb[39].mxu1  ;;  %v3119_v55 = vadd.f32 %v7056_v52, %v3098_v5 }
 0xc6c   :  { %v5931_v58 = vadd.f32 %v3029_v7, %v7050_v41 }
 0xc6d   :  { %v3927_v63 = vmul.f32 -1.442695, %v5930_v22 }
 0xc6e   :  { %v3928_v14 = vmul.f32 -1.442695, %v5931_v58 }
 0xc6f   :  { %6090 = vpow2.f32 %v3927_v63  ;;  %v2369_v63 = vadd.f32 %v6993_v34, %v7060_v15 }
 0xc70   :  { %6092 = vpow2.f32 %v3928_v14 }
 0xc79   :  { %v6091_v57 = vpop.eup %6090 }
 0xc7a   :  { %v3112_v25 = vadd.f32 1.0, %v6091_v57  ;;  %v6093_v47 = vpop.eup %6092 }
 0xc7b   :  { %v3113_v6 = vadd.f32 1.0, %v6093_v47 }
 0xc7c   :  { %6094 = vrcp.f32 %v3112_v25 }
 0xc86   :  { %v6095_v1 = vpop.eup %6094 }
 0xc87   :  { %v3120_v37 = vmul.f32 %v6095_v1, %v3119_v55 }
 0xc89   :  { %v3121_v11 = vadd.f32 %v3120_v37, %v2364_v36 }
 0xc8b   :  { %6096 = vtanh.f32 %v3121_v11 }
 0xc8c   :  { %6098 = vrcp.f32 %v3113_v6 }
 0xc95   :  { %v6097_v27 = vpop.eup %6096 }
 0xc96   :  { %v3123_v10 = vsub.f32 %v7155_v16, %v6097_v27  ;;  %v6099_v29 = vpop.eup %6098 }
 0xc98   :  { %v3124_v4 = vmul.f32 %v6099_v29, %v3123_v10 }
 0xc9a   :  { %v7200_v20 = vadd.f32 %v6097_v27, %v3124_v4 }
 0xc9c   :  { %3191 = vmatmul.mubr.f32.vlgmr.msra.gmra.mrb[24].mxu0 %v7200_v20  ;;  %4774 = vmatmul.mubr.f32.vlgmr.msra.gmra.mrb[40].mxu1 %v7200_v20 }
 0xc9d   :  { %5719 = vmatpush1.bf16.msra.mxu0 %v6898_v43  ;;  %5750 = vmatpush3.bf16.msra.mxu1 %v6936_v33 }
 0xc9e   :  { %5721 = vmatprep.subr.bf16.mxu0 %v6902_v40  ;;  %5751 = vmatprep.subr.bf16.mxu1 %v6217_v48 }
 0xc9f   :  { %3355 = vmatprep.mubr.f32.mxu0 %v6216_v0  ;;  %4808 = vmatprep.mubr.msk.f32.mxu1 %vm6218_vm1, %v6216_v0 }
 0xca1   :  { %5723 = vmatpush1.bf16.msra.mxu0 %v6904_v44  ;;  %5753 = vmatpush3.bf16.msra.mxu1 %v6947_v21 }
 0xca2   :  { %5725 = vmatprep.subr.bf16.mxu0 %v6908_v17  ;;  %5754 = vmatprep.subr.bf16.mxu1 %v6217_v48 }
 0xca5   :  { %5727 = vmatpush1.bf16.msra.mxu0 %v6910_v35  ;;  %5756 = vmatpush3.bf16.msra.mxu1 %v6953_v50 }
 0xca6   :  { %5729 = vmatprep.subr.bf16.mxu0 %v6914_v45  ;;  %5757 = vmatprep.subr.bf16.mxu1 %v6217_v48 }
 0xca9   :  { %5731 = vmatpush1.bf16.msra.mxu0 %v6916_v26  ;;  %5759 = vmatpush3.bf16.msra.mxu1 %v6956_v60 }
 0xcaa   :  { %5733 = vmatprep.subr.bf16.mxu0 %v6920_v61  ;;  %5760 = vmatprep.subr.bf16.mxu1 %v6217_v48 }
 0xcad   :  { %5735 = vmatpush1.bf16.msra.mxu0 %v6922_v12  ;;  %5762 = vmatpush3.bf16.msra.mxu1 %v6960_v2 }
 0xcae   :  { %5737 = vmatprep.subr.bf16.mxu0 %v6926_v30  ;;  %5763 = vmatprep.subr.bf16.mxu1 %v6217_v48 }
 0xcb1   :  { %5739 = vmatpush1.bf16.msra.mxu0 %v6928_v9  ;;  %5765 = vmatpush3.bf16.msra.mxu1 %v6964_v28 }
 0xcb2   :  { %5741 = vmatprep.subr.bf16.mxu0 %v6931_v38  ;;  %5766 = vmatprep.subr.bf16.mxu1 %v6217_v48 }
 0xcb5   :  { %5743 = vmatpush1.bf16.msra.mxu0 %v6934_v31  ;;  %5768 = vmatpush3.bf16.msra.mxu1 %v6968_v53 }
 0xcb6   :  { %5745 = vmatprep.subr.bf16.mxu0 %v6942_v56  ;;  %5769 = vmatprep.subr.bf16.mxu1 %v6217_v48 }
 0xcb9   :  { %5747 = vmatpush1.bf16.msra.mxu0 %v6944_v3  ;;  %5771 = vmatpush3.bf16.msra.mxu1 %v6972_v51 }
 0xcba   :  { %5773 = vmatprep.subr.bf16.mxu0 %v6896_v54  ;;  %5804 = vmatprep.subr.bf16.mxu1 %v6217_v48 }
 0xd6f   :  { %v3192_v19 = vpop.f32.mrb[24].mxu0  ;;  %v3263_v39 = vpop.f32.mrb[40].mxu1 }
 0xd70   :  { %v5932_v13 = vadd.f32 %v3192_v19, %v7045_v23  ;;  %v3194_v8 = vpop.f32.mrb[25].mxu0  ;;  %v4775_v18 = vpop.f32.mrb[41].mxu1  ;;  %v3284_v7 = vadd.f32 %v7056_v52, %v3263_v39 }
 0xd71   :  { %v5933_v32 = vadd.f32 %v3194_v8, %v7050_v41  ;;  %v2374_v8 = vadd.f32 %v6991_v49, %v7060_v15  ;;  %v3787_v49 = vld [vmem:[%s7411_s9 + $0x8] sm:$0xff] }
 0xd72   :  { %v3929_v59 = vmul.f32 -1.442695, %v5932_v13 }
 0xd73   :  { %v3930_v16 = vmul.f32 -1.442695, %v5933_v32 }
 0xd74   :  { %6100 = vpow2.f32 %v3929_v59 }
 0xd75   :  { %6102 = vpow2.f32 %v3930_v16 }
 0xd7e   :  { %v6101_v62 = vpop.eup %6100 }
 0xd7f   :  { %v3277_v5 = vadd.f32 1.0, %v6101_v62  ;;  %v6103_v22 = vpop.eup %6102 }
 0xd80   :  { %v3278_v57 = vadd.f32 1.0, %v6103_v22 }
 0xd81   :  { %6104 = vrcp.f32 %v3277_v5 }
 0xd8b   :  { %v6105_v42 = vpop.eup %6104 }
 0xd8c   :  { %v3285_v58 = vmul.f32 %v6105_v42, %v3284_v7  ;;  %v3788_v42 = vld [vmem:[%s7411_s9 + $0x10] sm:$0xff] }
 0xd8e   :  { %v3286_v14 = vadd.f32 %v3285_v58, %v2369_v63  ;;  %v3790_v58 = vld [vmem:[%s7411_s9 + $0x20] sm:$0xff] }
 0xd90   :  { %6106 = vtanh.f32 %v3286_v14  ;;  %v3791_v14 = vld [vmem:[%s7411_s9 + $0x28] sm:$0xff] }
 0xd91   :  { %6108 = vrcp.f32 %v3278_v57  ;;  %v5891_v57 = vpack.c.bf16 %v3791_v14, %v3790_v58 }
 0xd9a   :  { %v6107_v25 = vpop.eup %6106 }
 0xd9b   :  { %v3288_v47 = vsub.f32 %v7200_v20, %v6107_v25  ;;  %v6109_v55 = vpop.eup %6108 }
 0xd9d   :  { %v3289_v1 = vmul.f32 %v6109_v55, %v3288_v47  ;;  %v3793_v47 = vld [vmem:[%s7411_s9 + $0x38] sm:$0xff] }
 0xd9f   :  { %v7245_v36 = vadd.f32 %v6107_v25, %v3289_v1  ;;  %v3792_v25 = vld [vmem:[%s7411_s9 + $0x30] sm:$0xff]  ;;  %v3794_v1 = vld [vmem:[%s7411_s9 + $0x40] sm:$0xff] }
 0xda0   :  { %v5894_v55 = vpack.c.bf16 %v3793_v47, %v3792_v25 }
 0xda1   :  { %3356 = vmatmul.mubr.f32.vlgmr.msra.gmra.mrb[26].mxu0 %v7245_v36  ;;  %4809 = vmatmul.mubr.f32.vlgmr.msra.gmra.mrb[42].mxu1 %v7245_v36 }
 0xda2   :  { %5775 = vmatpush1.bf16.msra.mxu0 %v6898_v43  ;;  %5806 = vmatpush3.bf16.msra.mxu1 %v6936_v33 }
 0xda3   :  { %5777 = vmatprep.subr.bf16.mxu0 %v6902_v40  ;;  %5807 = vmatprep.subr.bf16.mxu1 %v6217_v48 }
 0xda4   :  { %3520 = vmatprep.mubr.f32.mxu0 %v6216_v0  ;;  %4843 = vmatprep.mubr.msk.f32.mxu1 %vm6218_vm1, %v6216_v0 }
 0xda6   :  { %5779 = vmatpush1.bf16.msra.mxu0 %v6904_v44  ;;  %5809 = vmatpush3.bf16.msra.mxu1 %v6947_v21 }
 0xda7   :  { %5781 = vmatprep.subr.bf16.mxu0 %v6908_v17  ;;  %5810 = vmatprep.subr.bf16.mxu1 %v6217_v48 }
 0xdaa   :  { %5783 = vmatpush1.bf16.msra.mxu0 %v6910_v35  ;;  %5812 = vmatpush3.bf16.msra.mxu1 %v6953_v50 }
 0xdab   :  { %5785 = vmatprep.subr.bf16.mxu0 %v6914_v45  ;;  %5813 = vmatprep.subr.bf16.mxu1 %v6217_v48 }
 0xdae   :  { %5787 = vmatpush1.bf16.msra.mxu0 %v6916_v26  ;;  %5815 = vmatpush3.bf16.msra.mxu1 %v6956_v60 }
 0xdaf   :  { %5789 = vmatprep.subr.bf16.mxu0 %v6920_v61  ;;  %5816 = vmatprep.subr.bf16.mxu1 %v6217_v48 }
 0xdb2   :  { %5791 = vmatpush1.bf16.msra.mxu0 %v6922_v12  ;;  %5818 = vmatpush3.bf16.msra.mxu1 %v6960_v2 }
 0xdb3   :  { %5793 = vmatprep.subr.bf16.mxu0 %v6926_v30  ;;  %5819 = vmatprep.subr.bf16.mxu1 %v6217_v48 }
 0xdb6   :  { %5795 = vmatpush1.bf16.msra.mxu0 %v6928_v9  ;;  %5821 = vmatpush3.bf16.msra.mxu1 %v6964_v28 }
 0xdb7   :  { %5797 = vmatprep.subr.bf16.mxu0 %v6931_v38  ;;  %5822 = vmatprep.subr.bf16.mxu1 %v6217_v48 }
 0xdba   :  { %5799 = vmatpush1.bf16.msra.mxu0 %v6934_v31  ;;  %5824 = vmatpush3.bf16.msra.mxu1 %v6968_v53 }
 0xdbb   :  { %5801 = vmatprep.subr.bf16.mxu0 %v6942_v56  ;;  %5825 = vmatprep.subr.bf16.mxu1 %v6217_v48 }
 0xdbe   :  { %5803 = vmatpush1.bf16.msra.mxu0 %v6944_v3  ;;  %5827 = vmatpush3.bf16.msra.mxu1 %v6972_v51 }
 0xdbf   :  { %5829 = vmatprep.subr.bf16.mxu0 %v6896_v54  ;;  %5860 = vmatprep.subr.bf16.mxu1 %v6217_v48 }
 0xe74   :  { %v3357_v34 = vpop.f32.mrb[26].mxu0  ;;  %v3428_v37 = vpop.f32.mrb[42].mxu1 }
 0xe75   :  { %v5934_v11 = vadd.f32 %v3357_v34, %v7045_v23  ;;  %v3359_v6 = vpop.f32.mrb[27].mxu0  ;;  %v4810_v27 = vpop.f32.mrb[43].mxu1  ;;  %v3449_v54 = vadd.f32 %v7056_v52, %v3428_v37  ;;  %v3796_v34 = vld [vmem:[%s7411_s9 + $0x50] sm:$0xff] }
 0xe76   :  { %v5935_v29 = vadd.f32 %v3359_v6, %v7050_v41  ;;  %v3798_v27 = vld [vmem:[%s7411_s9 + $0x60] sm:$0xff] }
 0xe77   :  { %v3931_v10 = vmul.f32 -1.442695, %v5934_v11  ;;  %v3797_v11 = vld [vmem:[%s7411_s9 + $0x58] sm:$0xff] }
 0xe78   :  { %v3932_v4 = vmul.f32 -1.442695, %v5935_v29  ;;  %v5900_v6 = vpack.c.bf16 %v3797_v11, %v3796_v34 }
 0xe79   :  { %6110 = vpow2.f32 %v3931_v10  ;;  %v3799_v10 = vld [vmem:[%s7411_s9 + $0x68] sm:$0xff] }
 0xe7a   :  { %6112 = vpow2.f32 %v3932_v4  ;;  %v5903_v29 = vpack.c.bf16 %v3799_v10, %v3798_v27  ;;  %v3800_v4 = vld [vmem:[%s7411_s9 + $0x70] sm:$0xff] }
 0xe83   :  { %v6111_v20 = vpop.eup %6110 }
 0xe84   :  { %v3442_v19 = vadd.f32 1.0, %v6111_v20  ;;  %v6113_v39 = vpop.eup %6112  ;;  %v3801_v20 = vld [vmem:[%s7411_s9 + $0x78] sm:$0xff] }
 0xe85   :  { %v3443_v32 = vadd.f32 1.0, %v6113_v39 }
 0xe86   :  { %6114 = vrcp.f32 %v3442_v19  ;;  %v5906_v19 = vpack.c.bf16 %v3801_v20, %v3800_v4 }
 0xe90   :  { %v6115_v13 = vpop.eup %6114 }
 0xe91   :  { %v3450_v18 = vmul.f32 %v6115_v13, %v3449_v54 }
 0xe93   :  { %v3451_v59 = vadd.f32 %v3450_v18, %v2374_v8 }
 0xe95   :  { %6116 = vtanh.f32 %v3451_v59 }
 0xe96   :  { %6118 = vrcp.f32 %v3443_v32 }
 0xe9f   :  { %v6117_v16 = vpop.eup %6116 }
 0xea0   :  { %v3453_v62 = vsub.f32 %v7245_v36, %v6117_v16  ;;  %v6119_v5 = vpop.eup %6118  ;;  %v3795_v36 = vld [vmem:[%s7411_s9 + $0x48] sm:$0xff] }
 0xea1   :  { %v5897_v37 = vpack.c.bf16 %v3795_v36, %v3794_v1 }
 0xea2   :  { %v3454_v22 = vmul.f32 %v6119_v5, %v3453_v62 }
 0xea4   :  { %v3455_v7 = vadd.f32 %v6117_v16, %v3454_v22 }
 0xea6   :  { %3521 = vmatmul.mubr.f32.vlgmr.msra.gmra.mrb[28].mxu0 %v3455_v7  ;;  %4844 = vmatmul.mubr.f32.vlgmr.msra.gmra.mrb[44].mxu1 %v3455_v7 }
 0xea7   :  { %5831 = vmatpush1.bf16.msra.mxu0 %v6898_v43  ;;  %5862 = vmatpush3.bf16.msra.mxu1 %v6936_v33  ;;  %v2379_v33 = vadd.f32 %v7041_v46, %v7060_v15 }
 0xea8   :  { %5833 = vmatprep.subr.bf16.mxu0 %v6902_v40  ;;  %5863 = vmatprep.subr.bf16.mxu1 %v6217_v48 }
 0xea9   :  { %3685 = vmatprep.mubr.f32.mxu0 %v6216_v0  ;;  %4878 = vmatprep.mubr.msk.f32.mxu1 %vm6218_vm1, %v6216_v0 }
 0xeab   :  { %5835 = vmatpush1.bf16.msra.mxu0 %v6904_v44  ;;  %5865 = vmatpush3.bf16.msra.mxu1 %v6947_v21 }
 0xeac   :  { %5837 = vmatprep.subr.bf16.mxu0 %v6908_v17  ;;  %5866 = vmatprep.subr.bf16.mxu1 %v6217_v48 }
 0xeaf   :  { %5839 = vmatpush1.bf16.msra.mxu0 %v6910_v35  ;;  %5868 = vmatpush3.bf16.msra.mxu1 %v6953_v50 }
 0xeb0   :  { %5841 = vmatprep.subr.bf16.mxu0 %v6914_v45  ;;  %5869 = vmatprep.subr.bf16.mxu1 %v6217_v48 }
 0xeb3   :  { %5843 = vmatpush1.bf16.msra.mxu0 %v6916_v26  ;;  %5871 = vmatpush3.bf16.msra.mxu1 %v6956_v60 }
 0xeb4   :  { %5845 = vmatprep.subr.bf16.mxu0 %v6920_v61  ;;  %5872 = vmatprep.subr.bf16.mxu1 %v6217_v48 }
 0xeb7   :  { %5847 = vmatpush1.bf16.msra.mxu0 %v6922_v12  ;;  %5874 = vmatpush3.bf16.msra.mxu1 %v6960_v2 }
 0xeb8   :  { %5849 = vmatprep.subr.bf16.mxu0 %v6926_v30  ;;  %5875 = vmatprep.subr.bf16.mxu1 %v6217_v48 }
 0xebb   :  { %5851 = vmatpush1.bf16.msra.mxu0 %v6928_v9  ;;  %5877 = vmatpush3.bf16.msra.mxu1 %v6964_v28 }
 0xebc   :  { %5853 = vmatprep.subr.bf16.mxu0 %v6931_v38  ;;  %5878 = vmatprep.subr.bf16.mxu1 %v6217_v48 }
 0xebf   :  { %5855 = vmatpush1.bf16.msra.mxu0 %v6934_v31  ;;  %5880 = vmatpush3.bf16.msra.mxu1 %v6968_v53 }
 0xec0   :  { %5857 = vmatprep.subr.bf16.mxu0 %v6942_v56  ;;  %5881 = vmatprep.subr.bf16.mxu1 %v6217_v48 }
 0xec3   :  { %5859 = vmatpush1.bf16.msra.mxu0 %v6944_v3  ;;  %5883 = vmatpush3.bf16.msra.mxu1 %v6972_v51  ;;  %v3786_v51 = vld [vmem:[%s7411_s9] sm:$0xff] }
 0xec4   :  { %5884 = vmatprep.subr.bf16.mxu0 %v6217_v48  ;;  %v5885_v46 = vpack.c.bf16 %v3787_v49, %v3786_v51 }
 0xf79   :  { %v3522_v43 = vpop.f32.mrb[28].mxu0  ;;  %v3593_v40 = vpop.f32.mrb[44].mxu1 }
 0xf7a   :  { %v5936_v44 = vadd.f32 %v3522_v43, %v7045_v23  ;;  %v3524_v17 = vpop.f32.mrb[29].mxu0  ;;  %v4845_v35 = vpop.f32.mrb[45].mxu1  ;;  %v3614_v38 = vadd.f32 %v7056_v52, %v3593_v40  ;;  %v2384_v43 = vadd.f32 %v7039_v24, %v7060_v15 }
 0xf7b   :  { %v5937_v26 = vadd.f32 %v3524_v17, %v7050_v41 }
 0xf7c   :  { %v3933_v45 = vmul.f32 -1.442695, %v5936_v44 }
 0xf7d   :  { %v3934_v61 = vmul.f32 -1.442695, %v5937_v26 }
 0xf7e   :  { %6120 = vpow2.f32 %v3933_v45 }
 0xf7f   :  { %6122 = vpow2.f32 %v3934_v61 }
 0xf88   :  { %v6121_v12 = vpop.eup %6120 }
 0xf89   :  { %v3607_v30 = vadd.f32 1.0, %v6121_v12  ;;  %v6123_v9 = vpop.eup %6122 }
 0xf8a   :  { %v3608_v21 = vadd.f32 1.0, %v6123_v9 }
 0xf8b   :  { %6124 = vrcp.f32 %v3607_v30 }
 0xf95   :  { %v6125_v31 = vpop.eup %6124 }
 0xf96   :  { %v3615_v56 = vmul.f32 %v6125_v31, %v3614_v38 }
 0xf98   :  { %v3616_v3 = vadd.f32 %v3615_v56, %v2379_v33 }
 0xf9a   :  { %6126 = vtanh.f32 %v3616_v3 }
 0xf9b   :  { %6128 = vrcp.f32 %v3608_v21 }
 0xfa4   :  { %v6127_v50 = vpop.eup %6126 }
 0xfa5   :  { %v3618_v60 = vsub.f32 %v3455_v7, %v6127_v50  ;;  %v6129_v2 = vpop.eup %6128 }
 0xfa7   :  { %v3619_v28 = vmul.f32 %v6129_v2, %v3618_v60 }
 0xfa9   :  { %v7329_v53 = vadd.f32 %v6127_v50, %v3619_v28 }
 0xfab   :  { %3686 = vmatmul.mubr.f32.vlgmr.msra.gmra.mrb[30].mxu0 %v7329_v53  ;;  %4879 = vmatmul.mubr.f32.vlgmr.msra.gmra.mrb[46].mxu1 %v7329_v53 }
 0xfac   :  { %4913 = vmatprep.mubr.msk.f32.mxu0 %vm6218_vm1, %v6216_v0  ;;  %5886 = vmatpush3.bf16.msra.mxu0 %v5885_v46  ;;  %v3789_v0 = vld [vmem:[%s7411_s9 + $0x18] sm:$0xff] }
 0xfad   :  { %5887 = vmatprep.subr.bf16.mxu0 %v6217_v48  ;;  %v5888_v63 = vpack.c.bf16 %v3789_v0, %v3788_v42 }
 0xfb0   :  { %5889 = vmatpush3.bf16.msra.mxu0 %v5888_v63 }
 0xfb1   :  { %5890 = vmatprep.subr.bf16.mxu0 %v6217_v48 }
 0xfb4   :  { %5892 = vmatpush3.bf16.msra.mxu0 %v5891_v57 }
 0xfb5   :  { %5893 = vmatprep.subr.bf16.mxu0 %v6217_v48 }
 0xfb8   :  { %5895 = vmatpush3.bf16.msra.mxu0 %v5894_v55 }
 0xfb9   :  { %5896 = vmatprep.subr.bf16.mxu0 %v6217_v48 }
 0xfbc   :  { %5898 = vmatpush3.bf16.msra.mxu0 %v5897_v37 }
 0xfbd   :  { %5899 = vmatprep.subr.bf16.mxu0 %v6217_v48 }
 0xfc0   :  { %5901 = vmatpush3.bf16.msra.mxu0 %v5900_v6 }
 0xfc1   :  { %5902 = vmatprep.subr.bf16.mxu0 %v6217_v48 }
 0xfc4   :  { %5904 = vmatpush3.bf16.msra.mxu0 %v5903_v29 }
 0xfc5   :  { %5905 = vmatprep.subr.bf16.mxu0 %v6217_v48 }
 0xfc8   :  { %5907 = vmatpush3.bf16.msra.mxu0 %v5906_v19 }
0x107e   :  { %v3687_v39 = vpop.f32.mrb[30].mxu0  ;;  %v3758_v54 = vpop.f32.mrb[46].mxu1 }
0x107f   :  { %v5938_v13 = vadd.f32 %v3687_v39, %v7045_v23  ;;  %v3689_v8 = vpop.f32.mrb[31].mxu0  ;;  %v4880_v18 = vpop.f32.mrb[47].mxu1  ;;  %v3779_v7 = vadd.f32 %v7056_v52, %v3758_v54  ;;  %v3937_v52 = vld [vmem:[%s7412_s10] ss:$0 sm:$0xff] }
0x1080   :  { %v5939_v32 = vadd.f32 %v3689_v8, %v7050_v41 }
0x1081   :  { %v3935_v59 = vmul.f32 -1.442695, %v5938_v13 }
0x1082   :  { %v3936_v16 = vmul.f32 -1.442695, %v5939_v32 }
0x1083   :  { %6130 = vpow2.f32 %v3935_v59 }
0x1084   :  { %6132 = vpow2.f32 %v3936_v16 }
0x108d   :  { %v6131_v62 = vpop.eup %6130 }
0x108e   :  { %v3772_v5 = vadd.f32 1.0, %v6131_v62  ;;  %v6133_v22 = vpop.eup %6132 }
0x108f   :  { %v3773_v44 = vadd.f32 1.0, %v6133_v22 }
0x1090   :  { %6134 = vrcp.f32 %v3772_v5 }
0x109a   :  { %v6135_v48 = vpop.eup %6134 }
0x109b   :  { %v3780_v40 = vmul.f32 %v6135_v48, %v3779_v7 }
0x109d   :  { %v3781_v23 = vadd.f32 %v3780_v40, %v2384_v43 }
0x109f   :  { %6136 = vtanh.f32 %v3781_v23 }
0x10a0   :  { %6138 = vrcp.f32 %v3773_v44 }
0x10a9   :  { %v6137_v17 = vpop.eup %6136 }
0x10aa   :  { %v3783_v41 = vsub.f32 %v7329_v53, %v6137_v17  ;;  %v6139_v35 = vpop.eup %6138 }
0x10ac   :  { %v3784_v45 = vmul.f32 %v6139_v35, %v3783_v41 }
0x10ae   :  { %v3785_v26 = vadd.f32 %v6137_v17, %v3784_v45 }
0x10b0   :  { %4914 = vmatmul.mubr.f32.vlgmr.msra.gmra.mrb[32].mxu0 %v3785_v26 }
0x1183   :  { %v3875_v61 = vpop.f32.mrb[32].mxu0 }
0x1184   :  { %v3876_v12 = vadd.f32 %v3937_v52, %v3875_v61  ;;  %v4915_v24 = vpop.f32.mrb[33].mxu0 }
0x1186   :  { %3880 = vst.msk [vmem:[%s7413_s11] sm:$0xff] %vm3879_vm2, %v3876_v12 }
0x1187   :  { %3885 = vsyncpa [#allocation5], 1 }
0x1188   :  { %3886 = vsyncpa [#allocation7], 1 }

</bundles_post_ra>
